<compile_context>
chip_gen: v7x
topology: tpu7x:2x2x1
jax: 0.10.0
libtpu: 0.0.40
codegen_flags: <defaults>
</compile_context>

<pallas_src>
import functools

import jax
import jax.numpy as jnp
from jax import lax
from jax.experimental import pallas as pl
from jax.experimental.pallas import tpu as pltpu


# ---------------------------------------------------------------------------
# Fused kernel: one batch element per grid step, everything stays in VMEM.
# ---------------------------------------------------------------------------
def _fused_bottleneck_kernel(
    x_ref, w1_ref, b1_ref, wd_ref, b2_ref, w3_ref, b3_ref, o_ref, ep_ref, *,
    stride, H, W, Ho, Wo, Cin, Ce, Cout, add_residual, row_block,
):
    # ---- Stage 1: 1x1 expand (BN scale pre-folded into w1) + bias + ReLU6 --
    xf = x_ref[0].astype(jnp.float32)                        # (H, W, Cin)
    if Cin <= 8:
        # Tiny contraction depth: VPU broadcast-FMA (outer product) instead of
        # a nearly-empty MXU matmul.
        e = jnp.zeros((H, W, Ce), jnp.float32)
        for c in range(Cin):
            e = e + xf[:, :, c:c + 1] * w1_ref[c:c + 1, :]   # (H,W,1)*(1,Ce)
    else:
        e = jnp.dot(xf.reshape(H * W, Cin), w1_ref[...],
                    preferred_element_type=jnp.float32).reshape(H, W, Ce)
    e = jnp.clip(e + b1_ref[...], 0.0, 6.0)

    # Zero-init padded scratch (the halo) and write the interior: the expanded
    # activation never goes back to HBM and no jnp.pad copy is made.
    ep_ref[...] = jnp.zeros((H + 2, W + 2, Ce), jnp.float32)
    ep_ref[1:H + 1, 1:W + 1, :] = e

    # Hoisted loop-invariant loads (traced once per grid step).
    wd = [wd_ref[k:k + 1, :] for k in range(9)]              # 9 x (1, Ce)
    b2 = b2_ref[...]
    w3 = w3_ref[...]
    b3 = b3_ref[...]

    # ---- Stages 2 + 3 over row blocks --------------------------------------
    for oy0 in range(0, Ho, row_block):
        rb = min(row_block, Ho - oy0)

        # 3x3 depthwise tap-sum (BN scale pre-folded into wd) for this block.
        acc = jnp.zeros((rb, Wo, Ce), jnp.float32)
        for dy in range(3):
            for dx in range(3):
                r0 = oy0 * stride + dy
                if stride == 1:
                    tap = ep_ref[r0:r0 + rb, dx:dx + Wo, :]
                else:
                    # TODO(synk): stride-2 sublane-strided slice; an even/odd
                    # phase split would avoid cross-sublane gathers.
                    blk = ep_ref[r0:r0 + stride * (rb - 1) + 1,
                                 dx:dx + stride * (Wo - 1) + 1, :]
                    tap = lax.slice(blk, (0, 0, 0), blk.shape,
                                    (stride, stride, 1))
                acc = acc + tap * wd[3 * dy + dx]
        d = jnp.clip(acc + b2, 0.0, 6.0)                     # (rb, Wo, Ce)

        # 1x1 project (BN scale pre-folded into w3) + bias (+ residual).
        y = jnp.dot(d.reshape(rb * Wo, Ce), w3,
                    preferred_element_type=jnp.float32)
        y = (y + b3).reshape(rb, Wo, Cout)
        if add_residual:
            y = y + x_ref[0, oy0:oy0 + rb, :, :].astype(jnp.float32)
        o_ref[0, oy0:oy0 + rb, :, :] = y.astype(o_ref.dtype)


# ---------------------------------------------------------------------------
# Wrapper (pallas_call glue)
# ---------------------------------------------------------------------------
def linear_bottleneck(x_nchw, fused, *, stride, in_channels, out_channels):
    """Pallas implementation of LinearBottleNeck.forward (NCHW in, NCHW out)."""
    N, Cin, H, W = x_nchw.shape
    Ce = fused["w1"].shape[1]
    Cout = out_channels
    Ho = (H - 1) // stride + 1
    Wo = (W - 1) // stride + 1
    add_residual = (stride == 1) and (in_channels == out_channels)

    x = jnp.transpose(x_nchw, (0, 2, 3, 1))                  # -> NHWC
    wd9 = fused["wd"].reshape(9, Ce)                         # (3,3,Ce) -> (9,Ce)
    b1 = fused["b1"].reshape(1, Ce)
    b2 = fused["b2"].reshape(1, Ce)
    b3 = fused["b3"].reshape(1, Cout)

    # Row block sized so the projection matmul sees ~256 rows on the MXU while
    # the depthwise accumulator stays a few vregs.
    row_block = max(1, min(Ho, max(8, 256 // max(1, Wo))))

    kern = functools.partial(
        _fused_bottleneck_kernel, stride=stride, H=H, W=W, Ho=Ho, Wo=Wo,
        Cin=Cin, Ce=Ce, Cout=Cout, add_residual=add_residual,
        row_block=row_block,
    )
    rep2 = lambda n: (0, 0)

    out = pl.pallas_call(
        kern,
        out_shape=jax.ShapeDtypeStruct((N, Ho, Wo, Cout), x.dtype),
        grid=(N,),
        in_specs=[
            pl.BlockSpec((1, H, W, Cin), lambda n: (n, 0, 0, 0)),
            pl.BlockSpec((Cin, Ce), rep2),
            pl.BlockSpec((1, Ce), rep2),
            pl.BlockSpec((9, Ce), rep2),
            pl.BlockSpec((1, Ce), rep2),
            pl.BlockSpec((Ce, Cout), rep2),
            pl.BlockSpec((1, Cout), rep2),
        ],
        out_specs=pl.BlockSpec((1, Ho, Wo, Cout), lambda n: (n, 0, 0, 0)),
        scratch_shapes=[pltpu.VMEM((H + 2, W + 2, Ce), jnp.float32)],
        compiler_params=pltpu.CompilerParams(
            dimension_semantics=("parallel",)),
    )(x, fused["w1"], b1, wd9, b2, fused["w3"], b3)

    return jnp.transpose(out, (0, 3, 1, 2))                  # -> NCHW


# ---------------------------------------------------------------------------
# Parameter construction (deterministic, synthetic) + BN folding
# ---------------------------------------------------------------------------
def make_raw_params(key, cin, cout, t=6):
    Ce = cin * t
    ks = list(jax.random.split(key, 18))

    def nxt():
        return ks.pop()

    def bn_params(C):
        gamma = jax.random.uniform(nxt(), (C,), minval=0.5, maxval=1.5)
        beta = 0.1 * jax.random.normal(nxt(), (C,))
        rmean = 0.1 * jax.random.normal(nxt(), (C,))
        rvar = jax.random.uniform(nxt(), (C,), minval=0.5, maxval=1.5)
        return gamma, beta, rmean, rvar

    raw = {
        "w1": 0.2 * jax.random.normal(nxt(), (cin, Ce), jnp.float32),
        "bias1": 0.05 * jax.random.normal(nxt(), (Ce,), jnp.float32),
        "bn1": bn_params(Ce),
        "wd": 0.2 * jax.random.normal(nxt(), (3, 3, Ce), jnp.float32),
        "biasd": 0.05 * jax.random.normal(nxt(), (Ce,), jnp.float32),
        "bn2": bn_params(Ce),
        "w3": 0.2 * jax.random.normal(nxt(), (Ce, cout), jnp.float32),
        "bias3": 0.05 * jax.random.normal(nxt(), (cout,), jnp.float32),
        "bn3": bn_params(cout),
    }
    return raw


def fold_bn(raw, eps=1e-5):
    """Fold eval-mode BatchNorm into the conv weights (scale) and biases."""
    def fold(w, conv_bias, bn):
        gamma, beta, rmean, rvar = bn
        scale = gamma / jnp.sqrt(rvar + eps)          # per output channel
        bias = (conv_bias - rmean) * scale + beta
        return w * scale, bias                        # scale broadcasts on last axis

    w1, b1 = fold(raw["w1"], raw["bias1"], raw["bn1"])
    wd, b2 = fold(raw["wd"], raw["biasd"], raw["bn2"])
    w3, b3 = fold(raw["w3"], raw["bias3"], raw["bn3"])
    return {"w1": w1, "b1": b1, "wd": wd, "b2": b2, "w3": w3, "b3": b3}


# ---------------------------------------------------------------------------
# Pure-JAX reference (unfused, eval-mode BN) for correctness checking
# ---------------------------------------------------------------------------
def reference(x_nchw, raw, *, stride, cin, cout, eps=1e-5):
    x = jnp.transpose(x_nchw, (0, 2, 3, 1))

    def bn(h, params):
        gamma, beta, rmean, rvar = params
        return (h - rmean) / jnp.sqrt(rvar + eps) * gamma + beta

    h = jnp.einsum("nhwc,cd->nhwd", x, raw["w1"]) + raw["bias1"]
    h = jnp.clip(bn(h, raw["bn1"]), 0.0, 6.0)

    Ce = h.shape[-1]
    h = lax.conv_general_dilated(
        h, raw["wd"].reshape(3, 3, 1, Ce),
        window_strides=(stride, stride), padding=((1, 1), (1, 1)),
        dimension_numbers=("NHWC", "HWIO", "NHWC"),
        feature_group_count=Ce,
    ) + raw["biasd"]
    h = jnp.clip(bn(h, raw["bn2"]), 0.0, 6.0)

    h = jnp.einsum("nhwc,cd->nhwd", h, raw["w3"]) + raw["bias3"]
    h = bn(h, raw["bn3"])
    if stride == 1 and cin == cout:
        h = h + x
    return jnp.transpose(h, (0, 3, 1, 2))


# ---------------------------------------------------------------------------
if __name__ == "__main__":
    # Small shapes: batch=2, in_channels=4, out_channels=4, spatial=16,
    # stride=1, t=6  (stride 1 + cin==cout also exercises the residual path).
    N, CIN, COUT, H, W, STRIDE, T = 2, 4, 4, 16, 16, 1, 6

    key = jax.random.PRNGKey(0)
    kx, kp = jax.random.split(key)
    x = jax.random.normal(kx, (N, CIN, H, W), jnp.float32)  # NCHW like PyTorch

    raw = make_raw_params(kp, CIN, COUT, t=T)
    fused = fold_bn(raw)

    out = linear_bottleneck(x, fused, stride=STRIDE, in_channels=CIN,
                            out_channels=COUT)
    out = jax.block_until_ready(out)

    ref = reference(x, raw, stride=STRIDE, cin=CIN, cout=COUT)
    assert out.shape == ref.shape, (out.shape, ref.shape)
    assert jnp.allclose(out, ref, atol=1e-4, rtol=1e-4), \
        float(jnp.max(jnp.abs(out - ref)))

    print("KERNEL_OK")
</pallas_src>

<mosaic_0001>
module attributes {stable_mosaic.version = 11 : i64} {
  func.func @_fused_bottleneck_kernel(%arg0: i32, %arg1: memref<1x16x16x4xf32, #tpu.memory_space<vmem>>, %arg2: memref<4x24xf32, #tpu.memory_space<vmem>>, %arg3: memref<1x24xf32, #tpu.memory_space<vmem>>, %arg4: memref<9x24xf32, #tpu.memory_space<vmem>>, %arg5: memref<1x24xf32, #tpu.memory_space<vmem>>, %arg6: memref<24x4xf32, #tpu.memory_space<vmem>>, %arg7: memref<1x4xf32, #tpu.memory_space<vmem>>, %arg8: memref<1x16x16x4xf32, #tpu.memory_space<vmem>>, %arg9: memref<18x18x24xf32, #tpu.memory_space<vmem>>) attributes {dimension_semantics = [#tpu.dimension_semantics<parallel>], iteration_bounds = array<i64: 2>, scalar_prefetch = 0 : i64, scratch_operands = 1 : i64, tpu.core_type = #tpu.core_type<tc>, window_params = [{transform_indices = @transform_0, window_bounds = array<i64: 1, 16, 16, 4>}, {pipeline_mode = #tpu.pipeline_mode<synchronous>, transform_indices = @transform_1, window_bounds = array<i64: 4, 24>}, {pipeline_mode = #tpu.pipeline_mode<synchronous>, transform_indices = @transform_2, window_bounds = array<i64: 1, 24>}, {pipeline_mode = #tpu.pipeline_mode<synchronous>, transform_indices = @transform_3, window_bounds = array<i64: 9, 24>}, {pipeline_mode = #tpu.pipeline_mode<synchronous>, transform_indices = @transform_4, window_bounds = array<i64: 1, 24>}, {pipeline_mode = #tpu.pipeline_mode<synchronous>, transform_indices = @transform_5, window_bounds = array<i64: 24, 4>}, {pipeline_mode = #tpu.pipeline_mode<synchronous>, transform_indices = @transform_6, window_bounds = array<i64: 1, 4>}, {transform_indices = @transform_7, window_bounds = array<i64: 1, 16, 16, 4>}]} {
    %c0 = arith.constant 0 : index
    %c0_0 = arith.constant 0 : index
    %c0_1 = arith.constant 0 : index
    %c0_2 = arith.constant 0 : index
    %0 = vector.load %arg1[%c0, %c0_0, %c0_1, %c0_2] : memref<1x16x16x4xf32, #tpu.memory_space<vmem>>, vector<1x16x16x4xf32>
    %1 = vector.shape_cast %0 : vector<1x16x16x4xf32> to vector<16x16x4xf32>
    %cst = arith.constant 0.000000e+00 : f32
    %2 = vector.broadcast %cst : f32 to vector<16x16x24xf32>
    %3 = vector.extract_strided_slice %1 {offsets = [0, 0, 0], sizes = [16, 16, 1], strides = [1, 1, 1]} : vector<16x16x4xf32> to vector<16x16x1xf32>
    %c0_3 = arith.constant 0 : index
    %c0_4 = arith.constant 0 : index
    %4 = vector.load %arg2[%c0_3, %c0_4] : memref<4x24xf32, #tpu.memory_space<vmem>>, vector<1x24xf32>
    %5 = vector.shape_cast %4 : vector<1x24xf32> to vector<1x1x24xf32>
    %6 = vector.broadcast %3 : vector<16x16x1xf32> to vector<16x16x24xf32>
    %7 = vector.broadcast %5 : vector<1x1x24xf32> to vector<16x16x24xf32>
    %8 = arith.mulf %6, %7 : vector<16x16x24xf32>
    %9 = arith.addf %2, %8 : vector<16x16x24xf32>
    %10 = vector.extract_strided_slice %1 {offsets = [0, 0, 1], sizes = [16, 16, 1], strides = [1, 1, 1]} : vector<16x16x4xf32> to vector<16x16x1xf32>
    %c1 = arith.constant 1 : index
    %c0_5 = arith.constant 0 : index
    %11 = vector.load %arg2[%c1, %c0_5] : memref<4x24xf32, #tpu.memory_space<vmem>>, vector<1x24xf32>
    %12 = vector.shape_cast %11 : vector<1x24xf32> to vector<1x1x24xf32>
    %13 = vector.broadcast %10 : vector<16x16x1xf32> to vector<16x16x24xf32>
    %14 = vector.broadcast %12 : vector<1x1x24xf32> to vector<16x16x24xf32>
    %15 = arith.mulf %13, %14 : vector<16x16x24xf32>
    %16 = arith.addf %9, %15 : vector<16x16x24xf32>
    %17 = vector.extract_strided_slice %1 {offsets = [0, 0, 2], sizes = [16, 16, 1], strides = [1, 1, 1]} : vector<16x16x4xf32> to vector<16x16x1xf32>
    %c2 = arith.constant 2 : index
    %c0_6 = arith.constant 0 : index
    %18 = vector.load %arg2[%c2, %c0_6] : memref<4x24xf32, #tpu.memory_space<vmem>>, vector<1x24xf32>
    %19 = vector.shape_cast %18 : vector<1x24xf32> to vector<1x1x24xf32>
    %20 = vector.broadcast %17 : vector<16x16x1xf32> to vector<16x16x24xf32>
    %21 = vector.broadcast %19 : vector<1x1x24xf32> to vector<16x16x24xf32>
    %22 = arith.mulf %20, %21 : vector<16x16x24xf32>
    %23 = arith.addf %16, %22 : vector<16x16x24xf32>
    %24 = vector.extract_strided_slice %1 {offsets = [0, 0, 3], sizes = [16, 16, 1], strides = [1, 1, 1]} : vector<16x16x4xf32> to vector<16x16x1xf32>
    %c3 = arith.constant 3 : index
    %c0_7 = arith.constant 0 : index
    %25 = vector.load %arg2[%c3, %c0_7] : memref<4x24xf32, #tpu.memory_space<vmem>>, vector<1x24xf32>
    %26 = vector.shape_cast %25 : vector<1x24xf32> to vector<1x1x24xf32>
    %27 = vector.broadcast %24 : vector<16x16x1xf32> to vector<16x16x24xf32>
    %28 = vector.broadcast %26 : vector<1x1x24xf32> to vector<16x16x24xf32>
    %29 = arith.mulf %27, %28 : vector<16x16x24xf32>
    %30 = arith.addf %23, %29 : vector<16x16x24xf32>
    %c0_8 = arith.constant 0 : index
    %c0_9 = arith.constant 0 : index
    %31 = vector.load %arg3[%c0_8, %c0_9] : memref<1x24xf32, #tpu.memory_space<vmem>>, vector<1x24xf32>
    %32 = vector.shape_cast %31 : vector<1x24xf32> to vector<1x1x24xf32>
    %33 = vector.broadcast %32 : vector<1x1x24xf32> to vector<16x16x24xf32>
    %34 = arith.addf %30, %33 : vector<16x16x24xf32>
    %cst_10 = arith.constant 0.000000e+00 : f32
    %cst_11 = arith.constant 6.000000e+00 : f32
    %35 = vector.broadcast %cst_10 : f32 to vector<16x16x24xf32>
    %36 = arith.maximumf %35, %34 : vector<16x16x24xf32>
    %37 = vector.broadcast %cst_11 : f32 to vector<16x16x24xf32>
    %38 = arith.minimumf %37, %36 : vector<16x16x24xf32>
    %cst_12 = arith.constant 0.000000e+00 : f32
    %39 = vector.broadcast %cst_12 : f32 to vector<18x18x24xf32>
    %c0_13 = arith.constant 0 : index
    %c0_14 = arith.constant 0 : index
    %c0_15 = arith.constant 0 : index
    %40 = vector.load %arg9[%c0_13, %c0_14, %c0_15] : memref<18x18x24xf32, #tpu.memory_space<vmem>>, vector<18x18x24xf32>
    tpu.vector_store %arg9[%c0_13, %c0_14, %c0_15], %39 {strides = array<i32>} : memref<18x18x24xf32, #tpu.memory_space<vmem>>, vector<18x18x24xf32>,
    %c1_16 = arith.constant 1 : index
    %c1_17 = arith.constant 1 : index
    %c0_18 = arith.constant 0 : index
    %41 = vector.load %arg9[%c1_16, %c1_17, %c0_18] : memref<18x18x24xf32, #tpu.memory_space<vmem>>, vector<16x16x24xf32>
    tpu.vector_store %arg9[%c1_16, %c1_17, %c0_18], %38 {strides = array<i32>} : memref<18x18x24xf32, #tpu.memory_space<vmem>>, vector<16x16x24xf32>,
    %c0_19 = arith.constant 0 : index
    %c0_20 = arith.constant 0 : index
    %42 = vector.load %arg4[%c0_19, %c0_20] : memref<9x24xf32, #tpu.memory_space<vmem>>, vector<1x24xf32>
    %c1_21 = arith.constant 1 : index
    %c0_22 = arith.constant 0 : index
    %43 = vector.load %arg4[%c1_21, %c0_22] : memref<9x24xf32, #tpu.memory_space<vmem>>, vector<1x24xf32>
    %c2_23 = arith.constant 2 : index
    %c0_24 = arith.constant 0 : index
    %44 = vector.load %arg4[%c2_23, %c0_24] : memref<9x24xf32, #tpu.memory_space<vmem>>, vector<1x24xf32>
    %c3_25 = arith.constant 3 : index
    %c0_26 = arith.constant 0 : index
    %45 = vector.load %arg4[%c3_25, %c0_26] : memref<9x24xf32, #tpu.memory_space<vmem>>, vector<1x24xf32>
    %c4 = arith.constant 4 : index
    %c0_27 = arith.constant 0 : index
    %46 = vector.load %arg4[%c4, %c0_27] : memref<9x24xf32, #tpu.memory_space<vmem>>, vector<1x24xf32>
    %c5 = arith.constant 5 : index
    %c0_28 = arith.constant 0 : index
    %47 = vector.load %arg4[%c5, %c0_28] : memref<9x24xf32, #tpu.memory_space<vmem>>, vector<1x24xf32>
    %c6 = arith.constant 6 : index
    %c0_29 = arith.constant 0 : index
    %48 = vector.load %arg4[%c6, %c0_29] : memref<9x24xf32, #tpu.memory_space<vmem>>, vector<1x24xf32>
    %c7 = arith.constant 7 : index
    %c0_30 = arith.constant 0 : index
    %49 = vector.load %arg4[%c7, %c0_30] : memref<9x24xf32, #tpu.memory_space<vmem>>, vector<1x24xf32>
    %c8 = arith.constant 8 : index
    %c0_31 = arith.constant 0 : index
    %50 = vector.load %arg4[%c8, %c0_31] : memref<9x24xf32, #tpu.memory_space<vmem>>, vector<1x24xf32>
    %c0_32 = arith.constant 0 : index
    %c0_33 = arith.constant 0 : index
    %51 = vector.load %arg5[%c0_32, %c0_33] : memref<1x24xf32, #tpu.memory_space<vmem>>, vector<1x24xf32>
    %c0_34 = arith.constant 0 : index
    %c0_35 = arith.constant 0 : index
    %52 = vector.load %arg6[%c0_34, %c0_35] : memref<24x4xf32, #tpu.memory_space<vmem>>, vector<24x4xf32>
    %c0_36 = arith.constant 0 : index
    %c0_37 = arith.constant 0 : index
    %53 = vector.load %arg7[%c0_36, %c0_37] : memref<1x4xf32, #tpu.memory_space<vmem>>, vector<1x4xf32>
    %cst_38 = arith.constant 0.000000e+00 : f32
    %54 = vector.broadcast %cst_38 : f32 to vector<16x16x24xf32>
    %c0_39 = arith.constant 0 : index
    %c0_40 = arith.constant 0 : index
    %c0_41 = arith.constant 0 : index
    %55 = vector.load %arg9[%c0_39, %c0_40, %c0_41] : memref<18x18x24xf32, #tpu.memory_space<vmem>>, vector<16x16x24xf32>
    %56 = vector.shape_cast %42 : vector<1x24xf32> to vector<1x1x24xf32>
    %57 = vector.broadcast %56 : vector<1x1x24xf32> to vector<16x16x24xf32>
    %58 = arith.mulf %55, %57 : vector<16x16x24xf32>
    %59 = arith.addf %54, %58 : vector<16x16x24xf32>
    %c0_42 = arith.constant 0 : index
    %c1_43 = arith.constant 1 : index
    %c0_44 = arith.constant 0 : index
    %60 = vector.load %arg9[%c0_42, %c1_43, %c0_44] : memref<18x18x24xf32, #tpu.memory_space<vmem>>, vector<16x16x24xf32>
    %61 = vector.shape_cast %43 : vector<1x24xf32> to vector<1x1x24xf32>
    %62 = vector.broadcast %61 : vector<1x1x24xf32> to vector<16x16x24xf32>
    %63 = arith.mulf %60, %62 : vector<16x16x24xf32>
    %64 = arith.addf %59, %63 : vector<16x16x24xf32>
    %c0_45 = arith.constant 0 : index
    %c2_46 = arith.constant 2 : index
    %c0_47 = arith.constant 0 : index
    %65 = vector.load %arg9[%c0_45, %c2_46, %c0_47] : memref<18x18x24xf32, #tpu.memory_space<vmem>>, vector<16x16x24xf32>
    %66 = vector.shape_cast %44 : vector<1x24xf32> to vector<1x1x24xf32>
    %67 = vector.broadcast %66 : vector<1x1x24xf32> to vector<16x16x24xf32>
    %68 = arith.mulf %65, %67 : vector<16x16x24xf32>
    %69 = arith.addf %64, %68 : vector<16x16x24xf32>
    %c1_48 = arith.constant 1 : index
    %c0_49 = arith.constant 0 : index
    %c0_50 = arith.constant 0 : index
    %70 = vector.load %arg9[%c1_48, %c0_49, %c0_50] : memref<18x18x24xf32, #tpu.memory_space<vmem>>, vector<16x16x24xf32>
    %71 = vector.shape_cast %45 : vector<1x24xf32> to vector<1x1x24xf32>
    %72 = vector.broadcast %71 : vector<1x1x24xf32> to vector<16x16x24xf32>
    %73 = arith.mulf %70, %72 : vector<16x16x24xf32>
    %74 = arith.addf %69, %73 : vector<16x16x24xf32>
    %c1_51 = arith.constant 1 : index
    %c1_52 = arith.constant 1 : index
    %c0_53 = arith.constant 0 : index
    %75 = vector.load %arg9[%c1_51, %c1_52, %c0_53] : memref<18x18x24xf32, #tpu.memory_space<vmem>>, vector<16x16x24xf32>
    %76 = vector.shape_cast %46 : vector<1x24xf32> to vector<1x1x24xf32>
    %77 = vector.broadcast %76 : vector<1x1x24xf32> to vector<16x16x24xf32>
    %78 = arith.mulf %75, %77 : vector<16x16x24xf32>
    %79 = arith.addf %74, %78 : vector<16x16x24xf32>
    %c1_54 = arith.constant 1 : index
    %c2_55 = arith.constant 2 : index
    %c0_56 = arith.constant 0 : index
    %80 = vector.load %arg9[%c1_54, %c2_55, %c0_56] : memref<18x18x24xf32, #tpu.memory_space<vmem>>, vector<16x16x24xf32>
    %81 = vector.shape_cast %47 : vector<1x24xf32> to vector<1x1x24xf32>
    %82 = vector.broadcast %81 : vector<1x1x24xf32> to vector<16x16x24xf32>
    %83 = arith.mulf %80, %82 : vector<16x16x24xf32>
    %84 = arith.addf %79, %83 : vector<16x16x24xf32>
    %c2_57 = arith.constant 2 : index
    %c0_58 = arith.constant 0 : index
    %c0_59 = arith.constant 0 : index
    %85 = vector.load %arg9[%c2_57, %c0_58, %c0_59] : memref<18x18x24xf32, #tpu.memory_space<vmem>>, vector<16x16x24xf32>
    %86 = vector.shape_cast %48 : vector<1x24xf32> to vector<1x1x24xf32>
    %87 = vector.broadcast %86 : vector<1x1x24xf32> to vector<16x16x24xf32>
    %88 = arith.mulf %85, %87 : vector<16x16x24xf32>
    %89 = arith.addf %84, %88 : vector<16x16x24xf32>
    %c2_60 = arith.constant 2 : index
    %c1_61 = arith.constant 1 : index
    %c0_62 = arith.constant 0 : index
    %90 = vector.load %arg9[%c2_60, %c1_61, %c0_62] : memref<18x18x24xf32, #tpu.memory_space<vmem>>, vector<16x16x24xf32>
    %91 = vector.shape_cast %49 : vector<1x24xf32> to vector<1x1x24xf32>
    %92 = vector.broadcast %91 : vector<1x1x24xf32> to vector<16x16x24xf32>
    %93 = arith.mulf %90, %92 : vector<16x16x24xf32>
    %94 = arith.addf %89, %93 : vector<16x16x24xf32>
    %c2_63 = arith.constant 2 : index
    %c2_64 = arith.constant 2 : index
    %c0_65 = arith.constant 0 : index
    %95 = vector.load %arg9[%c2_63, %c2_64, %c0_65] : memref<18x18x24xf32, #tpu.memory_space<vmem>>, vector<16x16x24xf32>
    %96 = vector.shape_cast %50 : vector<1x24xf32> to vector<1x1x24xf32>
    %97 = vector.broadcast %96 : vector<1x1x24xf32> to vector<16x16x24xf32>
    %98 = arith.mulf %95, %97 : vector<16x16x24xf32>
    %99 = arith.addf %94, %98 : vector<16x16x24xf32>
    %100 = vector.shape_cast %51 : vector<1x24xf32> to vector<1x1x24xf32>
    %101 = vector.broadcast %100 : vector<1x1x24xf32> to vector<16x16x24xf32>
    %102 = arith.addf %99, %101 : vector<16x16x24xf32>
    %cst_66 = arith.constant 0.000000e+00 : f32
    %cst_67 = arith.constant 6.000000e+00 : f32
    %103 = vector.broadcast %cst_66 : f32 to vector<16x16x24xf32>
    %104 = arith.maximumf %103, %102 : vector<16x16x24xf32>
    %105 = vector.broadcast %cst_67 : f32 to vector<16x16x24xf32>
    %106 = arith.minimumf %105, %104 : vector<16x16x24xf32>
    %107 = vector.shape_cast %106 : vector<16x16x24xf32> to vector<256x24xf32>
    %cst_68 = arith.constant dense<0.000000e+00> : vector<256x4xf32>
    %108 = tpu.matmul %107, %52, %cst_68 {dimension_numbers = #tpu.dot_dimension_numbers<[1], [0], [0], [1], [0, 0, 1, 1], [], []>} : vector<256x24xf32>, vector<24x4xf32>, vector<256x4xf32> -> vector<256x4xf32>
    %109 = vector.broadcast %53 : vector<1x4xf32> to vector<256x4xf32>
    %110 = arith.addf %108, %109 : vector<256x4xf32>
    %111 = vector.shape_cast %110 : vector<256x4xf32> to vector<16x16x4xf32>
    %c0_69 = arith.constant 0 : index
    %c0_70 = arith.constant 0 : index
    %c0_71 = arith.constant 0 : index
    %c0_72 = arith.constant 0 : index
    %112 = vector.load %arg1[%c0_69, %c0_70, %c0_71, %c0_72] : memref<1x16x16x4xf32, #tpu.memory_space<vmem>>, vector<1x16x16x4xf32>
    %113 = vector.shape_cast %112 : vector<1x16x16x4xf32> to vector<16x16x4xf32>
    %114 = arith.addf %111, %113 : vector<16x16x4xf32>
    %c0_73 = arith.constant 0 : index
    %c0_74 = arith.constant 0 : index
    %c0_75 = arith.constant 0 : index
    %c0_76 = arith.constant 0 : index
    %115 = vector.load %arg8[%c0_73, %c0_74, %c0_75, %c0_76] : memref<1x16x16x4xf32, #tpu.memory_space<vmem>>, vector<1x16x16x4xf32>
    %116 = vector.shape_cast %115 : vector<1x16x16x4xf32> to vector<16x16x4xf32>
    %117 = vector.shape_cast %114 : vector<16x16x4xf32> to vector<1x16x16x4xf32>
    tpu.vector_store %arg8[%c0_73, %c0_74, %c0_75, %c0_76], %117 {strides = array<i32>} : memref<1x16x16x4xf32, #tpu.memory_space<vmem>>, vector<1x16x16x4xf32>,
    return
  }
  func.func @transform_0(%arg0: i32) -> (i32, i32, i32, i32) {
    %c0_i32 = arith.constant 0 : i32
    %c0_i32_0 = arith.constant 0 : i32
    %c0_i32_1 = arith.constant 0 : i32
    %c0_i32_2 = arith.constant 0 : i32
    return %arg0, %c0_i32, %c0_i32_0, %c0_i32_1 : i32, i32, i32, i32
  }
  func.func @transform_1(%arg0: i32) -> (i32, i32) {
    %c0_i32 = arith.constant 0 : i32
    %c0_i32_0 = arith.constant 0 : i32
    %c0_i32_1 = arith.constant 0 : i32
    return %c0_i32, %c0_i32_0 : i32, i32
  }
  func.func @transform_2(%arg0: i32) -> (i32, i32) {
    %c0_i32 = arith.constant 0 : i32
    %c0_i32_0 = arith.constant 0 : i32
    %c0_i32_1 = arith.constant 0 : i32
    return %c0_i32, %c0_i32_0 : i32, i32
  }
  func.func @transform_3(%arg0: i32) -> (i32, i32) {
    %c0_i32 = arith.constant 0 : i32
    %c0_i32_0 = arith.constant 0 : i32
    %c0_i32_1 = arith.constant 0 : i32
    return %c0_i32, %c0_i32_0 : i32, i32
  }
  func.func @transform_4(%arg0: i32) -> (i32, i32) {
    %c0_i32 = arith.constant 0 : i32
    %c0_i32_0 = arith.constant 0 : i32
    %c0_i32_1 = arith.constant 0 : i32
    return %c0_i32, %c0_i32_0 : i32, i32
  }
  func.func @transform_5(%arg0: i32) -> (i32, i32) {
    %c0_i32 = arith.constant 0 : i32
    %c0_i32_0 = arith.constant 0 : i32
    %c0_i32_1 = arith.constant 0 : i32
    return %c0_i32, %c0_i32_0 : i32, i32
  }
  func.func @transform_6(%arg0: i32) -> (i32, i32) {
    %c0_i32 = arith.constant 0 : i32
    %c0_i32_0 = arith.constant 0 : i32
    %c0_i32_1 = arith.constant 0 : i32
    return %c0_i32, %c0_i32_0 : i32, i32
  }
  func.func @transform_7(%arg0: i32) -> (i32, i32, i32, i32) {
    %c0_i32 = arith.constant 0 : i32
    %c0_i32_0 = arith.constant 0 : i32
    %c0_i32_1 = arith.constant 0 : i32
    %c0_i32_2 = arith.constant 0 : i32
    return %arg0, %c0_i32, %c0_i32_0, %c0_i32_1 : i32, i32, i32, i32
  }
}

</mosaic_0001>

<bundles_post_ra>
// kernel: tpu_custom_call.1
= control target key start
LH: loop header
LB: loop body
LE: loop exit
PB: predicated region body
PF: predicated region fallthrough
CT: control target
= control target key end

     0   :  { %s3110_s24 = smov 0   ;;  %s5058_s0 = inlined_call_operand.vmem [shape: f32[2,16,16,4], index: 0, kind: input, shape index: {}]   ;;  %s5059_s1 = inlined_call_operand.vmem [shape: f32[4,24], index: 1, kind: input, shape index: {}]   ;;  %s5060_s2 = inlined_call_operand.vmem [shape: f32[1,24], index: 2, kind: input, shape index: {}]   ;;  %s5061_s3 = inlined_call_operand.vmem [shape: f32[9,24], index: 3, kind: input, shape index: {}]   ;;  %s5062_s4 = inlined_call_operand.vmem [shape: f32[1,24], index: 4, kind: input, shape index: {}]   ;;  %s5063_s5 = inlined_call_operand.vmem [shape: f32[24,4], index: 5, kind: input, shape index: {}]   ;;  %s5064_s6 = inlined_call_operand.vmem [shape: f32[1,4], index: 6, kind: input, shape index: {}]   ;;  %s5065_s7 = inlined_call_operand.vmem [shape: f32[2,16,16,4], index: 7, kind: output, shape index: {}]  }
   0x1 LB: > { %s2819_s25 = sadd.s32 4294967295, %s3063_s24   ;;  %p2823_p0 = scmp.ge.s32.totalorder %s3063_s24, 1  ;;  %s3063_s24 = sphi %s3110_s24, %s17_s24  }
   0x2   : > { %p237_p1 = scmp.lt.s32.totalorder %s3063_s24, 3 }
   0x4   : > { %p238_p2 = pnand %p2823_p0, %p237_p1 }
   0x6   : > { %241 = sbr.rel (%p238_p2) target bundleno = 751 (0x2ef), region = 48 }
   0xd   : > { %p269_p3 = scmp.lt.s32.totalorder %s2819_s25, 1  ;;  %v3065_v0 = vmov 0   ;;  %v5070_v33 = vmov 1   ;;  %v5066_v34 = vmov 2   ;;  %vm1234_vm0 = vcmask 195584  }
   0xe   : > { %2991 = vset.pattern.permute.xlu1 %v3065_v0  ;;  %2990 = vset.pattern.permute.xlu0 %v3065_v0  ;;  %vm1237_vm1 = vcmask 189440   ;;  %v3068_v35 = vmov 0.0   ;;  %v5068_v36 = vmov 3   ;;  %v3379_v45 = vld [vmem:[%s5059_s1] ss:$0 sm:$0xff]  ;;  %vm2731_vm2 = vcmask 31744  }
   0xf   : > { %s5157_s25 = smov (!%p269_p3, %s2819_s25), 1  ;;  %1261 = vst.msk [vmem:[#allocation2 + $0xc8] sm:$0xff] %vm1234_vm0, %v3068_v35  ;;  %1235 = vst.msk [vmem:[#allocation2] sm:$0xff] %vm1234_vm0, %v3068_v35 }
  0x10   : > { %s2878_s26 = sshll.u32 %s5157_s25, 8  ;;  %1236 = vst.msk [vmem:[#allocation2 + $0x8] sm:$0xff] %vm1234_vm0, %v3068_v35  ;;  %1239 = vst.msk [vmem:[#allocation2 + $0x18] sm:$0xff] %vm1234_vm0, %v3068_v35 }
  0x11   : > { %s3126_s29 = scalar_lea.vmem %s5058_s0, %s2878_s26  ;;  %1240 = vst.msk [vmem:[#allocation2 + $0x20] sm:$0xff] %vm1234_vm0, %v3068_v35  ;;  %1242 = vst.msk [vmem:[#allocation2 + $0x30] sm:$0xff] %vm1234_vm0, %v3068_v35  ;;  %s4928_s30 = scalar_lea.vmem %s5065_s7, %s2878_s26 }
  0x12   : > { %v3129_v1 = vld [vmem:[%s3126_s29 + $0x10] sm:$0xff]  ;;  %v3132_v2 = vld [vmem:[%s3126_s29] sm:$0xff]  ;;  %v3137_v3 = vld [vmem:[%s3126_s29 + $0x18] sm:$0xff]  ;;  %1243 = vst.msk [vmem:[#allocation2 + $0x38] sm:$0xff] %vm1234_vm0, %v3068_v35 }
  0x13   : > { %324 = vperm.xlu1 %2991, %v3129_v1   ;;  %314 = vperm.xlu0 %2990, %v3132_v2   ;;  %v3140_v4 = vld [vmem:[%s3126_s29 + $0x8] sm:$0xff]  ;;  %v3148_v6 = vld [vmem:[%s3126_s29 + $0x20] sm:$0xff]  ;;  %v3153_v7 = vld [vmem:[%s3126_s29 + $0x38] sm:$0xff]  ;;  %1245 = vst.msk [vmem:[#allocation2 + $0x48] sm:$0xff] %vm1234_vm0, %v3068_v35 }
  0x14   : > { %v3145_v5 = vld [vmem:[%s3126_s29 + $0x28] sm:$0xff]  ;;  %v3156_v8 = vld [vmem:[%s3126_s29 + $0x30] sm:$0xff]  ;;  %v3164_v10 = vld [vmem:[%s3126_s29 + $0x40] sm:$0xff]  ;;  %1246 = vst.msk [vmem:[#allocation2 + $0x50] sm:$0xff] %vm1234_vm0, %v3068_v35 }
  0x15   : > { %v3161_v9 = vld [vmem:[%s3126_s29 + $0x48] sm:$0xff]  ;;  %v3169_v11 = vld [vmem:[%s3126_s29 + $0x58] sm:$0xff]  ;;  %v3172_v12 = vld [vmem:[%s3126_s29 + $0x50] sm:$0xff]  ;;  %1248 = vst.msk [vmem:[#allocation2 + $0x60] sm:$0xff] %vm1234_vm0, %v3068_v35 }
  0x16   : > { %v3177_v13 = vld [vmem:[%s3126_s29 + $0x68] sm:$0xff]  ;;  %v3180_v14 = vld [vmem:[%s3126_s29 + $0x60] sm:$0xff]  ;;  %v3185_v15 = vld [vmem:[%s3126_s29 + $0x78] sm:$0xff]  ;;  %1249 = vst.msk [vmem:[#allocation2 + $0x68] sm:$0xff] %vm1234_vm0, %v3068_v35 }
  0x17   : > { %329 = vperm.xlu1 %2991, %v3137_v3   ;;  %319 = vperm.xlu0 %2990, %v3140_v4   ;;  %v3188_v16 = vld [vmem:[%s3126_s29 + $0x70] sm:$0xff]  ;;  %v3193_v17 = vld [vmem:[%s3126_s29 + $0x88] sm:$0xff]  ;;  %v3196_v18 = vld [vmem:[%s3126_s29 + $0x80] sm:$0xff]  ;;  %1251 = vst.msk [vmem:[#allocation2 + $0x78] sm:$0xff] %vm1234_vm0, %v3068_v35 }
  0x18   : > { %v3201_v19 = vld [vmem:[%s3126_s29 + $0x98] sm:$0xff]  ;;  %v3204_v20 = vld [vmem:[%s3126_s29 + $0x90] sm:$0xff]  ;;  %v3209_v21 = vld [vmem:[%s3126_s29 + $0xa8] sm:$0xff]  ;;  %1252 = vst.msk [vmem:[#allocation2 + $0x80] sm:$0xff] %vm1234_vm0, %v3068_v35 }
  0x19   : > { %v3212_v22 = vld [vmem:[%s3126_s29 + $0xa0] sm:$0xff]  ;;  %v3217_v23 = vld [vmem:[%s3126_s29 + $0xb8] sm:$0xff]  ;;  %v3220_v24 = vld [vmem:[%s3126_s29 + $0xb0] sm:$0xff]  ;;  %1254 = vst.msk [vmem:[#allocation2 + $0x90] sm:$0xff] %vm1234_vm0, %v3068_v35 }
  0x1a   : > { %v3225_v25 = vld [vmem:[%s3126_s29 + $0xc8] sm:$0xff]  ;;  %v3228_v26 = vld [vmem:[%s3126_s29 + $0xc0] sm:$0xff]  ;;  %v3233_v27 = vld [vmem:[%s3126_s29 + $0xd8] sm:$0xff]  ;;  %1255 = vst.msk [vmem:[#allocation2 + $0x98] sm:$0xff] %vm1234_vm0, %v3068_v35 }
  0x1b   : > { %339 = vperm.xlu1 %2991, %v3145_v5   ;;  %334 = vperm.xlu0 %2990, %v3148_v6   ;;  %v3236_v28 = vld [vmem:[%s3126_s29 + $0xd0] sm:$0xff]  ;;  %v3241_v29 = vld [vmem:[%s3126_s29 + $0xe8] sm:$0xff]  ;;  %v3244_v30 = vld [vmem:[%s3126_s29 + $0xe0] sm:$0xff]  ;;  %1257 = vst.msk [vmem:[#allocation2 + $0xa8] sm:$0xff] %vm1234_vm0, %v3068_v35 }
  0x1c   : > { %v3249_v31 = vld [vmem:[%s3126_s29 + $0xf8] sm:$0xff]  ;;  %v3252_v32 = vld [vmem:[%s3126_s29 + $0xf0] sm:$0xff]  ;;  %1258 = vst.msk [vmem:[#allocation2 + $0xb0] sm:$0xff] %vm1234_vm0, %v3068_v35  ;;  %1260 = vst.msk [vmem:[#allocation2 + $0xc0] sm:$0xff] %vm1234_vm0, %v3068_v35 }
  0x1d   : > { %1263 = vst.msk [vmem:[#allocation2 + $0xd8] sm:$0xff] %vm1234_vm0, %v3068_v35  ;;  %1264 = vst.msk [vmem:[#allocation2 + $0xe0] sm:$0xff] %vm1234_vm0, %v3068_v35 }
  0x1e   : > { %1266 = vst.msk [vmem:[#allocation2 + $0xf0] sm:$0xff] %vm1234_vm0, %v3068_v35  ;;  %1267 = vst.msk [vmem:[#allocation2 + $0xf8] sm:$0xff] %vm1234_vm0, %v3068_v35 }
  0x1f   : > { %349 = vperm.xlu1 %2991, %v3153_v7   ;;  %344 = vperm.xlu0 %2990, %v3156_v8   ;;  %1269 = vst.msk [vmem:[#allocation2 + $0x108] sm:$0xff] %vm1234_vm0, %v3068_v35  ;;  %1270 = vst.msk [vmem:[#allocation2 + $0x110] sm:$0xff] %vm1234_vm0, %v3068_v35 }
  0x20   : > { %1272 = vst.msk [vmem:[#allocation2 + $0x120] sm:$0xff] %vm1234_vm0, %v3068_v35  ;;  %1273 = vst.msk [vmem:[#allocation2 + $0x128] sm:$0xff] %vm1234_vm0, %v3068_v35 }
  0x21   : > { %1275 = vst.msk [vmem:[#allocation2 + $0x138] sm:$0xff] %vm1234_vm0, %v3068_v35  ;;  %1276 = vst.msk [vmem:[#allocation2 + $0x140] sm:$0xff] %vm1234_vm0, %v3068_v35 }
  0x22   : > { %1278 = vst.msk [vmem:[#allocation2 + $0x150] sm:$0xff] %vm1234_vm0, %v3068_v35  ;;  %1279 = vst.msk [vmem:[#allocation2 + $0x158] sm:$0xff] %vm1234_vm0, %v3068_v35 }
  0x23   : > { %359 = vperm.xlu1 %2991, %v3161_v9   ;;  %354 = vperm.xlu0 %2990, %v3164_v10   ;;  %1281 = vst.msk [vmem:[#allocation2 + $0x168] sm:$0xff] %vm1234_vm0, %v3068_v35  ;;  %1282 = vst.msk [vmem:[#allocation2 + $0x170] sm:$0xff] %vm1234_vm0, %v3068_v35 }
  0x24   : > { %1284 = vst.msk [vmem:[#allocation2 + $0x180] sm:$0xff] %vm1234_vm0, %v3068_v35  ;;  %1285 = vst.msk [vmem:[#allocation2 + $0x188] sm:$0xff] %vm1234_vm0, %v3068_v35 }
  0x25   : > { %1287 = vst.msk [vmem:[#allocation2 + $0x198] sm:$0xff] %vm1234_vm0, %v3068_v35  ;;  %1288 = vst.msk [vmem:[#allocation2 + $0x1a0] sm:$0xff] %vm1234_vm0, %v3068_v35 }
  0x26   : > { %1262 = vst.msk [vmem:[#allocation2 + $0xd0] sm:$0x3] %vm1237_vm1, %v3068_v35  ;;  %1238 = vst.msk [vmem:[#allocation2 + $0x10] sm:$0x3] %vm1237_vm1, %v3068_v35 }
  0x27   : > { %369 = vperm.xlu1 %2991, %v3169_v11   ;;  %364 = vperm.xlu0 %2990, %v3172_v12   ;;  %1241 = vst.msk [vmem:[#allocation2 + $0x28] sm:$0x3] %vm1237_vm1, %v3068_v35  ;;  %1244 = vst.msk [vmem:[#allocation2 + $0x40] sm:$0x3] %vm1237_vm1, %v3068_v35 }
  0x28   : > { %1247 = vst.msk [vmem:[#allocation2 + $0x58] sm:$0x3] %vm1237_vm1, %v3068_v35  ;;  %1250 = vst.msk [vmem:[#allocation2 + $0x70] sm:$0x3] %vm1237_vm1, %v3068_v35 }
  0x29   : > { %1253 = vst.msk [vmem:[#allocation2 + $0x88] sm:$0x3] %vm1237_vm1, %v3068_v35  ;;  %1256 = vst.msk [vmem:[#allocation2 + $0xa0] sm:$0x3] %vm1237_vm1, %v3068_v35 }
  0x2a   : > { %1259 = vst.msk [vmem:[#allocation2 + $0xb8] sm:$0x3] %vm1237_vm1, %v3068_v35  ;;  %1265 = vst.msk [vmem:[#allocation2 + $0xe8] sm:$0x3] %vm1237_vm1, %v3068_v35 }
  0x2b   : > { %379 = vperm.xlu1 %2991, %v3177_v13   ;;  %374 = vperm.xlu0 %2990, %v3180_v14   ;;  %1268 = vst.msk [vmem:[#allocation2 + $0x100] sm:$0x3] %vm1237_vm1, %v3068_v35  ;;  %1271 = vst.msk [vmem:[#allocation2 + $0x118] sm:$0x3] %vm1237_vm1, %v3068_v35 }
  0x2c   : > { %1274 = vst.msk [vmem:[#allocation2 + $0x130] sm:$0x3] %vm1237_vm1, %v3068_v35  ;;  %1277 = vst.msk [vmem:[#allocation2 + $0x148] sm:$0x3] %vm1237_vm1, %v3068_v35 }
  0x2d   : > { %1280 = vst.msk [vmem:[#allocation2 + $0x160] sm:$0x3] %vm1237_vm1, %v3068_v35  ;;  %1283 = vst.msk [vmem:[#allocation2 + $0x178] sm:$0x3] %vm1237_vm1, %v3068_v35 }
  0x2e   : > { %1286 = vst.msk [vmem:[#allocation2 + $0x190] sm:$0x3] %vm1237_vm1, %v3068_v35  ;;  %1289 = vst.msk [vmem:[#allocation2 + $0x1a8] sm:$0x3] %vm1237_vm1, %v3068_v35 }
  0x2f   : > { %389 = vperm.xlu1 %2991, %v3185_v15   ;;  %384 = vperm.xlu0 %2990, %v3188_v16  }
  0x33   : > { %399 = vperm.xlu1 %2991, %v3193_v17   ;;  %394 = vperm.xlu0 %2990, %v3196_v18  }
  0x37   : > { %409 = vperm.xlu1 %2991, %v3201_v19   ;;  %404 = vperm.xlu0 %2990, %v3204_v20  }
  0x3b   : > { %419 = vperm.xlu1 %2991, %v3209_v21   ;;  %414 = vperm.xlu0 %2990, %v3212_v22  }
  0x3f   : > { %429 = vperm.xlu1 %2991, %v3217_v23   ;;  %424 = vperm.xlu0 %2990, %v3220_v24  }
  0x43   : > { %439 = vperm.xlu1 %2991, %v3225_v25   ;;  %434 = vperm.xlu0 %2990, %v3228_v26  }
  0x47   : > { %449 = vperm.xlu1 %2991, %v3233_v27   ;;  %444 = vperm.xlu0 %2990, %v3236_v28  }
  0x4b   : > { %459 = vperm.xlu1 %2991, %v3241_v29   ;;  %454 = vperm.xlu0 %2990, %v3244_v30  }
  0x4f   : > { %469 = vperm.xlu1 %2991, %v3249_v31   ;;  %464 = vperm.xlu0 %2990, %v3252_v32  }
  0x53   : > { %2992 = vset.pattern.permute.xlu1 %v5070_v33  ;;  %2993 = vset.pattern.permute.xlu0 %v5066_v34 }
  0x54   : > { %546 = vperm.xlu1 %2992, %v3140_v4   ;;  %795 = vperm.xlu0 %2993, %v3188_v16  }
  0x58   : > { %550 = vperm.xlu1 %2992, %v3129_v1   ;;  %739 = vperm.xlu0 %2993, %v3132_v2  }
  0x5c   : > { %558 = vperm.xlu1 %2992, %v3148_v6   ;;  %807 = vperm.xlu0 %2993, %v3193_v17  }
  0x60   : > { %566 = vperm.xlu1 %2992, %v3156_v8   ;;  %747 = vperm.xlu0 %2993, %v3129_v1  }
  0x64   : > { %602 = vperm.xlu1 %2992, %v3185_v15   ;;  %815 = vperm.xlu0 %2993, %v3201_v19  }
  0x68   : > { %2994 = vset.pattern.permute.xlu1 %v5066_v34  ;;  %755 = vperm.xlu0 %2993, %v3148_v6  }
  0x69   : > { %799 = vperm.xlu1 %2994, %v3185_v15  }
  0x6c   : > { %823 = vperm.xlu0 %2993, %v3209_v21  }
  0x6d   : > { %2995 = vset.pattern.permute.xlu1 %v5070_v33 }
  0x6e   : > { %606 = vperm.xlu1 %2995, %v3196_v18  }
  0x70   : > { %763 = vperm.xlu0 %2993, %v3156_v8  }
  0x72   : > { %610 = vperm.xlu1 %2995, %v3193_v17  }
  0x74   : > { %831 = vperm.xlu0 %2993, %v3217_v23  }
  0x76   : > { %2996 = vset.pattern.permute.xlu1 %v5068_v36 }
  0x77   : > { %996 = vperm.xlu1 %2996, %v3185_v15  }
  0x78   : > { %835 = vperm.xlu0 %2993, %v3228_v26  }
  0x7b   : > { %2997 = vset.pattern.permute.xlu1 %v5066_v34 }
  0x7c   : > { %803 = vperm.xlu1 %2997, %v3196_v18   ;;  %779 = vperm.xlu0 %2993, %v3172_v12  }
  0x80   : > { %743 = vperm.xlu1 %2997, %v3140_v4   ;;  %847 = vperm.xlu0 %2993, %v3233_v27  }
  0x84   : > { %2998 = vset.pattern.permute.xlu1 %v5070_v33  ;;  %851 = vperm.xlu0 %2993, %v3244_v30  }
  0x85   : > { %614 = vperm.xlu1 %2998, %v3204_v20  }
  0x88   : > { %3028 = vset.pattern.permute.xlu0 %v5070_v33 }
  0x89   : > { %2999 = vset.pattern.permute.xlu1 %v5068_v36  ;;  %542 = vperm.xlu0 %3028, %v3132_v2  }
  0x8a   : > { %1000 = vperm.xlu1 %2999, %v3196_v18  }
  0x8d   : > { %554 = vperm.xlu0 %3028, %v3137_v3  }
  0x8e   : > { %3000 = vset.pattern.permute.xlu1 %v5070_v33 }
  0x8f   : > { %618 = vperm.xlu1 %3000, %v3201_v19  }
  0x91   : > { %562 = vperm.xlu0 %3028, %v3145_v5  }
  0x92   : > { %v3350_v37 = vpop.permute.xlu1 %324  ;;  %v3352_v38 = vpop.permute.xlu0 %314 }
  0x93   : > { %3001 = vset.pattern.permute.xlu1 %v5068_v36 }
  0x94   : > { %1004 = vperm.xlu1 %3001, %v3193_v17  }
  0x95   : > { %598 = vperm.xlu0 %3028, %v3188_v16  }
  0x96   : > { %v3357_v39 = vpop.permute.xlu1 %329  ;;  %v3359_v40 = vpop.permute.xlu0 %319 }
  0x98   : > { %3002 = vset.pattern.permute.xlu1 %v5066_v34 }
  0x99   : > { %811 = vperm.xlu1 %3002, %v3204_v20   ;;  %634 = vperm.xlu0 %3028, %v3217_v23  }
  0x9a   : > { %v3364_v41 = vpop.permute.xlu1 %339  ;;  %v3366_v42 = vpop.permute.xlu0 %334 }
  0x9d   : > { %751 = vperm.xlu1 %3002, %v3137_v3   ;;  %638 = vperm.xlu0 %3028, %v3228_v26  }
  0x9e   : > { %v3370_v43 = vpop.permute.xlu1 %349  ;;  %v3372_v44 = vpop.permute.xlu0 %344 }
  0xa1   : > { %3003 = vset.pattern.permute.xlu1 %v5070_v33  ;;  %578 = vperm.xlu0 %3028, %v3161_v9  }
  0xa2   : > { %v3381_v46 = vpop.permute.xlu1 %359  ;;  %622 = vperm.xlu1 %3003, %v3212_v22   ;;  %v355_v47 = vpop.permute.xlu0 %354 }
  0xa3   : > { %v3385_v48 = vmul.f32 %v3379_v45, %v355_v47 }
  0xa5   : > { %5073 = vst [vmem:[#allocation3_spill] sm:$0xff] %v3385_v48  ;;  %582 = vperm.xlu0 %3028, %v3172_v12  }
  0xa6   : > { %v3388_v49 = vpop.permute.xlu1 %369  ;;  %3004 = vset.pattern.permute.xlu1 %v5068_v36  ;;  %v365_v50 = vpop.permute.xlu0 %364 }
  0xa7   : > { %1008 = vperm.xlu1 %3004, %v3204_v20   ;;  %v3393_v51 = vmul.f32 %v3379_v45, %v365_v50 }
  0xa9   : > { %654 = vperm.xlu0 %3028, %v3244_v30  }
  0xaa   : > { %v3396_v52 = vpop.permute.xlu1 %379  ;;  %v375_v53 = vpop.permute.xlu0 %374 }
  0xab   : > { %3005 = vset.pattern.permute.xlu1 %v5070_v33  ;;  %v3400_v54 = vmul.f32 %v3379_v45, %v375_v53 }
  0xac   : > { %626 = vperm.xlu1 %3005, %v3209_v21  }
  0xad   : > { %5074 = vst [vmem:[#allocation4_spill] sm:$0xff] %v3400_v54  ;;  %594 = vperm.xlu0 %3028, %v3177_v13  }
  0xae   : > { %v3404_v55 = vpop.permute.xlu1 %389  ;;  %v385_v56 = vpop.permute.xlu0 %384 }
  0xaf   : > { %v3407_v57 = vmul.f32 %v3379_v45, %v385_v56 }
  0xb0   : > { %3006 = vset.pattern.permute.xlu1 %v5068_v36 }
  0xb1   : > { %1012 = vperm.xlu1 %3006, %v3201_v19   ;;  %662 = vperm.xlu0 %3028, %v3252_v32  }
  0xb2   : > { %v3412_v58 = vpop.permute.xlu1 %399  ;;  %v3414_v59 = vpop.permute.xlu0 %394 }
  0xb5   : > { %3007 = vset.pattern.permute.xlu1 %v5066_v34  ;;  %666 = vperm.xlu0 %3028, %v3249_v31  }
  0xb6   : > { %v3418_v60 = vpop.permute.xlu1 %409  ;;  %819 = vperm.xlu1 %3007, %v3212_v22   ;;  %v3421_v61 = vpop.permute.xlu0 %404 }
  0xb9   : > { %3030 = vset.pattern.permute.xlu0 %v5068_v36 }
  0xba   : > { %v3424_v62 = vpop.permute.xlu1 %419  ;;  %759 = vperm.xlu1 %3007, %v3145_v5   ;;  %992 = vperm.xlu0 %3030, %v3188_v16   ;;  %v415_v63 = vpop.permute.xlu0 %414 }
  0xbb   : > { %v3429_v0 = vmul.f32 %v3379_v45, %v415_v63 }
  0xbd   : > { %5075 = vst [vmem:[#allocation5_spill] sm:$0xff] %v3429_v0 }
  0xbe   : > { %v3431_v13 = vpop.permute.xlu1 %429  ;;  %3008 = vset.pattern.permute.xlu1 %v5070_v33  ;;  %936 = vperm.xlu0 %3030, %v3132_v2   ;;  %v425_v15 = vpop.permute.xlu0 %424 }
  0xbf   : > { %630 = vperm.xlu1 %3008, %v3220_v24   ;;  %v3437_v17 = vmul.f32 %v3379_v45, %v425_v15  ;;  %v1334_v15 = vld [vmem:[%s5063_s5 + $0x8] sm:$0xff] }
  0xc1   : > { %5076 = vst [vmem:[#allocation6_spill] sm:$0xff] %v3437_v17 }
  0xc2   : > { %v3439_v18 = vpop.permute.xlu1 %439  ;;  %940 = vperm.xlu0 %3030, %v3140_v4   ;;  %v435_v16 = vpop.permute.xlu0 %434 }
  0xc3   : > { %3009 = vset.pattern.permute.xlu1 %v5068_v36  ;;  %v3444_v19 = vmul.f32 %v3379_v45, %v435_v16  ;;  %v3499_v16 = vld [vmem:[%s5059_s1 + $0x2] ss:$0 sm:$0xff] }
  0xc4   : > { %1016 = vperm.xlu1 %3009, %v3212_v22  }
  0xc6   : > { %v3447_v20 = vpop.permute.xlu1 %449  ;;  %944 = vperm.xlu0 %3030, %v3129_v1   ;;  %v445_v2 = vpop.permute.xlu0 %444 }
  0xc7   : > { %v3451_v30 = vmul.f32 %v3379_v45, %v445_v2 }
  0xc8   : > { %3010 = vset.pattern.permute.xlu1 %v5070_v33 }
  0xc9   : > { %5077 = vst [vmem:[#allocation7_spill] sm:$0xff] %v3451_v30  ;;  %570 = vperm.xlu1 %3010, %v3153_v7  }
  0xca   : > { %v3455_v4 = vpop.permute.xlu1 %459  ;;  %948 = vperm.xlu0 %3030, %v3137_v3   ;;  %v455_v31 = vpop.permute.xlu0 %454 }
  0xcb   : > { %5078 = vst [vmem:[#allocation8_spill] sm:$0xff] %v3455_v4  ;;  %v3459_v35 = vmul.f32 %v3379_v45, %v455_v31 }
  0xcd   : > { %3011 = vset.pattern.permute.xlu1 %v5068_v36 }
  0xce   : > { %v3462_v22 = vpop.permute.xlu1 %469  ;;  %956 = vperm.xlu1 %3011, %v3145_v5   ;;  %952 = vperm.xlu0 %3030, %v3148_v6   ;;  %v465_v1 = vpop.permute.xlu0 %464 }
  0xcf   : > { %v3467_v47 = vmul.f32 %v3379_v45, %v465_v1 }
  0xd2   : > { %1020 = vperm.xlu1 %3011, %v3209_v21   ;;  %964 = vperm.xlu0 %3030, %v3153_v7   ;;  %v3484_v21 = vld [vmem:[%s5059_s1 + $0x1] ss:$0 sm:$0xff] }
  0xd3   : > { %v3471_v3 = vpop.permute.xlu1 %546  ;;  %v3473_v50 = vpop.permute.xlu0 %795 }
  0xd6   : > { %3012 = vset.pattern.permute.xlu1 %v5066_v34  ;;  %1032 = vperm.xlu0 %3030, %v3228_v26   ;;  %v1333_v26 = vld [vmem:[%s5063_s5] sm:$0xff] }
  0xd7   : > { %827 = vperm.xlu1 %3012, %v3220_v24   ;;  %v551_v5 = vpop.permute.xlu1 %550  ;;  %v3478_v6 = vpop.permute.xlu0 %739  ;;  %v2969_v2 = vpack.c.bf16 %v1334_v15, %v1333_v26 }
  0xd8   : > { %v675_v63 = vmul.f32 %v3484_v21, %v551_v5 }
  0xd9   : > { %2973 = vmatprep.subr.bf16.mxu1 %v2969_v2  ;;  %2970 = vmatprep.subr.bf16.mxu0 %v2969_v2 }
  0xda   : > { %972 = vperm.xlu0 %3030, %v3161_v9   ;;  %2975 = vmatpush3.bf16.msra.mxu1 %v2969_v2 }
  0xdb   : > { %767 = vperm.xlu1 %3012, %v3153_v7   ;;  %v559_v53 = vpop.permute.xlu1 %558  ;;  %v3487_v56 = vpop.permute.xlu0 %807  ;;  %v478_v7 = vmul.f32 %v3379_v45, %v3350_v37  ;;  %v1335_v37 = vld [vmem:[%s5063_s5 + $0x10] sm:$0xff]  ;;  %2972 = vmatpush3.bf16.msra.mxu0 %v2969_v2 }
  0xdc   : > { %2974 = vmatprep.subr.mxu1 %v1335_v37  ;;  %2919 = vmatprep.subr.mxu0 %v1335_v37 }
  0xdd   : > { %v707_v5 = vadd.f32 %v675_v63, %v478_v7  ;;  %v480_v63 = vmul.f32 %v3379_v45, %v3366_v42  ;;  %v677_v7 = vmul.f32 %v3484_v21, %v559_v53  ;;  %v482_v53 = vmul.f32 %v3379_v45, %v3372_v44 }
  0xde   : > { %980 = vperm.xlu0 %3030, %v3169_v11   ;;  %2976 = vmatpush3.msra.mxu1 %v1335_v37  ;;  %v491_v44 = vmul.f32 %v3379_v45, %v3404_v55 }
  0xdf   : > { %3013 = vset.pattern.permute.xlu1 %v5070_v33  ;;  %v567_v31 = vpop.permute.xlu1 %566  ;;  %v748_v1 = vpop.permute.xlu0 %747  ;;  %2920 = vmatpush3.msra.mxu0 %v1335_v37  ;;  %v709_v2 = vadd.f32 %v677_v7, %v480_v63 }
  0xe0   : > { %v872_v34 = vmul.f32 %v3499_v16, %v748_v1  ;;  %574 = vperm.xlu1 %3013, %v3164_v10   ;;  %v5080_v1 = vmov 3   ;;  %v679_v30 = vmul.f32 %v3484_v21, %v567_v31 }
  0xe2   : > { %v3507_v36 = vadd.f32 %v872_v34, %v707_v5  ;;  %1052 = vperm.xlu0 %3030, %v3241_v29   ;;  %v711_v63 = vadd.f32 %v679_v30, %v482_v53  ;;  %v3546_v30 = vld [vmem:[%s5059_s1 + $0x3] ss:$0 sm:$0xff] }
  0xe3   : > { %v603_v26 = vpop.permute.xlu1 %602  ;;  %v3513_v15 = vpop.permute.xlu0 %815 }
  0xe4   : > { %5079 = vst [vmem:[#allocation9_spill] sm:$0xff] %v3507_v36  ;;  %3014 = vset.pattern.permute.xlu1 %v5080_v1 }
  0xe5   : > { %960 = vperm.xlu1 %3014, %v3156_v8   ;;  %v5082_v8 = vmov 1  }
  0xe6   : > { %1056 = vperm.xlu0 %3030, %v3252_v32  }
  0xe7   : > { %v756_v34 = vpop.permute.xlu0 %755 }
  0xe8   : > { %v874_v5 = vmul.f32 %v3499_v16, %v756_v34  ;;  %v800_v33 = vpop.permute.xlu1 %799 }
  0xe9   : > { %1024 = vperm.xlu1 %3014, %v3220_v24   ;;  %v688_v24 = vmul.f32 %v3484_v21, %v603_v26  ;;  %v885_v31 = vmul.f32 %v3499_v16, %v800_v33 }
  0xea   : > { %v3523_v54 = vadd.f32 %v874_v5, %v709_v2 }
  0xeb   : > { %v3525_v42 = vpop.permute.xlu0 %823  ;;  %v720_v26 = vadd.f32 %v688_v24, %v491_v44 }
  0xec   : > { %5081 = vst [vmem:[#allocation10_spill] sm:$0xff] %v3523_v54 }
  0xed   : > { %3015 = vset.pattern.permute.xlu1 %v5082_v8  ;;  %v607_v32 = vpop.permute.xlu1 %606 }
  0xee   : > { %642 = vperm.xlu1 %3015, %v3225_v25  }
  0xef   : > { %v764_v37 = vpop.permute.xlu0 %763 }
  0xf0   : > { %v876_v7 = vmul.f32 %v3499_v16, %v764_v37  ;;  %v917_v37 = vadd.f32 %v885_v31, %v720_v26 }
  0xf1   : > { %v611_v34 = vpop.permute.xlu1 %610 }
  0xf2   : > { %v3534_v2 = vadd.f32 %v876_v7, %v711_v63  ;;  %3016 = vset.pattern.permute.xlu1 %v5080_v1  ;;  %v5084_v7 = vmov 2  }
  0xf3   : > { %1028 = vperm.xlu1 %3016, %v3217_v23   ;;  %v3541_v5 = vpop.permute.xlu0 %831  ;;  %v3555_v23 = vld [vmem:[%s5060_s2] ss:$0 sm:$0xff] }
  0xf4   : > { %5083 = vst [vmem:[#allocation11_spill] sm:$0xff] %v3534_v2 }
  0xf6   : > { %v997_v53 = vpop.permute.xlu1 %996 }
  0xf7   : > { %v1082_v63 = vmul.f32 %v3546_v30, %v997_v53  ;;  %3017 = vset.pattern.permute.xlu1 %v5084_v7  ;;  %v3550_v48 = vpop.permute.xlu0 %835 }
  0xf8   : > { %771 = vperm.xlu1 %3017, %v3164_v10  }
  0xf9   : > { %v1114_v33 = vadd.f32 %v1082_v63, %v917_v37  ;;  %v492_v37 = vmul.f32 %v3379_v45, %v3414_v59  ;;  %v689_v63 = vmul.f32 %v3484_v21, %v607_v32 }
  0xfb   : > { %v1153_v55 = vadd.f32 %v3555_v23, %v1114_v33  ;;  %v804_v2 = vpop.permute.xlu1 %803  ;;  %v3559_v24 = vpop.permute.xlu0 %779 }
  0xfc   : > { %775 = vperm.xlu1 %3017, %v3161_v9   ;;  %v886_v33 = vmul.f32 %v3499_v16, %v804_v2  ;;  %v690_v2 = vmul.f32 %v3484_v21, %v611_v34 }
  0xfd   : > { %v1185_v44 = vmax.f32 %v1153_v55, 0.0  ;;  %v476_v55 = vmul.f32 %v3379_v45, %v3352_v38 }
  0xff   : > { %v1217_v31 = vmin.f32 %v1185_v44, 6.0  ;;  %v3562_v26 = vpop.permute.xlu1 %743  ;;  %v3564_v53 = vpop.permute.xlu0 %847  ;;  %v721_v44 = vadd.f32 %v689_v63, %v492_v37 }
 0x100   : > { %5085 = vst [vmem:[#allocation12_spill] sm:$0xff] %v3564_v53  ;;  %839 = vperm.xlu1 %3017, %v3225_v25  }
 0x101   : > { %1306 = vst.msk [vmem:[#allocation2 + $0xc9] sm:$0xff] %vm1234_vm0, %v1217_v31  ;;  %v870_v31 = vmul.f32 %v3499_v16, %v3478_v6  ;;  %v918_v32 = vadd.f32 %v886_v33, %v721_v44  ;;  %v493_v6 = vmul.f32 %v3379_v45, %v3412_v58  ;;  %v884_v44 = vmul.f32 %v3499_v16, %v3473_v50 }
 0x103   : > { %v3568_v54 = vpop.permute.xlu0 %851 }
 0x104   : > { %3018 = vset.pattern.permute.xlu1 %v5082_v8  ;;  %v615_v9 = vpop.permute.xlu1 %614 }
 0x105   : > { %646 = vperm.xlu1 %3018, %v3236_v28  }
 0x108   : > { %v543_v36 = vpop.permute.xlu0 %542 }
 0x109   : > { %v673_v17 = vmul.f32 %v3484_v21, %v543_v36  ;;  %3019 = vset.pattern.permute.xlu1 %v5080_v1  ;;  %v1001_v59 = vpop.permute.xlu1 %1000 }
 0x10a   : > { %v1083_v0 = vmul.f32 %v3546_v30, %v1001_v59  ;;  %968 = vperm.xlu1 %3019, %v3164_v10   ;;  %v887_v10 = vmul.f32 %v3499_v16, %v3487_v56 }
 0x10b   : > { %v705_v53 = vadd.f32 %v673_v17, %v476_v55  ;;  %v722_v17 = vadd.f32 %v690_v2, %v493_v6 }
 0x10c   : > { %v1115_v4 = vadd.f32 %v1083_v0, %v918_v32  ;;  %v3585_v38 = vpop.permute.xlu0 %554 }
 0x10d   : > { %v3587_v37 = vadd.f32 %v870_v31, %v705_v53  ;;  %v919_v58 = vadd.f32 %v887_v10, %v722_v17  ;;  %v893_v10 = vmul.f32 %v3499_v16, %v3541_v5 }
 0x10e   : > { %v1154_v36 = vadd.f32 %v3555_v23, %v1115_v4  ;;  %3020 = vset.pattern.permute.xlu1 %v5082_v8  ;;  %v619_v63 = vpop.permute.xlu1 %618 }
 0x10f   : > { %586 = vperm.xlu1 %3020, %v3169_v11  }
 0x110   : > { %v1186_v34 = vmax.f32 %v1154_v36, 0.0  ;;  %v3596_v0 = vpop.permute.xlu0 %562  ;;  %v499_v36 = vmul.f32 %v3379_v45, %v3431_v13 }
 0x112   : > { %v1218_v33 = vmin.f32 %v1186_v34, 6.0 }
 0x113   : > { %650 = vperm.xlu1 %3020, %v3233_v27   ;;  %v1005_v53 = vpop.permute.xlu1 %1004 }
 0x114   : > { %1307 = vst.msk [vmem:[#allocation2 + $0xd9] sm:$0xff] %vm1234_vm0, %v1218_v33  ;;  %v1084_v4 = vmul.f32 %v3546_v30, %v1005_v53  ;;  %v599_v55 = vpop.permute.xlu0 %598 }
 0x115   : > { %v687_v31 = vmul.f32 %v3484_v21, %v599_v55  ;;  %v485_v55 = vmul.f32 %v3379_v45, %v3381_v46  ;;  %v880_v46 = vmul.f32 %v3499_v16, %v3559_v24 }
 0x116   : > { %v1116_v56 = vadd.f32 %v1084_v4, %v919_v58  ;;  %v894_v58 = vmul.f32 %v3499_v16, %v3550_v48 }
 0x117   : > { %v719_v59 = vadd.f32 %v687_v31, %v3407_v57  ;;  %3021 = vset.pattern.permute.xlu1 %v5080_v1  ;;  %v494_v31 = vmul.f32 %v3379_v45, %v3421_v61 }
 0x118   : > { %v1155_v32 = vadd.f32 %v3555_v23, %v1116_v56  ;;  %1036 = vperm.xlu1 %3021, %v3225_v25   ;;  %v812_v2 = vpop.permute.xlu1 %811  ;;  %v635_v6 = vpop.permute.xlu0 %634  ;;  %v691_v56 = vmul.f32 %v3484_v21, %v615_v9 }
 0x119   : > { %v696_v50 = vmul.f32 %v3484_v21, %v635_v6  ;;  %v3613_v17 = vadd.f32 %v884_v44, %v719_v59  ;;  %v888_v6 = vmul.f32 %v3499_v16, %v812_v2  ;;  %v898_v2 = vmul.f32 %v3499_v16, %v3568_v54 }
 0x11a   : > { %v1187_v34 = vmax.f32 %v1155_v32, 0.0 }
 0x11b   : > { %v728_v57 = vadd.f32 %v696_v50, %v499_v36 }
 0x11c   : > { %v1219_v33 = vmin.f32 %v1187_v34, 6.0  ;;  %3022 = vset.pattern.permute.xlu1 %v5084_v7  ;;  %v3616_v53 = vpop.permute.xlu1 %751  ;;  %v639_v25 = vpop.permute.xlu0 %638 }
 0x11d   : > { %v697_v13 = vmul.f32 %v3484_v21, %v639_v25  ;;  %843 = vperm.xlu1 %3022, %v3236_v28   ;;  %v3622_v5 = vadd.f32 %v893_v10, %v728_v57  ;;  %v723_v10 = vadd.f32 %v691_v56, %v494_v31  ;;  %v891_v31 = vmul.f32 %v3499_v16, %v3525_v42 }
 0x11e   : > { %1308 = vst.msk [vmem:[#allocation2 + $0xe1] sm:$0xff] %vm1234_vm0, %v1219_v33  ;;  %v692_v33 = vmul.f32 %v3484_v21, %v619_v63 }
 0x11f   : > { %5086 = vst [vmem:[#allocation13_spill] sm:$0xff] %v3622_v5  ;;  %v729_v4 = vadd.f32 %v697_v13, %v3444_v19  ;;  %v920_v9 = vadd.f32 %v888_v6, %v723_v10  ;;  %v489_v13 = vmul.f32 %v3379_v45, %v3396_v52 }
 0x120   : > { %v579_v44 = vpop.permute.xlu0 %578 }
 0x121   : > { %v682_v48 = vmul.f32 %v3484_v21, %v579_v44  ;;  %783 = vperm.xlu1 %3022, %v3169_v11   ;;  %v3633_v59 = vpop.permute.xlu1 %622  ;;  %v3635_v32 = vadd.f32 %v894_v58, %v729_v4  ;;  %v889_v44 = vmul.f32 %v3499_v16, %v3513_v15  ;;  %v3674_v15 = vld [vmem:[%s5061_s3] ss:$0 sm:$0xff] }
 0x123   : > { %v3638_v19 = vadd.f32 %v682_v48, %v485_v55  ;;  %v497_v55 = vmul.f32 %v3379_v45, %v3424_v62 }
 0x124   : > { %v583_v36 = vpop.permute.xlu0 %582 }
 0x125   : > { %5087 = vst [vmem:[#allocation14_spill] sm:$0xff] %v3638_v19  ;;  %v683_v61 = vmul.f32 %v3484_v21, %v583_v36  ;;  %3023 = vset.pattern.permute.xlu1 %v5082_v8  ;;  %v1437_v36 = vld [vmem:[#allocation2 + $0x1] sm:$0xff] }
 0x126   : > { %590 = vperm.xlu1 %3023, %v3180_v14   ;;  %v1009_v11 = vpop.permute.xlu1 %1008 }
 0x127   : > { %v715_v50 = vadd.f32 %v683_v61, %v3393_v51  ;;  %v1085_v34 = vmul.f32 %v3546_v30, %v1009_v11  ;;  %v495_v51 = vmul.f32 %v3379_v45, %v3418_v60  ;;  %v1337_v60 = vld [vmem:[#allocation2] sm:$0xff] }
 0x128   : > { %v655_v57 = vpop.permute.xlu0 %654  ;;  %v3682_v11 = vld [vmem:[%s5061_s3 + $0x1] ss:$0 sm:$0xff] }
 0x129   : > { %v1117_v24 = vadd.f32 %v1085_v34, %v920_v9  ;;  %v701_v25 = vmul.f32 %v3484_v21, %v655_v57  ;;  %v3651_v58 = vadd.f32 %v880_v46, %v715_v50  ;;  %v724_v48 = vadd.f32 %v692_v33, %v495_v51  ;;  %v1438_v46 = vld [vmem:[#allocation2 + $0x9] sm:$0xff] }
 0x12a   : > { %3024 = vset.pattern.permute.xlu1 %v5080_v1  ;;  %v1373_v9 = vmul.f32 %v3674_v15, %v1337_v60  ;;  %v1473_v57 = vmul.f32 %v3682_v11, %v1437_v36  ;;  %v1537_v51 = vld [vmem:[#allocation2 + $0x2] sm:$0xff]  ;;  %v3725_v36 = vmul.f32 %v3379_v45, %v3388_v49  ;;  %v1554_v49 = vld [vmem:[#allocation2 + $0xca] sm:$0xff] }
 0x12b   : > { %5088 = vst [vmem:[#allocation15_spill] sm:$0xff] %v3651_v58  ;;  %v1156_v4 = vadd.f32 %v3555_v23, %v1117_v24  ;;  %v733_v54 = vadd.f32 %v701_v25, %v3459_v35  ;;  %976 = vperm.xlu1 %3024, %v3172_v12   ;;  %v627_v63 = vpop.permute.xlu1 %626  ;;  %v1338_v12 = vld [vmem:[#allocation2 + $0x8] sm:$0xff]  ;;  %v1474_v24 = vmul.f32 %v3682_v11, %v1438_v46 }
 0x12c   : > { %v694_v52 = vmul.f32 %v3484_v21, %v627_v63  ;;  %v595_v56 = vpop.permute.xlu0 %594  ;;  %v1374_v33 = vmul.f32 %v3674_v15, %v1338_v12  ;;  %v477_v63 = vmul.f32 %v3379_v45, %v3359_v40  ;;  %5092 = vst [vmem:[#allocation19_spill] sm:$0xff] %v3725_v36  ;;  %v3733_v12 = vmul.f32 %v3379_v45, %v3447_v20 }
 0x12d   : > { %v1188_v6 = vmax.f32 %v1156_v4, 0.0  ;;  %v686_v35 = vmul.f32 %v3484_v21, %v595_v56  ;;  %v3669_v10 = vadd.f32 %v898_v2, %v733_v54  ;;  %v479_v4 = vmul.f32 %v3379_v45, %v3357_v39  ;;  %v1538_v54 = vld [vmem:[#allocation2 + $0xa] sm:$0xff] }
 0x12e   : > { %v726_v62 = vadd.f32 %v694_v52, %v497_v55  ;;  %v674_v55 = vmul.f32 %v3484_v21, %v3471_v3  ;;  %v507_v39 = vmul.f32 %v3379_v45, %v3462_v22  ;;  %v1505_v56 = vadd.f32 %v1473_v57, %v1373_v9  ;;  %5094 = vst [vmem:[#allocation21_spill] sm:$0xff] %v3733_v12  ;;  %v5096_v9 = vld [vmem:[#allocation8_spill] sm:$0xff] }
 0x12f   : > { %5089 = vst [vmem:[#allocation16_spill] sm:$0xff] %v3669_v10  ;;  %v1220_v42 = vmin.f32 %v1188_v6, 6.0  ;;  %v3676_v61 = vadd.f32 %v686_v35, %v489_v13  ;;  %1040 = vperm.xlu1 %3024, %v3236_v28   ;;  %v921_v28 = vadd.f32 %v889_v44, %v724_v48  ;;  %v3706_v44 = vld [vmem:[%s5061_s3 + $0x2] ss:$0 sm:$0xff]  ;;  %v1506_v60 = vadd.f32 %v1474_v24, %v1374_v33  ;;  %v1753_v57 = vld [vmem:[#allocation2 + $0xd9] sm:$0xff]  ;;  %v3753_v24 = vld [vmem:[#allocation2 + $0xc9] sm:$0xff] }
 0x130   : > { %v1013_v50 = vpop.permute.xlu1 %1012  ;;  %v663_v34 = vpop.permute.xlu0 %662  ;;  %v3685_v2 = vadd.f32 %v891_v31, %v726_v62  ;;  %v1573_v3 = vmul.f32 %v3706_v44, %v1537_v51  ;;  %v1574_v35 = vmul.f32 %v3706_v44, %v1538_v54  ;;  %v481_v22 = vmul.f32 %v3379_v45, %v3364_v41  ;;  %v3740_v41 = vld [vmem:[%s5061_s3 + $0x7] ss:$0 sm:$0xff]  ;;  %5098 = vst [vmem:[#allocation23_spill] sm:$0xff] %v3753_v24 }
 0x131   : > { %5090 = vst [vmem:[#allocation17_spill] sm:$0xff] %v3676_v61  ;;  %1309 = vst.msk [vmem:[#allocation2 + $0xf1] sm:$0xff] %vm1234_vm0, %v1220_v42  ;;  %v1086_v25 = vmul.f32 %v3546_v30, %v1013_v50  ;;  %v703_v13 = vmul.f32 %v3484_v21, %v663_v34  ;;  %v706_v46 = vadd.f32 %v674_v55, %v477_v63  ;;  %v1653_v34 = vld [vmem:[#allocation2 + $0xd8] sm:$0xff] }
 0x132   : > { %v3744_v50 = vmul.f32 %v3379_v45, %v5096_v9  ;;  %v678_v20 = vmul.f32 %v3484_v21, %v3596_v0  ;;  %v3751_v33 = vadd.f32 %v1573_v3, %v1505_v56  ;;  %v3765_v0 = vld [vmem:[%s5061_s3 + $0x3] ss:$0 sm:$0xff]  ;;  %v3767_v54 = vadd.f32 %v1574_v35, %v1506_v60 }
 0x133   : > { %v1118_v31 = vadd.f32 %v1086_v25, %v921_v28  ;;  %v3700_v52 = vadd.f32 %v703_v13, %v3467_v47  ;;  %3025 = vset.pattern.permute.xlu1 %v5082_v8  ;;  %v871_v47 = vmul.f32 %v3499_v16, %v3562_v26  ;;  %v3729_v26 = vmul.f32 %v3379_v45, %v3439_v18  ;;  %v5099_v25 = vld [vmem:[#allocation12_spill] sm:$0xff]  ;;  %v1754_v56 = vld [vmem:[#allocation2 + $0xe1] sm:$0xff] }
 0x134   : > { %658 = vperm.xlu1 %3025, %v3241_v29   ;;  %v667_v40 = vpop.permute.xlu0 %666  ;;  %v3721_v29 = vmul.f32 %v3379_v45, %v3370_v43  ;;  %v1454_v43 = vld [vmem:[#allocation2 + $0xc9] sm:$0xff]  ;;  %5097 = vst [vmem:[#allocation8_spill] sm:$0xff] %v3744_v50  ;;  %v676_v18 = vmul.f32 %v3484_v21, %v3585_v38  ;;  %v3759_v45 = vmul.f32 %v3499_v16, %v5099_v25 }
 0x135   : > { %5091 = vst [vmem:[#allocation18_spill] sm:$0xff] %v3700_v52  ;;  %v1157_v8 = vadd.f32 %v3555_v23, %v1118_v31  ;;  %v704_v48 = vmul.f32 %v3484_v21, %v667_v40  ;;  %v820_v6 = vpop.permute.xlu1 %819  ;;  %5093 = vst [vmem:[#allocation20_spill] sm:$0xff] %v3729_v26  ;;  %v3755_v28 = vadd.f32 %v871_v47, %v706_v46  ;;  %v1853_v31 = vld [vmem:[#allocation2 + $0xda] sm:$0xff]  ;;  %v3793_v46 = vld [vmem:[%s5061_s3 + $0x4] ss:$0 sm:$0xff] }
 0x136   : > { %5100 = vst [vmem:[#allocation12_spill] sm:$0xff] %v3759_v45  ;;  %v873_v63 = vmul.f32 %v3499_v16, %v3616_v53  ;;  %v1654_v40 = vld [vmem:[#allocation2 + $0xe0] sm:$0xff]  ;;  %v693_v3 = vmul.f32 %v3484_v21, %v3633_v59  ;;  %v1391_v60 = vmul.f32 %v3674_v15, %v1653_v34  ;;  %v1491_v53 = vmul.f32 %v3682_v11, %v1753_v57 }
 0x137   : > { %v1189_v62 = vmax.f32 %v1157_v8, 0.0  ;;  %v3735_v42 = vadd.f32 %v704_v48, %v507_v39  ;;  %v3773_v39 = vmul.f32 %v3682_v11, %v1454_v43  ;;  %v3785_v47 = vmul.f32 %v3740_v41, %v3753_v24 }
 0x138   : > { %3026 = vset.pattern.permute.xlu1 %v5080_v1  ;;  %v708_v8 = vadd.f32 %v676_v18, %v479_v4  ;;  %v3787_v48 = vadd.f32 %v678_v20, %v481_v22  ;;  %v3796_v59 = vmul.f32 %v3765_v0, %v1653_v34  ;;  %v1591_v4 = vmul.f32 %v3706_v44, %v1853_v31 }
 0x139   : > { %5095 = vst [vmem:[#allocation22_spill] sm:$0xff] %v3735_v42  ;;  %v1221_v13 = vmin.f32 %v1189_v62, 6.0  ;;  %1044 = vperm.xlu1 %3026, %v3233_v27   ;;  %v760_v38 = vpop.permute.xlu1 %759  ;;  %v993_v51 = vpop.permute.xlu0 %992  ;;  %v3776_v27 = vmul.f32 %v3706_v44, %v1554_v49  ;;  %5101 = vst [vmem:[#allocation24_spill] sm:$0xff] %v3785_v47  ;;  %v1954_v62 = vld [vmem:[#allocation2 + $0xf0] sm:$0xff]  ;;  %v3800_v49 = vmul.f32 %v3793_v46, %v1753_v57  ;;  %v3814_v57 = vld [vmem:[%s5061_s3 + $0x5] ss:$0 sm:$0xff] }
 0x13a   : > { %v1081_v55 = vmul.f32 %v3546_v30, %v993_v51  ;;  %v1392_v22 = vmul.f32 %v3674_v15, %v1654_v40  ;;  %v3805_v9 = vadd.f32 %v873_v63, %v708_v8  ;;  %v890_v18 = vmul.f32 %v3499_v16, %v820_v6  ;;  %v5102_v51 = vld [vmem:[#allocation5_spill] sm:$0xff] }
 0x13b   : > { %1310 = vst.msk [vmem:[#allocation2 + $0xf9] sm:$0xff] %vm1234_vm0, %v1221_v13  ;;  %v1854_v13 = vld [vmem:[#allocation2 + $0xe2] sm:$0xff]  ;;  %v3818_v63 = vmul.f32 %v3814_v57, %v1853_v31  ;;  %v1523_v8 = vadd.f32 %v1491_v53, %v1391_v60  ;;  %v1691_v6 = vmul.f32 %v3765_v0, %v1954_v62  ;;  %v3823_v47 = vmul.f32 %v3765_v0, %v1654_v40 }
 0x13c   : > { %v1113_v35 = vadd.f32 %v1081_v55, %v3613_v17  ;;  %v1492_v17 = vmul.f32 %v3682_v11, %v1754_v56  ;;  %v725_v55 = vadd.f32 %v693_v3, %v5102_v51  ;;  %v3826_v42 = vmul.f32 %v3793_v46, %v1754_v56 }
 0x13d   : > { %3027 = vset.pattern.permute.xlu1 %v5084_v7  ;;  %v937_v43 = vpop.permute.xlu0 %936  ;;  %v3829_v3 = vmul.f32 %v3814_v57, %v1854_v13  ;;  %v1623_v31 = vadd.f32 %v1591_v4, %v1523_v8  ;;  %v1592_v60 = vmul.f32 %v3706_v44, %v1854_v13  ;;  %v875_v40 = vmul.f32 %v3499_v16, %v760_v38  ;;  %v3848_v38 = vld [vmem:[%s5061_s3 + $0x6] ss:$0 sm:$0xff] }
 0x13e   : > { %v1152_v20 = vadd.f32 %v3555_v23, %v1113_v35  ;;  %v1067_v34 = vmul.f32 %v3546_v30, %v937_v43  ;;  %787 = vperm.xlu1 %3027, %v3180_v14   ;;  %v631_v25 = vpop.permute.xlu1 %630  ;;  %v2054_v14 = vld [vmem:[#allocation2 + $0xf1] sm:$0xff]  ;;  %v1524_v51 = vadd.f32 %v1492_v17, %v1392_v22  ;;  %v922_v53 = vadd.f32 %v890_v18, %v725_v55 }
 0x13f   : > { %v1723_v61 = vadd.f32 %v1691_v6, %v1623_v31  ;;  %v1393_v50 = vmul.f32 %v3674_v15, %v1954_v62  ;;  %v1493_v4 = vmul.f32 %v3682_v11, %v2054_v14  ;;  %v695_v17 = vmul.f32 %v3484_v21, %v631_v25 }
 0x140   : > { %v1184_v35 = vmax.f32 %v1152_v20, 0.0  ;;  %v1099_v43 = vadd.f32 %v1067_v34, %v3587_v37  ;;  %v3835_v34 = vld [vmem:[%s3126_s29 + $0x68] sm:$0xff]  ;;  %v3851_v8 = vmul.f32 %v3848_v38, %v1954_v62  ;;  %v1791_v6 = vmul.f32 %v3793_v46, %v2054_v14 }
 0x141   : > { %v941_v52 = vpop.permute.xlu0 %940  ;;  %v1624_v25 = vadd.f32 %v1592_v60, %v1524_v51  ;;  %v907_v62 = vadd.f32 %v875_v40, %v3787_v48  ;;  %v3864_v45 = vadd.f32 %v1493_v4, %v1393_v50 }
 0x142   : > { %v1216_v10 = vmin.f32 %v1184_v35, 6.0  ;;  %v1138_v20 = vadd.f32 %v3555_v23, %v1099_v43  ;;  %v1068_v37 = vmul.f32 %v3546_v30, %v941_v52  ;;  %791 = vperm.xlu1 %3027, %v3835_v34   ;;  %v2154_v13 = vld [vmem:[#allocation2 + $0xf2] sm:$0xff]  ;;  %v1823_v58 = vadd.f32 %v1791_v6, %v1723_v61  ;;  %v3875_v61 = vld [vmem:[%s5061_s3 + $0x8] ss:$0 sm:$0xff]  ;;  %v3877_v48 = vld [vmem:[#allocation2 + $0xfa] sm:$0xff] }
 0x143   : > { %v1017_v56 = vpop.permute.xlu1 %1016  ;;  %v1891_v36 = vmul.f32 %v3814_v57, %v2154_v13  ;;  %5103 = vst [vmem:[#allocation5_spill] sm:$0xff] %v3864_v45  ;;  %v3880_v40 = vmul.f32 %v3875_v61, %v2154_v13 }
 0x144   : > { %1305 = vst.msk [vmem:[#allocation2 + $0xc1] sm:$0xff] %vm1234_vm0, %v1216_v10  ;;  %v1170_v22 = vmax.f32 %v1138_v20, 0.0  ;;  %v1100_v52 = vadd.f32 %v1068_v37, %v3755_v28  ;;  %v1087_v18 = vmul.f32 %v3546_v30, %v1017_v56  ;;  %v3854_v10 = vmul.f32 %v3740_v41, %v2054_v14  ;;  %v3034_v20 = vld [vmem:[%s3126_s29 + $0xe8] sm:$0xff]  ;;  %v1955_v37 = vld [vmem:[#allocation2 + $0xf8] sm:$0xff] }
 0x145   : > { %v945_v55 = vpop.permute.xlu0 %944  ;;  %v3860_v56 = vld [vmem:[#allocation2 + $0xf9] sm:$0xff]  ;;  %v5104_v14 = vld [vmem:[#allocation6_spill] sm:$0xff]  ;;  %v3883_v4 = vmul.f32 %v3848_v38, %v1955_v37  ;;  %v3898_v26 = vadd.f32 %v1891_v36, %v1823_v58 }
 0x146   : > { %v1202_v35 = vmin.f32 %v1170_v22, 6.0  ;;  %v1139_v28 = vadd.f32 %v3555_v23, %v1100_v52  ;;  %v1119_v43 = vadd.f32 %v1087_v18, %v922_v53  ;;  %v1069_v31 = vmul.f32 %v3546_v30, %v945_v55  ;;  %855 = vperm.xlu1 %3027, %v3034_v20   ;;  %v5105_v22 = vld [vmem:[#allocation9_spill] sm:$0xff] }
 0x147   : > { %v3868_v51 = vadd.f32 %v695_v17, %v5104_v14  ;;  %v3887_v17 = vmul.f32 %v3740_v41, %v3860_v56  ;;  %v1692_v55 = vmul.f32 %v3765_v0, %v1955_v37  ;;  %5106 = vst [vmem:[#allocation6_spill] sm:$0xff] %v3898_v26 }
 0x148   : > { %1291 = vst.msk [vmem:[#allocation2 + $0x19] sm:$0xff] %vm1234_vm0, %v1202_v35  ;;  %v1171_v60 = vmax.f32 %v1139_v28, 0.0  ;;  %v1158_v53 = vadd.f32 %v3555_v23, %v1119_v43  ;;  %v1101_v52 = vadd.f32 %v1069_v31, %v5105_v22  ;;  %v571_v18 = vpop.permute.xlu1 %570  ;;  %v3035_v31 = vld [vmem:[%s3126_s29 + $0x60] sm:$0xff]  ;;  %v3896_v22 = vmul.f32 %v3875_v61, %v3877_v48 }
 0x149   : > { %v949_v50 = vpop.permute.xlu0 %948  ;;  %v3913_v26 = vadd.f32 %v1692_v55, %v1624_v25 }
 0x14a   : > { %v1203_v6 = vmin.f32 %v1171_v60, 6.0  ;;  %v1190_v35 = vmax.f32 %v1158_v53, 0.0  ;;  %v1140_v28 = vadd.f32 %v3555_v23, %v1101_v52  ;;  %v1070_v43 = vmul.f32 %v3546_v30, %v949_v50  ;;  %3029 = vset.pattern.permute.xlu1 %v5080_v1 }
 0x14b   : > { %984 = vperm.xlu1 %3029, %v3035_v31   ;;  %v1353_v20 = vld [vmem:[#allocation2 + $0xc0] sm:$0xff]  ;;  %v3902_v60 = vmul.f32 %v3793_v46, %v3860_v56  ;;  %v3906_v53 = vmul.f32 %v3814_v57, %v3877_v48  ;;  %v1354_v58 = vld [vmem:[#allocation2 + $0xc8] sm:$0xff] }
 0x14c   : > { %v1453_v14 = vld [vmem:[#allocation2 + $0xc1] sm:$0xff]  ;;  %1292 = vst.msk [vmem:[#allocation2 + $0x21] sm:$0xff] %vm1234_vm0, %v1203_v6  ;;  %v1222_v52 = vmin.f32 %v1190_v35, 6.0  ;;  %v1172_v50 = vmax.f32 %v1140_v28, 0.0  ;;  %v1102_v31 = vadd.f32 %v1070_v43, %v3805_v9  ;;  %v1389_v12 = vmul.f32 %v3674_v15, %v1353_v20 }
 0x14d   : > { %5107 = vst [vmem:[#allocation9_spill] sm:$0xff] %v3906_v53  ;;  %v1553_v24 = vld [vmem:[#allocation2 + $0xc2] sm:$0xff]  ;;  %v957_v36 = vpop.permute.xlu1 %956  ;;  %v953_v19 = vpop.permute.xlu0 %952  ;;  %v1489_v45 = vmul.f32 %v3682_v11, %v1453_v14  ;;  %v1390_v5 = vmul.f32 %v3674_v15, %v1354_v58  ;;  %v3916_v53 = vmul.f32 %v3706_v44, %v2154_v13  ;;  %v3928_v13 = vmul.f32 %v3674_v15, %v1955_v37 }
 0x14e   : > { %1311 = vst.msk [vmem:[#allocation2 + $0x109] sm:$0xff] %vm1234_vm0, %v1222_v52  ;;  %v1204_v6 = vmin.f32 %v1172_v50, 6.0  ;;  %v1141_v9 = vadd.f32 %v3555_v23, %v1102_v31  ;;  %v1072_v35 = vmul.f32 %v3546_v30, %v957_v36  ;;  %v1071_v28 = vmul.f32 %v3546_v30, %v953_v19  ;;  %v3036_v43 = vld [vmem:[%s3126_s29 + $0xe0] sm:$0xff]  ;;  %v5108_v31 = vld [vmem:[#allocation10_spill] sm:$0xff] }
 0x14f   : > { %1048 = vperm.xlu1 %3029, %v3036_v43   ;;  %v1521_v20 = vadd.f32 %v1489_v45, %v1389_v12  ;;  %v1589_v14 = vmul.f32 %v3706_v44, %v1553_v24  ;;  %v1522_v25 = vadd.f32 %v3773_v39, %v1390_v5  ;;  %v3925_v55 = vld [vmem:[#allocation2 + $0x18] sm:$0xff]  ;;  %v680_v12 = vmul.f32 %v3484_v21, %v571_v18 }
 0x150   : > { %1293 = vst.msk [vmem:[#allocation2 + $0x31] sm:$0xff] %vm1234_vm0, %v1204_v6  ;;  %v1173_v52 = vmax.f32 %v1141_v9, 0.0  ;;  %v1104_v50 = vadd.f32 %v1072_v35, %v907_v62  ;;  %v1103_v58 = vadd.f32 %v1071_v28, %v5108_v31  ;;  %v1673_v19 = vmul.f32 %v3765_v0, %v3925_v55  ;;  %v3934_v36 = vld [vmem:[#allocation2 + $0x19] sm:$0xff] }
 0x151   : > { %v1021_v24 = vpop.permute.xlu1 %1020  ;;  %v965_v5 = vpop.permute.xlu0 %964  ;;  %v1621_v45 = vadd.f32 %v1589_v14, %v1521_v20  ;;  %v1622_v39 = vadd.f32 %v3776_v27, %v1522_v25  ;;  %v3940_v37 = vmul.f32 %v3682_v11, %v3860_v56  ;;  %v1773_v27 = vmul.f32 %v3793_v46, %v3934_v36 }
 0x152   : > { %v1205_v6 = vmin.f32 %v1173_v52, 6.0  ;;  %v1143_v62 = vadd.f32 %v3555_v23, %v1104_v50  ;;  %v1142_v9 = vadd.f32 %v3555_v23, %v1103_v58  ;;  %v1088_v35 = vmul.f32 %v3546_v30, %v1021_v24 }
 0x153   : > { %988 = vperm.xlu1 %3029, %v3835_v34   ;;  %v1721_v21 = vadd.f32 %v3796_v59, %v1621_v45  ;;  %v1722_v18 = vadd.f32 %v3823_v47, %v1622_v39  ;;  %v1705_v28 = vadd.f32 %v1673_v19, %v3751_v33  ;;  %v3951_v56 = vld [vmem:[#allocation2 + $0x1a] sm:$0xff]  ;;  %v712_v45 = vadd.f32 %v680_v12, %v3721_v29  ;;  %v3037_v12 = vld [vmem:[%s3126_s29 + $0xf0] sm:$0xff] }
 0x154   : > { %v3953_v43 = vld [vmem:[#allocation2 + $0x20] sm:$0xff]  ;;  %1294 = vst.msk [vmem:[#allocation2 + $0x39] sm:$0xff] %vm1234_vm0, %v1205_v6  ;;  %v1175_v20 = vmax.f32 %v1143_v62, 0.0  ;;  %v1174_v14 = vmax.f32 %v1142_v9, 0.0  ;;  %v1120_v25 = vadd.f32 %v1088_v35, %v3685_v2  ;;  %v1873_v59 = vmul.f32 %v3814_v57, %v3951_v56 }
 0x155   : > { %v1033_v34 = vpop.permute.xlu0 %1032  ;;  %v1821_v47 = vadd.f32 %v3800_v49, %v1721_v21  ;;  %v1822_v33 = vadd.f32 %v3826_v42, %v1722_v18  ;;  %v1805_v52 = vadd.f32 %v1773_v27, %v1705_v28  ;;  %v1674_v50 = vmul.f32 %v3765_v0, %v3953_v43  ;;  %v3974_v9 = vld [vmem:[#allocation2 + $0x21] sm:$0xff] }
 0x156   : > { %v1207_v31 = vmin.f32 %v1175_v20, 6.0  ;;  %v1206_v58 = vmin.f32 %v1174_v14, 6.0  ;;  %v1159_v19 = vadd.f32 %v3555_v23, %v1120_v25  ;;  %v1091_v24 = vmul.f32 %v3546_v30, %v1033_v34  ;;  %v828_v2 = vpop.permute.xlu1 %827 }
 0x157   : > { %v1074_v39 = vmul.f32 %v3546_v30, %v965_v5  ;;  %3031 = vset.pattern.permute.xlu1 %v5084_v7  ;;  %v1921_v42 = vadd.f32 %v3818_v63, %v1821_v47  ;;  %v1922_v49 = vadd.f32 %v3829_v3, %v1822_v33  ;;  %v3970_v6 = vld [vmem:[#allocation2 + $0x30] sm:$0xff]  ;;  %v1905_v7 = vadd.f32 %v1873_v59, %v1805_v52  ;;  %v3982_v3 = vld [vmem:[#allocation2 + $0x22] sm:$0xff]  ;;  %v3038_v52 = vld [vmem:[%s3126_s29 + $0xf8] sm:$0xff] }
 0x158   : > { %v3972_v62 = vld [vmem:[#allocation2 + $0x31] sm:$0xff]  ;;  %1296 = vst.msk [vmem:[#allocation2 + $0x51] sm:$0xff] %vm1234_vm0, %v1207_v31  ;;  %1295 = vst.msk [vmem:[#allocation2 + $0x49] sm:$0xff] %vm1234_vm0, %v1206_v58  ;;  %v1191_v35 = vmax.f32 %v1159_v19, 0.0  ;;  %v1123_v29 = vadd.f32 %v1091_v24, %v3635_v32  ;;  %859 = vperm.xlu1 %3031, %v3037_v12   ;;  %v1974_v63 = vmul.f32 %v3848_v38, %v3970_v6 }
 0x159   : > { %v2022_v5 = vadd.f32 %v3851_v8, %v1921_v42  ;;  %v2023_v21 = vadd.f32 %v3883_v4, %v1922_v49  ;;  %v2074_v18 = vmul.f32 %v3740_v41, %v3972_v62  ;;  %v1706_v28 = vadd.f32 %v1674_v50, %v3767_v54  ;;  %v4006_v50 = vld [vmem:[%s5062_s4] ss:$0 sm:$0xff] }
 0x15a   : > { %v1223_v27 = vmin.f32 %v1191_v35, 6.0  ;;  %v1162_v32 = vadd.f32 %v3555_v23, %v1123_v29  ;;  %v768_v20 = vpop.permute.xlu1 %767  ;;  %v2006_v14 = vadd.f32 %v1974_v63, %v1905_v7  ;;  %v1774_v25 = vmul.f32 %v3793_v46, %v3974_v9 }
 0x15b   : > { %v877_v59 = vmul.f32 %v3499_v16, %v768_v20  ;;  %v2122_v8 = vadd.f32 %v3854_v10, %v2022_v5  ;;  %v2123_v4 = vadd.f32 %v3887_v17, %v2023_v21  ;;  %v3995_v34 = vld [vmem:[#allocation2 + $0x32] sm:$0xff]  ;;  %v1874_v47 = vmul.f32 %v3814_v57, %v3982_v3 }
 0x15c   : > { %v3999_v54 = vld [vmem:[#allocation2 + $0x38] sm:$0xff]  ;;  %1312 = vst.msk [vmem:[#allocation2 + $0x111] sm:$0xff] %vm1234_vm0, %v1223_v27  ;;  %v1194_v33 = vmax.f32 %v1162_v32, 0.0  ;;  %863 = vperm.xlu1 %3031, %v3038_v52   ;;  %v2106_v10 = vadd.f32 %v2074_v18, %v2006_v14  ;;  %v2174_v17 = vmul.f32 %v3875_v61, %v3995_v34  ;;  %v1806_v31 = vadd.f32 %v1774_v25, %v1706_v28 }
 0x15d   : > { %v909_v58 = vadd.f32 %v877_v59, %v712_v45  ;;  %v2222_v19 = vadd.f32 %v3880_v40, %v2122_v8  ;;  %v2223_v24 = vadd.f32 %v3896_v22, %v2123_v4  ;;  %v1975_v42 = vmul.f32 %v3848_v38, %v3999_v54  ;;  %v4014_v49 = vld [vmem:[#allocation2 + $0x39] sm:$0xff] }
 0x15e   : > { %v1226_v35 = vmin.f32 %v1194_v33, 6.0  ;;  %v2206_v29 = vadd.f32 %v2174_v17, %v2106_v10  ;;  %v1906_v12 = vadd.f32 %v1874_v47, %v1806_v31  ;;  %v1375_v7 = vmul.f32 %v3674_v15, %v3925_v55  ;;  %v4023_v45 = vld [vmem:[#allocation2 + $0x3a] sm:$0xff]  ;;  %v4041_v31 = vld [vmem:[#allocation2 + $0x108] sm:$0xff] }
 0x15f   : > { %v892_v63 = vmul.f32 %v3499_v16, %v828_v2  ;;  %v1106_v5 = vadd.f32 %v1074_v39, %v909_v58  ;;  %v4019_v21 = vpop.permute.xlu1 %574  ;;  %v2260_v40 = vadd.f32 %v4006_v50, %v2222_v19  ;;  %v2261_v22 = vadd.f32 %v4006_v50, %v2223_v24  ;;  %v4039_v17 = vld [vmem:[#allocation2 + $0x48] sm:$0xff] }
 0x160   : > { %1315 = vst.msk [vmem:[#allocation2 + $0x139] sm:$0xff] %vm1234_vm0, %v1226_v35  ;;  %3032 = vset.pattern.permute.xlu1 %v5080_v1  ;;  %v2244_v18 = vadd.f32 %v4006_v50, %v2206_v29  ;;  %v2007_v28 = vadd.f32 %v1975_v42, %v1906_v12  ;;  %v2075_v55 = vmul.f32 %v3740_v41, %v4014_v49 }
 0x161   : > { %v1475_v16 = vmul.f32 %v3682_v11, %v3934_v36  ;;  %v1145_v2 = vadd.f32 %v3555_v23, %v1106_v5  ;;  %1060 = vperm.xlu1 %3032, %v3038_v52   ;;  %v2292_v39 = vmax.f32 %v2260_v40, 0.0  ;;  %v2293_v27 = vmax.f32 %v2261_v22, 0.0 }
 0x162   : > { %v1575_v32 = vmul.f32 %v3706_v44, %v3951_v56  ;;  %v2276_v20 = vmax.f32 %v2244_v18, 0.0  ;;  %v2107_v14 = vadd.f32 %v2075_v55, %v2007_v28  ;;  %v2175_v1 = vmul.f32 %v3875_v61, %v4023_v45  ;;  %v4043_v56 = vld [vmem:[#allocation2 + $0x109] sm:$0xff] }
 0x163   : > { %v1507_v25 = vadd.f32 %v1475_v16, %v1375_v7  ;;  %v1177_v59 = vmax.f32 %v1145_v2, 0.0  ;;  %v2324_v8 = vmin.f32 %v2292_v39, 6.0  ;;  %v2325_v4 = vmin.f32 %v2293_v27, 6.0  ;;  %v4052_v29 = vld [vmem:[#allocation2 + $0x10a] sm:$0xff] }
 0x164   : > { %v1675_v36 = vmul.f32 %v3765_v0, %v3970_v6  ;;  %v961_v47 = vpop.permute.xlu1 %960  ;;  %v2308_v33 = vmin.f32 %v2276_v20, 6.0  ;;  %v2207_v52 = vadd.f32 %v2175_v1, %v2107_v14  ;;  %v1824_v58 = vadd.f32 %v3902_v60, %v3913_v26  ;;  %v4073_v27 = vld [vmem:[#allocation2 + $0x49] sm:$0xff] }
 0x165   : > { %v1607_v10 = vadd.f32 %v1575_v32, %v1507_v25  ;;  %v924_v19 = vadd.f32 %v892_v63, %v3868_v51  ;;  %v1209_v24 = vmin.f32 %v1177_v59, 6.0  ;;  %v1073_v42 = vmul.f32 %v3546_v30, %v961_v47  ;;  %2945 = vmatprep.mubr.msk.f32.mxu1 %vm1234_vm0, %v2324_v8  ;;  %v5109_v51 = vld [vmem:[#allocation11_spill] sm:$0xff]  ;;  %v5110_v32 = vld [vmem:[#allocation6_spill] sm:$0xff] }
 0x166   : > { %v1775_v35 = vmul.f32 %v3793_v46, %v3972_v62  ;;  %2946 = vmatmul.mubr.msk.f32.vlgmr.msra.gmra.mrb[0].mxu1 %vm1234_vm0, %v2325_v4  ;;  %2921 = vmatprep.mubr.msk.f32.mxu0 %vm1234_vm0, %v2308_v33  ;;  %v2245_v12 = vadd.f32 %v4006_v50, %v2207_v52  ;;  %v1875_v26 = vmul.f32 %v3814_v57, %v3995_v34  ;;  %v4087_v52 = vld [vmem:[#allocation2 + $0x110] sm:$0xff] }
 0x167   : > { %v1707_v7 = vadd.f32 %v1675_v36, %v1607_v10  ;;  %1298 = vst.msk [vmem:[#allocation2 + $0x69] sm:$0xff] %vm1234_vm0, %v1209_v24  ;;  %v1105_v60 = vadd.f32 %v1073_v42, %v5109_v51  ;;  %v1976_v63 = vmul.f32 %v3848_v38, %v4039_v17  ;;  %v1992_v5 = vmul.f32 %v3848_v38, %v4041_v31  ;;  %v4082_v36 = vld [vmem:[#allocation2 + $0x4a] sm:$0xff] }
 0x168   : > { %v2092_v40 = vmul.f32 %v3740_v41, %v4043_v56  ;;  %v1025_v22 = vpop.permute.xlu1 %1024  ;;  %v2277_v18 = vmax.f32 %v2245_v12, 0.0  ;;  %v2192_v55 = vmul.f32 %v3875_v61, %v4052_v29  ;;  %v1376_v16 = vmul.f32 %v3674_v15, %v3953_v43 }
 0x169   : > { %v1807_v28 = vadd.f32 %v1775_v35, %v1707_v7  ;;  %v1144_v2 = vadd.f32 %v3555_v23, %v1105_v60  ;;  %v1089_v39 = vmul.f32 %v3546_v30, %v1025_v22  ;;  %v2024_v20 = vadd.f32 %v1992_v5, %v5110_v32  ;;  %v4100_v7 = vld [vmem:[#allocation2 + $0x50] sm:$0xff] }
 0x16a   : > { %v1476_v14 = vmul.f32 %v3682_v11, %v3974_v9  ;;  %v2309_v1 = vmin.f32 %v2277_v18, 6.0  ;;  %v1576_v59 = vmul.f32 %v3706_v44, %v3982_v3  ;;  %v1676_v8 = vmul.f32 %v3765_v0, %v3999_v54  ;;  %v4113_v22 = vld [vmem:[#allocation2 + $0x112] sm:$0xff] }
 0x16b   : > { %v1907_v25 = vadd.f32 %v1875_v26, %v1807_v28  ;;  %v1176_v43 = vmax.f32 %v1144_v2, 0.0  ;;  %v1121_v4 = vadd.f32 %v1089_v39, %v924_v19  ;;  %v2124_v30 = vadd.f32 %v2092_v40, %v2024_v20  ;;  %v4102_v26 = vld [vmem:[#allocation2 + $0x111] sm:$0xff] }
 0x16c   : > { %v1508_v47 = vadd.f32 %v1476_v14, %v1376_v16  ;;  %2922 = vmatmul.mubr.msk.f32.vlgmr.msra.gmra.mrb[0].mxu0 %vm1234_vm0, %v2309_v1  ;;  %v2076_v9 = vmul.f32 %v3740_v41, %v4073_v27  ;;  %v4091_v3 = vadd.f32 %v3940_v37, %v3928_v13  ;;  %v4095_v10 = vmul.f32 %v3706_v44, %v3877_v48  ;;  %v5111_v48 = vld [vmem:[#allocation9_spill] sm:$0xff]  ;;  %v4122_v14 = vld [vmem:[#allocation2 + $0x51] sm:$0xff] }
 0x16d   : > { %v2008_v33 = vadd.f32 %v1976_v63, %v1907_v25  ;;  %v1208_v19 = vmin.f32 %v1176_v43, 6.0  ;;  %v1160_v24 = vadd.f32 %v3555_v23, %v1121_v4  ;;  %v4098_v42 = vpop.permute.xlu1 %642  ;;  %v2224_v35 = vadd.f32 %v2192_v55, %v2124_v30  ;;  %v4131_v30 = vld [vmem:[#allocation2 + $0x52] sm:$0xff] }
 0x16e   : > { %v1608_v12 = vadd.f32 %v1576_v59, %v1508_v47  ;;  %v2176_v13 = vmul.f32 %v3875_v61, %v4082_v36  ;;  %v1776_v37 = vmul.f32 %v3793_v46, %v4014_v49  ;;  %v1924_v60 = vadd.f32 %v5111_v48, %v1824_v58  ;;  %v4136_v47 = vld [vmem:[%s5059_s1 + $0x3] ss:$0 sm:$0xff] }
 0x16f   : > { %v2108_v51 = vadd.f32 %v2076_v9, %v2008_v33  ;;  %1297 = vst.msk [vmem:[#allocation2 + $0x61] sm:$0xff] %vm1234_vm0, %v1208_v19  ;;  %v1192_v23 = vmax.f32 %v1160_v24, 0.0  ;;  %v2262_v63 = vadd.f32 %v4006_v50, %v2224_v35  ;;  %v1993_v40 = vmul.f32 %v3848_v38, %v4087_v52 }
 0x170   : > { %v1708_v5 = vadd.f32 %v1676_v8, %v1608_v12  ;;  %v1876_v28 = vmul.f32 %v3814_v57, %v4023_v45  ;;  %v1977_v55 = vmul.f32 %v3848_v38, %v4100_v7  ;;  %v2093_v58 = vmul.f32 %v3740_v41, %v4102_v26 }
 0x171   : > { %v2208_v18 = vadd.f32 %v2176_v13, %v2108_v51  ;;  %v1224_v16 = vmin.f32 %v1192_v23, 6.0  ;;  %v2294_v2 = vmax.f32 %v2262_v63, 0.0  ;;  %v2025_v32 = vadd.f32 %v1993_v40, %v1924_v60  ;;  %v5112_v51 = vld [vmem:[#allocation13_spill] sm:$0xff] }
 0x172   : > { %v1808_v39 = vadd.f32 %v1776_v37, %v1708_v5  ;;  %v1029_v1 = vpop.permute.xlu1 %1028  ;;  %v2193_v25 = vmul.f32 %v3875_v61, %v4113_v22  ;;  %v1377_v59 = vmul.f32 %v3674_v15, %v3970_v6  ;;  %v1477_v8 = vmul.f32 %v3682_v11, %v3972_v62  ;;  %v5113_v63 = vld [vmem:[#allocation5_spill] sm:$0xff] }
 0x173   : > { %v2246_v20 = vadd.f32 %v4006_v50, %v2208_v18  ;;  %1313 = vst.msk [vmem:[#allocation2 + $0x121] sm:$0xff] %vm1234_vm0, %v1224_v16  ;;  %v2326_v43 = vmin.f32 %v2294_v2, 6.0  ;;  %v1090_v33 = vmul.f32 %v4136_v47, %v1029_v1  ;;  %v2125_v9 = vadd.f32 %v2093_v58, %v2025_v32  ;;  %v4154_v40 = vld [vmem:[%s5060_s2] ss:$0 sm:$0xff] }
 0x174   : > { %v1908_v4 = vadd.f32 %v1876_v28, %v1808_v39  ;;  %v1509_v24 = vadd.f32 %v1477_v8, %v1377_v59  ;;  %v1577_v6 = vmul.f32 %v3706_v44, %v3995_v34  ;;  %v1677_v62 = vmul.f32 %v3765_v0, %v4039_v17  ;;  %v973_v59 = vpop.permute.xlu0 %972 }
 0x175   : > { %v2278_v19 = vmax.f32 %v2246_v20, 0.0  ;;  %2948 = vmatprep.mubr.msk.f32.mxu1 %vm1234_vm0, %v2326_v43  ;;  %v2077_v12 = vmul.f32 %v3740_v41, %v4122_v14  ;;  %v1122_v13 = vadd.f32 %v1090_v33, %v5112_v51  ;;  %v2225_v37 = vadd.f32 %v2193_v25, %v2125_v9 }
 0x176   : > { %v2009_v35 = vadd.f32 %v1977_v55, %v1908_v4  ;;  %v2177_v60 = vmul.f32 %v3875_v61, %v4131_v30  ;;  %v1609_v23 = vadd.f32 %v1577_v6, %v1509_v24  ;;  %v1625_v34 = vadd.f32 %v3916_v53, %v5113_v63  ;;  %v4158_v58 = vld [vmem:[#allocation2 + $0x60] sm:$0xff] }
 0x177   : > { %v2310_v48 = vmin.f32 %v2278_v19, 6.0  ;;  %v1161_v18 = vadd.f32 %v4154_v40, %v1122_v13  ;;  %v2263_v28 = vadd.f32 %v4006_v50, %v2225_v37  ;;  %v772_v55 = vpop.permute.xlu1 %771  ;;  %v1378_v16 = vmul.f32 %v3674_v15, %v3999_v54  ;;  %v4173_v4 = vld [vmem:[#allocation2 + $0x61] sm:$0xff] }
 0x178   : > { %v2109_v5 = vadd.f32 %v2077_v12, %v2009_v35  ;;  %v1709_v2 = vadd.f32 %v1677_v62, %v1609_v23  ;;  %v1777_v53 = vmul.f32 %v3793_v46, %v4073_v27  ;;  %v1877_v39 = vmul.f32 %v3814_v57, %v4082_v36  ;;  %v4180_v6 = vld [vmem:[#allocation2 + $0x62] sm:$0xff]  ;;  %v4185_v62 = vld [vmem:[%s5059_s1 + $0x1] ss:$0 sm:$0xff] }
 0x179   : > { %2924 = vmatprep.mubr.msk.f32.mxu0 %vm1234_vm0, %v2310_v48  ;;  %v1626_v32 = vadd.f32 %v4095_v10, %v4091_v3  ;;  %v1193_v1 = vmax.f32 %v1161_v18, 0.0  ;;  %v2295_v25 = vmax.f32 %v2263_v28, 0.0  ;;  %v1478_v8 = vmul.f32 %v3682_v11, %v4014_v49  ;;  %v5114_v23 = vld [vmem:[#allocation14_spill] sm:$0xff] }
 0x17a   : > { %v2209_v20 = vadd.f32 %v2177_v60, %v2109_v5  ;;  %v1809_v54 = vadd.f32 %v1777_v53, %v1709_v2  ;;  %v1978_v43 = vmul.f32 %v3848_v38, %v4158_v58  ;;  %v1578_v33 = vmul.f32 %v3706_v44, %v4023_v45  ;;  %v4194_v45 = vld [vmem:[%s5059_s1 + $0x2] ss:$0 sm:$0xff]  ;;  %v4208_v28 = vld [vmem:[#allocation2 + $0x68] sm:$0xff] }
 0x17b   : > { %v1678_v9 = vmul.f32 %v3765_v0, %v4100_v7  ;;  %v1225_v10 = vmin.f32 %v1193_v1, 6.0  ;;  %v2327_v19 = vmin.f32 %v2295_v25, 6.0  ;;  %v776_v24 = vpop.permute.xlu1 %775  ;;  %v1510_v49 = vadd.f32 %v1478_v8, %v1378_v16  ;;  %v4218_v1 = vld [vmem:[#allocation2 + $0x120] sm:$0xff]  ;;  %v4220_v8 = vld [vmem:[#allocation2 + $0x69] sm:$0xff] }
 0x17c   : > { %v2247_v3 = vadd.f32 %v4006_v50, %v2209_v20  ;;  %v4189_v35 = vmul.f32 %v4185_v62, %v4019_v21  ;;  %v879_v12 = vmul.f32 %v4194_v45, %v776_v24  ;;  %v1076_v51 = vmul.f32 %v4136_v47, %v973_v59 }
 0x17d   : > { %v1909_v13 = vadd.f32 %v1877_v39, %v1809_v54  ;;  %1314 = vst.msk [vmem:[#allocation2 + $0x129] sm:$0xff] %vm1234_vm0, %v1225_v10  ;;  %2949 = vmatmul.mubr.msk.f32.gmra.mrb[2].mxu1 %vm1234_vm0, %v2327_v19  ;;  %v4201_v48 = vmul.f32 %v4194_v45, %v772_v55  ;;  %v2078_v21 = vmul.f32 %v3740_v41, %v4173_v4  ;;  %v4229_v10 = vld [vmem:[#allocation2 + $0x121] sm:$0xff] }
 0x17e   : > { %v2279_v37 = vmax.f32 %v2247_v3, 0.0  ;;  %v1610_v60 = vadd.f32 %v1578_v33, %v1510_v49  ;;  %v911_v63 = vadd.f32 %v879_v12, %v5114_v23  ;;  %v2178_v18 = vmul.f32 %v3875_v61, %v4180_v6 }
 0x17f   : > { %v2010_v5 = vadd.f32 %v1978_v43, %v1909_v13  ;;  %v1693_v16 = vmul.f32 %v3765_v0, %v4041_v31  ;;  %v4212_v53 = vpop.permute.xlu1 %839  ;;  %v1778_v39 = vmul.f32 %v3793_v46, %v4122_v14  ;;  %v1793_v20 = vmul.f32 %v3793_v46, %v4043_v56 }
 0x180   : > { %v2311_v2 = vmin.f32 %v2279_v37, 6.0  ;;  %v1710_v55 = vadd.f32 %v1678_v9, %v1610_v60  ;;  %v1108_v25 = vadd.f32 %v1076_v51, %v911_v63  ;;  %v1893_v43 = vmul.f32 %v3814_v57, %v4052_v29  ;;  %v2151_v60 = vld [vmem:[#allocation2 + $0xca] sm:$0xff] }
 0x181   : > { %v2110_v59 = vadd.f32 %v2078_v21, %v2010_v5  ;;  %v1725_v54 = vadd.f32 %v1693_v16, %v1625_v34  ;;  %v1878_v9 = vmul.f32 %v3814_v57, %v4131_v30  ;;  %v1979_v3 = vmul.f32 %v3848_v38, %v4208_v28  ;;  %v4243_v16 = vld [vmem:[#allocation2 + $0x6a] sm:$0xff] }
 0x182   : > { %2925 = vmatmul.mubr.msk.f32.gmra.mrb[2].mxu0 %vm1234_vm0, %v2311_v2  ;;  %v1810_v33 = vadd.f32 %v1778_v39, %v1710_v55  ;;  %v1694_v19 = vmul.f32 %v3765_v0, %v4087_v52  ;;  %v1147_v24 = vadd.f32 %v4154_v40, %v1108_v25  ;;  %v1994_v12 = vmul.f32 %v3848_v38, %v4218_v1 }
 0x183   : > { %v2210_v34 = vadd.f32 %v2178_v18, %v2110_v59  ;;  %v1825_v49 = vadd.f32 %v1793_v20, %v1725_v54  ;;  %v2079_v13 = vmul.f32 %v3740_v41, %v4220_v8  ;;  %v1794_v21 = vmul.f32 %v3793_v46, %v4102_v26 }
 0x184   : > { %v1910_v51 = vadd.f32 %v1878_v9, %v1810_v33  ;;  %v1726_v37 = vadd.f32 %v1694_v19, %v1626_v32  ;;  %v1179_v23 = vmax.f32 %v1147_v24, 0.0  ;;  %v4240_v63 = vpop.permute.xlu1 %646  ;;  %v2094_v2 = vmul.f32 %v3740_v41, %v4229_v10  ;;  %v4247_v55 = vld [vmem:[#allocation2 + $0x122] sm:$0xff] }
 0x185   : > { %v2248_v5 = vadd.f32 %v4006_v50, %v2210_v34  ;;  %v1925_v18 = vadd.f32 %v1893_v43, %v1825_v49  ;;  %v4249_v39 = vld [vmem:[#allocation2 + $0x128] sm:$0xff]  ;;  %v2194_v20 = vmul.f32 %v3875_v61, %v4247_v55  ;;  %v1894_v59 = vmul.f32 %v3814_v57, %v4113_v22 }
 0x186   : > { %v2011_v32 = vadd.f32 %v1979_v3, %v1910_v51  ;;  %v1826_v25 = vadd.f32 %v1794_v21, %v1726_v37  ;;  %v4255_v54 = vld [vmem:[#allocation2 + $0x129] sm:$0xff]  ;;  %v1211_v33 = vmin.f32 %v1179_v23, 6.0  ;;  %v1995_v19 = vmul.f32 %v3848_v38, %v4249_v39 }
 0x187   : > { %v2280_v9 = vmax.f32 %v2248_v5, 0.0  ;;  %v2026_v43 = vadd.f32 %v1994_v12, %v1925_v18  ;;  %v2179_v34 = vmul.f32 %v3875_v61, %v4243_v16  ;;  %v4262_v49 = vmul.f32 %v3875_v61, %v2151_v60  ;;  %v5116_v51 = vld [vmem:[#allocation3_spill] sm:$0xff] }
 0x188   : > { %v2111_v24 = vadd.f32 %v2079_v13, %v2011_v32  ;;  %v1926_v3 = vadd.f32 %v1894_v59, %v1826_v25  ;;  %v713_v37 = vadd.f32 %v4189_v35, %v5116_v51  ;;  %1300 = vst.msk [vmem:[#allocation2 + $0x81] sm:$0xff] %vm1234_vm0, %v1211_v33  ;;  %v2095_v12 = vmul.f32 %v3740_v41, %v4255_v54  ;;  %v4269_v5 = vld [vmem:[#allocation2 + $0x12a] sm:$0xff] }
 0x189   : > { %5115 = vst [vmem:[#allocation10_spill] sm:$0xff] %v4262_v49  ;;  %v2312_v21 = vmin.f32 %v2280_v9, 6.0  ;;  %v2126_v23 = vadd.f32 %v2094_v2, %v2026_v43  ;;  %v969_v18 = vpop.permute.xlu1 %968  ;;  %v1379_v25 = vmul.f32 %v3674_v15, %v4039_v17  ;;  %v1479_v59 = vmul.f32 %v3682_v11, %v4073_v27  ;;  %v1952_v9 = vld [vmem:[#allocation2 + $0xd8] sm:$0xff]  ;;  %v5117_v43 = vld [vmem:[#allocation23_spill] sm:$0xff] }
 0x18a   : > { %v2211_v13 = vadd.f32 %v2179_v34, %v2111_v24  ;;  %v2027_v32 = vadd.f32 %v1995_v19, %v1926_v3  ;;  %v910_v35 = vadd.f32 %v4201_v48, %v713_v37  ;;  %v1075_v2 = vmul.f32 %v4136_v47, %v969_v18  ;;  %v2052_v17 = vld [vmem:[#allocation2 + $0xd9] sm:$0xff] }
 0x18b   : > { %2927 = vmatprep.mubr.msk.f32.mxu0 %vm1234_vm0, %v2312_v21  ;;  %v2226_v33 = vadd.f32 %v2194_v20, %v2126_v23  ;;  %v4280_v51 = vmul.f32 %v3793_v46, %v5117_v43  ;;  %v2195_v15 = vmul.f32 %v3875_v61, %v4269_v5  ;;  %v4286_v27 = vmul.f32 %v3814_v57, %v2151_v60  ;;  %v4292_v20 = vld [vmem:[%s5061_s3] ss:$0 sm:$0xff] }
 0x18c   : > { %v2249_v19 = vadd.f32 %v4006_v50, %v2211_v13  ;;  %v2127_v24 = vadd.f32 %v2095_v12, %v2027_v32  ;;  %v1107_v48 = vadd.f32 %v1075_v2, %v910_v35  ;;  %v1380_v3 = vmul.f32 %v4292_v20, %v4100_v7  ;;  %v2152_v13 = vld [vmem:[#allocation2 + $0xda] sm:$0xff] }
 0x18d   : > { %5118 = vst [vmem:[#allocation11_spill] sm:$0xff] %v4280_v51  ;;  %5119 = vst [vmem:[#allocation6_spill] sm:$0xff] %v4286_v27  ;;  %v2264_v34 = vadd.f32 %v4006_v50, %v2226_v33  ;;  %v1480_v37 = vmul.f32 %v3682_v11, %v4122_v14  ;;  %v1511_v12 = vadd.f32 %v1479_v59, %v1379_v25  ;;  %v1953_v18 = vld [vmem:[#allocation2 + $0xe0] sm:$0xff] }
 0x18e   : > { %v2281_v21 = vmax.f32 %v2249_v19, 0.0  ;;  %v2227_v23 = vadd.f32 %v2195_v15, %v2127_v24  ;;  %v4299_v60 = vmul.f32 %v3848_v38, %v1952_v9  ;;  %v1146_v32 = vadd.f32 %v4154_v40, %v1107_v48  ;;  %v587_v35 = vpop.permute.xlu1 %586  ;;  %v2053_v59 = vld [vmem:[#allocation2 + $0xe1] sm:$0xff] }
 0x18f   : > { %v2296_v2 = vmax.f32 %v2264_v34, 0.0  ;;  %v1579_v33 = vmul.f32 %v3706_v44, %v4082_v36  ;;  %v4305_v7 = vmul.f32 %v3740_v41, %v2052_v17  ;;  %v1679_v14 = vmul.f32 %v3765_v0, %v4158_v58  ;;  %v2153_v9 = vld [vmem:[#allocation2 + $0xe2] sm:$0xff] }
 0x190   : > { %5120 = vst [vmem:[#allocation9_spill] sm:$0xff] %v4299_v60  ;;  %v2313_v43 = vmin.f32 %v2281_v21, 6.0  ;;  %v2265_v11 = vadd.f32 %v4006_v50, %v2227_v23  ;;  %v1512_v25 = vadd.f32 %v1480_v37, %v1380_v3  ;;  %v1178_v19 = vmax.f32 %v1146_v32, 0.0  ;;  %v4320_v17 = vld [vmem:[%s5061_s3 + $0x2] ss:$0 sm:$0xff] }
 0x191   : > { %5121 = vst [vmem:[#allocation13_spill] sm:$0xff] %v4305_v7  ;;  %v2328_v24 = vmin.f32 %v2296_v2, 6.0  ;;  %v4311_v15 = vmul.f32 %v3875_v61, %v2152_v13  ;;  %v4314_v48 = vmul.f32 %v3848_v38, %v1953_v18  ;;  %v1611_v36 = vadd.f32 %v1579_v33, %v1511_v12  ;;  %v4326_v37 = vld [vmem:[#allocation2 + $0xc0] sm:$0xff] }
 0x192   : > { %2928 = vmatmul.mubr.msk.f32.gmra.mrb[4].mxu0 %vm1234_vm0, %v2313_v43  ;;  %v2297_v44 = vmax.f32 %v2265_v11, 0.0  ;;  %v1580_v34 = vmul.f32 %v4320_v17, %v4131_v30  ;;  %v1680_v3 = vmul.f32 %v3765_v0, %v4208_v28  ;;  %v698_v21 = vmul.f32 %v4185_v62, %v4098_v42  ;;  %v651_v12 = vpop.permute.xlu1 %650  ;;  %v4331_v13 = vld [vmem:[#allocation2 + $0xc1] sm:$0xff] }
 0x193   : > { %5122 = vst [vmem:[#allocation5_spill] sm:$0xff] %v4311_v15  ;;  %5123 = vst [vmem:[#allocation14_spill] sm:$0xff] %v4314_v48  ;;  %v1210_v23 = vmin.f32 %v1178_v19, 6.0  ;;  %2951 = vmatprep.mubr.msk.f32.mxu1 %vm1234_vm0, %v2328_v24  ;;  %v4334_v18 = vmul.f32 %v3740_v41, %v2053_v59  ;;  %v4337_v32 = vmul.f32 %v3875_v61, %v2153_v9  ;;  %v4348_v41 = vld [vmem:[%s5061_s3 + $0x1] ss:$0 sm:$0xff]  ;;  %v5129_v19 = vld [vmem:[#allocation20_spill] sm:$0xff] }
 0x194   : > { %v700_v30 = vmul.f32 %v4185_v62, %v651_v12  ;;  %v2329_v0 = vmin.f32 %v2297_v44, 6.0  ;;  %v1711_v2 = vadd.f32 %v1679_v14, %v1611_v36  ;;  %v1612_v33 = vadd.f32 %v1580_v34, %v1512_v25  ;;  %v5127_v25 = vld [vmem:[#allocation21_spill] sm:$0xff]  ;;  %v981_v36 = vpop.permute.xlu0 %980 }
 0x195   : > { %5124 = vst [vmem:[#allocation3_spill] sm:$0xff] %v4334_v18  ;;  %5125 = vst [vmem:[#allocation23_spill] sm:$0xff] %v4337_v32  ;;  %v895_v42 = vmul.f32 %v4194_v45, %v4212_v53  ;;  %v1395_v43 = vmul.f32 %v4292_v20, %v4041_v31  ;;  %v1495_v11 = vmul.f32 %v4348_v41, %v4043_v56  ;;  %v4363_v9 = vld [vmem:[%s5061_s3 + $0x7] ss:$0 sm:$0xff] }
 0x196   : > { %1299 = vst.msk [vmem:[#allocation2 + $0x79] sm:$0xff] %vm1234_vm0, %v1210_v23  ;;  %v4354_v14 = vmul.f32 %v3848_v38, %v4326_v37  ;;  %v732_v59 = vadd.f32 %v700_v30, %v5127_v25  ;;  %2952 = vmatmul.mubr.msk.f32.gmra.mrb[4].mxu1 %vm1234_vm0, %v2329_v0  ;;  %v1779_v53 = vmul.f32 %v3793_v46, %v4173_v4  ;;  %v4375_v23 = vld [vmem:[#allocation2 + $0xc2] sm:$0xff]  ;;  %v5130_v0 = vld [vmem:[#allocation12_spill] sm:$0xff] }
 0x197   : > { %v1712_v31 = vadd.f32 %v1680_v3, %v1612_v33  ;;  %v4367_v56 = vmul.f32 %v4363_v9, %v4331_v13  ;;  %v730_v24 = vadd.f32 %v698_v21, %v5129_v19  ;;  %v684_v44 = vmul.f32 %v4185_v62, %v587_v35  ;;  %v1037_v12 = vpop.permute.xlu1 %1036 }
 0x198   : > { %5126 = vst [vmem:[#allocation25_spill] sm:$0xff] %v4354_v14  ;;  %v1780_v34 = vmul.f32 %v3793_v46, %v4220_v8  ;;  %v1595_v3 = vmul.f32 %v4320_v17, %v4052_v29  ;;  %v1811_v30 = vadd.f32 %v1779_v53, %v1711_v2  ;;  %v4378_v33 = vadd.f32 %v5130_v0, %v732_v59  ;;  %v4385_v46 = vld [vmem:[#allocation2 + $0x81] sm:$0xff] }
 0x199   : > { %5128 = vst [vmem:[#allocation21_spill] sm:$0xff] %v4367_v56  ;;  %v1396_v25 = vmul.f32 %v4292_v20, %v4087_v52  ;;  %v1496_v35 = vmul.f32 %v4348_v41, %v4102_v26  ;;  %v927_v21 = vadd.f32 %v895_v42, %v730_v24  ;;  %v1092_v19 = vmul.f32 %v4136_v47, %v1037_v12  ;;  %v4390_v29 = vld [vmem:[%s5061_s3 + $0x3] ss:$0 sm:$0xff] }
 0x19a   : > { %v1527_v32 = vadd.f32 %v1495_v11, %v1395_v43  ;;  %v1695_v2 = vmul.f32 %v4390_v29, %v4218_v1  ;;  %v1078_v59 = vmul.f32 %v4136_v47, %v981_v36  ;;  %v1879_v52 = vmul.f32 %v3814_v57, %v4180_v6  ;;  %v5132_v11 = vld [vmem:[#allocation19_spill] sm:$0xff] }
 0x19b   : > { %v1812_v26 = vadd.f32 %v1780_v34, %v1712_v31  ;;  %v4399_v42 = vmul.f32 %v3875_v61, %v4375_v23  ;;  %v699_v43 = vmul.f32 %v4185_v62, %v4240_v63  ;;  %v716_v53 = vadd.f32 %v684_v44, %v5132_v11 }
 0x19c   : > { %v1124_v24 = vadd.f32 %v1092_v19, %v927_v21  ;;  %v1627_v12 = vadd.f32 %v1595_v3, %v1527_v32  ;;  %v1911_v0 = vadd.f32 %v1879_v52, %v1811_v30  ;;  %v1880_v36 = vmul.f32 %v3814_v57, %v4243_v16  ;;  %v844_v27 = vpop.permute.xlu1 %843  ;;  %v4420_v3 = vld [vmem:[%s5061_s3 + $0x4] ss:$0 sm:$0xff] }
 0x19d   : > { %5131 = vst [vmem:[#allocation20_spill] sm:$0xff] %v4399_v42  ;;  %v4404_v18 = vld [vmem:[#allocation2 + $0x78] sm:$0xff]  ;;  %v2081_v31 = vmul.f32 %v4363_v9, %v4385_v46  ;;  %v1528_v34 = vadd.f32 %v1496_v35, %v1396_v25  ;;  %v4415_v44 = vld [vmem:[#allocation2 + $0x80] sm:$0xff]  ;;  %v1795_v57 = vmul.f32 %v4420_v3, %v4229_v10  ;;  %v1596_v21 = vmul.f32 %v4320_v17, %v4113_v22 }
 0x19e   : > { %v4406_v48 = vld [vmem:[#allocation2 + $0x79] sm:$0xff]  ;;  %v1163_v15 = vadd.f32 %v4154_v40, %v1124_v24  ;;  %v1980_v63 = vmul.f32 %v3848_v38, %v4404_v18  ;;  %v1727_v32 = vadd.f32 %v1695_v2, %v1627_v12  ;;  %v1912_v25 = vadd.f32 %v1880_v36, %v1812_v26  ;;  %v4434_v24 = vld [vmem:[#allocation2 + $0x82] sm:$0xff] }
 0x19f   : > { %v4424_v30 = vld [vmem:[#allocation2 + $0x7a] sm:$0xff]  ;;  %v1981_v35 = vmul.f32 %v3848_v38, %v4415_v44  ;;  %v1696_v19 = vmul.f32 %v4390_v29, %v4249_v39  ;;  %v2080_v11 = vmul.f32 %v4363_v9, %v4406_v48  ;;  %v4439_v26 = vld [vmem:[%s5061_s3 + $0x5] ss:$0 sm:$0xff]  ;;  %v1628_v22 = vadd.f32 %v1596_v21, %v1528_v34 }
 0x1a0   : > { %v1195_v2 = vmax.f32 %v1163_v15, 0.0  ;;  %v2012_v52 = vadd.f32 %v1980_v63, %v1911_v0  ;;  %v1895_v12 = vmul.f32 %v4439_v26, %v4247_v55  ;;  %v1381_v7 = vmul.f32 %v4292_v20, %v4158_v58  ;;  %v784_v63 = vpop.permute.xlu1 %783  ;;  %v4449_v42 = vld [vmem:[#allocation2 + $0x138] sm:$0xff] }
 0x1a1   : > { %v2013_v36 = vadd.f32 %v1981_v35, %v1912_v25  ;;  %v1481_v15 = vmul.f32 %v4348_v41, %v4173_v4  ;;  %v2180_v60 = vmul.f32 %v3875_v61, %v4424_v30  ;;  %v1827_v49 = vadd.f32 %v1795_v57, %v1727_v32  ;;  %v1053_v25 = vpop.permute.xlu0 %1052  ;;  %v4454_v58 = vld [vmem:[#allocation2 + $0x139] sm:$0xff]  ;;  %v5133_v4 = vld [vmem:[#allocation7_spill] sm:$0xff] }
 0x1a2   : > { %v1227_v0 = vmin.f32 %v1195_v2, 6.0  ;;  %v2112_v51 = vadd.f32 %v2080_v11, %v2012_v52  ;;  %v881_v56 = vmul.f32 %v4194_v45, %v784_v63  ;;  %v2181_v34 = vmul.f32 %v3875_v61, %v4434_v24 }
 0x1a3   : > { %v2113_v14 = vadd.f32 %v2081_v31, %v2013_v36  ;;  %v1728_v35 = vadd.f32 %v1696_v19, %v1628_v22  ;;  %v731_v21 = vadd.f32 %v699_v43, %v5133_v4  ;;  %v4459_v52 = vmul.f32 %v4136_v47, %v1053_v25 }
 0x1a4   : > { %1316 = vst.msk [vmem:[#allocation2 + $0x141] sm:$0xff] %vm1234_vm0, %v1227_v0  ;;  %v2212_v2 = vadd.f32 %v2180_v60, %v2112_v51  ;;  %v1927_v32 = vadd.f32 %v1895_v12, %v1827_v49  ;;  %v913_v57 = vadd.f32 %v881_v56, %v716_v53  ;;  %v1996_v31 = vmul.f32 %v3848_v38, %v4449_v42 }
 0x1a5   : > { %5134 = vst [vmem:[#allocation12_spill] sm:$0xff] %v4459_v52  ;;  %v2213_v11 = vadd.f32 %v2181_v34, %v2113_v14  ;;  %v1796_v61 = vmul.f32 %v4420_v3, %v4255_v54  ;;  %v896_v36 = vmul.f32 %v4194_v45, %v844_v27  ;;  %v2096_v43 = vmul.f32 %v4363_v9, %v4454_v58  ;;  %v4469_v22 = vpop.permute.xlu1 %590 }
 0x1a6   : > { %v2250_v19 = vadd.f32 %v4006_v50, %v2212_v2  ;;  %v1513_v51 = vadd.f32 %v1481_v15, %v1381_v7  ;;  %v1110_v60 = vadd.f32 %v1078_v59, %v913_v57  ;;  %v1382_v38 = vmul.f32 %v4292_v20, %v4208_v28 }
 0x1a7   : > { %v2251_v49 = vadd.f32 %v4006_v50, %v2213_v11  ;;  %v1828_v14 = vadd.f32 %v1796_v61, %v1728_v35  ;;  %v2028_v53 = vadd.f32 %v1996_v31, %v1927_v32  ;;  %v1896_v27 = vmul.f32 %v4439_v26, %v4269_v5  ;;  %v4502_v61 = vld [vmem:[%s5061_s3 + $0x6] ss:$0 sm:$0xff] }
 0x1a8   : > { %v2282_v56 = vmax.f32 %v2250_v19, 0.0  ;;  %v1581_v12 = vmul.f32 %v4320_v17, %v4180_v6  ;;  %v1149_v0 = vadd.f32 %v4154_v40, %v1110_v60  ;;  %v1482_v59 = vmul.f32 %v4348_v41, %v4220_v8 }
 0x1a9   : > { %v2283_v7 = vmax.f32 %v2251_v49, 0.0  ;;  %v1582_v15 = vmul.f32 %v4320_v17, %v4243_v16  ;;  %v928_v63 = vadd.f32 %v896_v36, %v731_v21  ;;  %v1681_v25 = vmul.f32 %v4390_v29, %v4404_v18  ;;  %v4495_v21 = vld [vmem:[%s5061_s3 + $0x8] ss:$0 sm:$0xff] }
 0x1aa   : > { %v2314_v34 = vmin.f32 %v2282_v56, 6.0  ;;  %v1613_v28 = vadd.f32 %v1581_v12, %v1513_v51  ;;  %v1181_v35 = vmax.f32 %v1149_v0, 0.0  ;;  %v1928_v6 = vadd.f32 %v1896_v27, %v1828_v14  ;;  %v977_v8 = vpop.permute.xlu1 %976  ;;  %v5135_v12 = vld [vmem:[#allocation15_spill] sm:$0xff] }
 0x1ab   : > { %v2315_v4 = vmin.f32 %v2283_v7, 6.0  ;;  %v4485_v2 = vld [vmem:[#allocation2 + $0x13a] sm:$0xff]  ;;  %v1514_v11 = vadd.f32 %v1482_v59, %v1382_v38  ;;  %v2128_v16 = vadd.f32 %v2096_v43, %v2028_v53  ;;  %v1682_v19 = vmul.f32 %v4390_v29, %v4415_v44  ;;  %v4510_v60 = vld [vmem:[#allocation2 + $0x142] sm:$0xff] }
 0x1ac   : > { %v4487_v32 = vld [vmem:[#allocation2 + $0x140] sm:$0xff]  ;;  %2930 = vmatprep.mubr.msk.f32.mxu0 %vm1234_vm0, %v2314_v34  ;;  %v2196_v31 = vmul.f32 %v4495_v21, %v4485_v2  ;;  %v1213_v43 = vmin.f32 %v1181_v35, 6.0  ;;  %v1077_v51 = vmul.f32 %v4136_v47, %v977_v8  ;;  %v1397_v49 = vmul.f32 %v4292_v20, %v4218_v1 }
 0x1ad   : > { %v4489_v57 = vld [vmem:[#allocation2 + $0x141] sm:$0xff]  ;;  %v1997_v36 = vmul.f32 %v4502_v61, %v4487_v32  ;;  %2931 = vmatmul.mubr.msk.f32.gmra.mrb[6].mxu0 %vm1234_vm0, %v2315_v4  ;;  %v1497_v14 = vmul.f32 %v4348_v41, %v4229_v10  ;;  %v1398_v27 = vmul.f32 %v4292_v20, %v4249_v39  ;;  %v1781_v7 = vmul.f32 %v4420_v3, %v4406_v48 }
 0x1ae   : > { %v2228_v38 = vadd.f32 %v2196_v31, %v2128_v16  ;;  %v2097_v53 = vmul.f32 %v4363_v9, %v4489_v57  ;;  %1302 = vst.msk [vmem:[#allocation2 + $0x99] sm:$0xff] %vm1234_vm0, %v1213_v43  ;;  %v1109_v0 = vadd.f32 %v1077_v51, %v5135_v12  ;;  %v1597_v1 = vmul.f32 %v4320_v17, %v4247_v55  ;;  %v1041_v59 = vpop.permute.xlu1 %1040 }
 0x1af   : > { %v2029_v56 = vadd.f32 %v1997_v36, %v1928_v6  ;;  %v1498_v10 = vmul.f32 %v4348_v41, %v4255_v54  ;;  %v2197_v39 = vmul.f32 %v4495_v21, %v4510_v60  ;;  %v1614_v4 = vadd.f32 %v1582_v15, %v1514_v11 }
 0x1b0   : > { %v2266_v34 = vadd.f32 %v4006_v50, %v2228_v38  ;;  %v1148_v6 = vadd.f32 %v4154_v40, %v1109_v0  ;;  %v1093_v8 = vmul.f32 %v4136_v47, %v1041_v59  ;;  %v1713_v16 = vadd.f32 %v1681_v25, %v1613_v28 }
 0x1b1   : > { %v2129_v35 = vadd.f32 %v2097_v53, %v2029_v56  ;;  %v1529_v31 = vadd.f32 %v1497_v14, %v1397_v49  ;;  %v1714_v55 = vadd.f32 %v1682_v19, %v1614_v4  ;;  %v1530_v51 = vadd.f32 %v1498_v10, %v1398_v27  ;;  %v1057_v27 = vpop.permute.xlu0 %1056 }
 0x1b2   : > { %v2298_v36 = vmax.f32 %v2266_v34, 0.0  ;;  %v1180_v12 = vmax.f32 %v1148_v6, 0.0  ;;  %v1125_v54 = vadd.f32 %v1093_v8, %v928_v63  ;;  %v1782_v38 = vmul.f32 %v4420_v3, %v4385_v46 }
 0x1b3   : > { %v2229_v43 = vadd.f32 %v2197_v39, %v2129_v35  ;;  %v1629_v56 = vadd.f32 %v1597_v1, %v1529_v31  ;;  %v1598_v15 = vmul.f32 %v4320_v17, %v4269_v5  ;;  %v1698_v28 = vmul.f32 %v4390_v29, %v4487_v32  ;;  %v659_v19 = vpop.permute.xlu1 %658 }
 0x1b4   : > { %v2330_v53 = vmin.f32 %v2298_v36, 6.0  ;;  %v1212_v25 = vmin.f32 %v1180_v12, 6.0  ;;  %v1164_v11 = vadd.f32 %v4154_v40, %v1125_v54  ;;  %v1813_v49 = vadd.f32 %v1781_v7, %v1713_v16  ;;  %v5136_v16 = vld [vmem:[#allocation4_spill] sm:$0xff] }
 0x1b5   : > { %v2267_v52 = vadd.f32 %v4006_v50, %v2229_v43  ;;  %v1697_v63 = vmul.f32 %v4390_v29, %v4449_v42  ;;  %v685_v14 = vmul.f32 %v4185_v62, %v4469_v22  ;;  %v1814_v0 = vadd.f32 %v1782_v38, %v1714_v55  ;;  %v2047_v55 = vld [vmem:[#allocation2 + $0x99] sm:$0xff] }
 0x1b6   : > { %2954 = vmatprep.mubr.msk.f32.mxu1 %vm1234_vm0, %v2330_v53  ;;  %v1630_v5 = vadd.f32 %v1598_v15, %v1530_v51  ;;  %1301 = vst.msk [vmem:[#allocation2 + $0x91] sm:$0xff] %vm1234_vm0, %v1212_v25  ;;  %v1196_v1 = vmax.f32 %v1164_v11, 0.0  ;;  %v1881_v10 = vmul.f32 %v4439_v26, %v4424_v30  ;;  %v1882_v7 = vmul.f32 %v4439_v26, %v4434_v24  ;;  %v2147_v54 = vld [vmem:[#allocation2 + $0x9a] sm:$0xff] }
 0x1b7   : > { %v2299_v50 = vmax.f32 %v2267_v52, 0.0  ;;  %v1729_v59 = vadd.f32 %v1697_v63, %v1629_v56  ;;  %v1383_v22 = vmul.f32 %v4292_v20, %v4404_v18  ;;  %v1483_v52 = vmul.f32 %v4348_v41, %v4406_v48 }
 0x1b8   : > { %v1730_v35 = vadd.f32 %v1698_v28, %v1630_v5  ;;  %v1228_v39 = vmin.f32 %v1196_v1, 6.0  ;;  %v4556_v4 = vmul.f32 %v4136_v47, %v1057_v27  ;;  %v1797_v6 = vmul.f32 %v4420_v3, %v4454_v58  ;;  %v1045_v36 = vpop.permute.xlu1 %1044 }
 0x1b9   : > { %v2331_v34 = vmin.f32 %v2299_v50, 6.0  ;;  %v1897_v8 = vmul.f32 %v4439_v26, %v4485_v2  ;;  %v4563_v31 = vadd.f32 %v685_v14, %v5136_v16  ;;  %v1913_v18 = vadd.f32 %v1881_v10, %v1813_v49  ;;  %v5137_v50 = vld [vmem:[#allocation8_spill] sm:$0xff] }
 0x1ba   : > { %v1914_v43 = vadd.f32 %v1882_v7, %v1814_v0  ;;  %v1798_v48 = vmul.f32 %v4420_v3, %v4489_v57  ;;  %1317 = vst.msk [vmem:[#allocation2 + $0x151] sm:$0xff] %vm1234_vm0, %v1228_v39  ;;  %v702_v51 = vmul.f32 %v4185_v62, %v659_v19  ;;  %v1094_v12 = vmul.f32 %v4136_v47, %v1045_v36 }
 0x1bb   : > { %2955 = vmatmul.mubr.msk.f32.gmra.mrb[6].mxu1 %vm1234_vm0, %v2331_v34  ;;  %v1829_v38 = vadd.f32 %v1797_v6, %v1729_v59  ;;  %v1898_v56 = vmul.f32 %v4439_v26, %v4510_v60  ;;  %v1515_v15 = vadd.f32 %v1483_v52, %v1383_v22  ;;  %v1399_v28 = vmul.f32 %v4292_v20, %v4449_v42 }
 0x1bc   : > { %v1830_v53 = vadd.f32 %v1798_v48, %v1730_v35  ;;  %v1499_v25 = vmul.f32 %v4348_v41, %v4454_v58  ;;  %v1126_v11 = vadd.f32 %v1094_v12, %v4378_v33  ;;  %v2083_v49 = vmul.f32 %v4363_v9, %v2047_v55 }
 0x1bd   : > { %v1929_v62 = vadd.f32 %v1897_v8, %v1829_v38  ;;  %v1583_v19 = vmul.f32 %v4320_v17, %v4424_v30  ;;  %v4581_v63 = vld [vmem:[#allocation2 + $0x90] sm:$0xff]  ;;  %v2183_v27 = vmul.f32 %v4495_v21, %v2147_v54  ;;  %v1599_v42 = vmul.f32 %v4320_v17, %v4485_v2  ;;  %v788_v30 = vpop.permute.xlu1 %787  ;;  %v4596_v10 = vld [vmem:[#allocation2 + $0x98] sm:$0xff] }
 0x1be   : > { %v4583_v14 = vld [vmem:[#allocation2 + $0x91] sm:$0xff]  ;;  %v1400_v58 = vmul.f32 %v4292_v20, %v4487_v32  ;;  %v1500_v33 = vmul.f32 %v4348_v41, %v4489_v57  ;;  %v734_v0 = vadd.f32 %v702_v51, %v5137_v50  ;;  %v1165_v5 = vadd.f32 %v4154_v40, %v1126_v11 }
 0x1bf   : > { %v1982_v1 = vmul.f32 %v4502_v61, %v4581_v63  ;;  %v1384_v7 = vmul.f32 %v4292_v20, %v4415_v44  ;;  %v4600_v2 = vld [vmem:[#allocation2 + $0x92] sm:$0xff]  ;;  %v1983_v32 = vmul.f32 %v4502_v61, %v4596_v10  ;;  %v4604_v59 = vadd.f32 %v1898_v56, %v1830_v53  ;;  %v4618_v56 = vld [vmem:[#allocation2 + $0xc8] sm:$0xff] }
 0x1c0   : > { %v1615_v57 = vadd.f32 %v1583_v19, %v1515_v15  ;;  %v1531_v34 = vadd.f32 %v1499_v25, %v1399_v28  ;;  %v1197_v35 = vmax.f32 %v1165_v5, 0.0  ;;  %v2082_v52 = vmul.f32 %v4363_v9, %v4583_v14 }
 0x1c1   : > { %v2014_v22 = vadd.f32 %v1982_v1, %v1913_v18  ;;  %v1484_v39 = vmul.f32 %v4348_v41, %v4385_v46  ;;  %v2015_v6 = vadd.f32 %v1983_v32, %v1914_v43  ;;  %v4610_v8 = vld [vmem:[#allocation2 + $0x150] sm:$0xff]  ;;  %v1532_v16 = vadd.f32 %v1500_v33, %v1400_v58  ;;  %v792_v51 = vpop.permute.xlu1 %791 }
 0x1c2   : > { %v4612_v44 = vadd.f32 %v1599_v42, %v1531_v34  ;;  %v1600_v36 = vmul.f32 %v4320_v17, %v4510_v60  ;;  %v1229_v48 = vmin.f32 %v1197_v35, 6.0  ;;  %v2182_v18 = vmul.f32 %v4495_v21, %v4600_v2 }
 0x1c3   : > { %v2114_v12 = vadd.f32 %v2082_v52, %v2014_v22  ;;  %v1516_v38 = vadd.f32 %v1484_v39, %v1384_v7  ;;  %v2115_v53 = vadd.f32 %v2083_v49, %v2015_v6  ;;  %v1584_v46 = vmul.f32 %v4320_v17, %v4434_v24  ;;  %v4656_v7 = vld [vmem:[#allocation2 + $0x151] sm:$0xff] }
 0x1c4   : > { %v4623_v43 = vmul.f32 %v4420_v3, %v2047_v55  ;;  %v4626_v15 = vmul.f32 %v4439_v26, %v2147_v54  ;;  %1318 = vst.msk [vmem:[#allocation2 + $0x159] sm:$0xff] %vm1234_vm0, %v1229_v48  ;;  %v1998_v28 = vmul.f32 %v4502_v61, %v4610_v8  ;;  %v4632_v25 = vmul.f32 %v4348_v41, %v2047_v55  ;;  %v4651_v55 = vld [vmem:[%s5062_s4] ss:$0 sm:$0xff] }
 0x1c5   : > { %v2214_v60 = vadd.f32 %v2182_v18, %v2114_v12  ;;  %v4635_v11 = vmul.f32 %v4320_v17, %v2147_v54  ;;  %v2215_v49 = vadd.f32 %v2183_v27, %v2115_v53  ;;  %v1683_v24 = vmul.f32 %v4390_v29, %v4581_v63  ;;  %v856_v33 = vpop.permute.xlu1 %855  ;;  %v5138_v12 = vld [vmem:[#allocation12_spill] sm:$0xff] }
 0x1c6   : > { %v4641_v19 = vmul.f32 %v4502_v61, %v4618_v56  ;;  %v4645_v42 = vmul.f32 %v4390_v29, %v4326_v37  ;;  %v882_v58 = vmul.f32 %v4194_v45, %v788_v30  ;;  %v1632_v27 = vadd.f32 %v1600_v36, %v1532_v16 }
 0x1c7   : > { %v2252_v54 = vadd.f32 %v4651_v55, %v2214_v60  ;;  %v1616_v50 = vadd.f32 %v1584_v46, %v1516_v38  ;;  %v899_v5 = vmul.f32 %v4194_v45, %v856_v33  ;;  %v2253_v1 = vadd.f32 %v4651_v55, %v2215_v49 }
 0x1c8   : > { %v4660_v37 = vmul.f32 %v4420_v3, %v4331_v13  ;;  %v4664_v30 = vmul.f32 %v4439_v26, %v4375_v23  ;;  %v2030_v34 = vadd.f32 %v1998_v28, %v1929_v62  ;;  %v1783_v35 = vmul.f32 %v4420_v3, %v4583_v14 }
 0x1c9   : > { %v2284_v32 = vmax.f32 %v2252_v54, 0.0  ;;  %v1883_v22 = vmul.f32 %v4439_v26, %v4600_v2  ;;  %v931_v52 = vadd.f32 %v899_v5, %v734_v0  ;;  %v2285_v39 = vmax.f32 %v2253_v1, 0.0 }
 0x1ca   : > { %v1715_v6 = vadd.f32 %v1683_v24, %v1615_v57  ;;  %v1684_v16 = vmul.f32 %v4390_v29, %v4596_v10  ;;  %v914_v13 = vadd.f32 %v882_v58, %v4563_v31  ;;  %v2098_v23 = vmul.f32 %v4363_v9, %v4656_v7  ;;  %v985_v38 = vpop.permute.xlu1 %984 }
 0x1cb   : > { %v2316_v36 = vmin.f32 %v2284_v32, 6.0  ;;  %v1385_v62 = vmul.f32 %v4292_v20, %v4581_v63  ;;  %v883_v48 = vmul.f32 %v4194_v45, %v792_v51  ;;  %v1128_v18 = vadd.f32 %v5138_v12, %v931_v52  ;;  %v4679_v53 = vld [vmem:[#allocation2 + $0x152] sm:$0xff]  ;;  %v4688_v49 = vld [vmem:[#allocation2 + $0x15a] sm:$0xff] }
 0x1cc   : > { %v2317_v0 = vmin.f32 %v2285_v39, 6.0  ;;  %v1963_v57 = vld [vmem:[#allocation2 + $0x158] sm:$0xff]  ;;  %v1699_v31 = vmul.f32 %v4390_v29, %v4610_v8  ;;  %v1079_v60 = vmul.f32 %v4136_v47, %v985_v38  ;;  %v2130_v28 = vadd.f32 %v2098_v23, %v2030_v34 }
 0x1cd   : > { %v2063_v46 = vld [vmem:[#allocation2 + $0x159] sm:$0xff]  ;;  %2933 = vmatprep.mubr.msk.f32.mxu0 %vm1234_vm0, %v2316_v36  ;;  %v2198_v63 = vmul.f32 %v4495_v21, %v4679_v53  ;;  %v1999_v51 = vmul.f32 %v4502_v61, %v1963_v57  ;;  %v1167_v24 = vadd.f32 %v4154_v40, %v1128_v18  ;;  %v1815_v58 = vadd.f32 %v1783_v35, %v1715_v6 }
 0x1ce   : > { %2934 = vmatmul.mubr.msk.f32.gmra.mrb[8].mxu0 %vm1234_vm0, %v2317_v0  ;;  %v1799_v33 = vmul.f32 %v4420_v3, %v4656_v7  ;;  %v1716_v54 = vadd.f32 %v1684_v16, %v1616_v50  ;;  %v1111_v5 = vadd.f32 %v1079_v60, %v914_v13  ;;  %v2099_v34 = vmul.f32 %v4363_v9, %v2063_v46  ;;  %v1049_v39 = vpop.permute.xlu1 %1048  ;;  %v5139_v13 = vld [vmem:[#allocation17_spill] sm:$0xff] }
 0x1cf   : > { %v2230_v1 = vadd.f32 %v2198_v63, %v2130_v28  ;;  %v2031_v32 = vadd.f32 %v1999_v51, %v4604_v59  ;;  %v1199_v52 = vmax.f32 %v1167_v24, 0.0  ;;  %v2199_v36 = vmul.f32 %v4495_v21, %v4688_v49  ;;  %v5140_v28 = vld [vmem:[#allocation16_spill] sm:$0xff] }
 0x1d0   : > { %v1731_v23 = vadd.f32 %v1699_v31, %v4612_v44  ;;  %v1700_v12 = vmul.f32 %v4390_v29, %v1963_v57  ;;  %v1150_v35 = vadd.f32 %v4154_v40, %v1111_v5  ;;  %v1095_v6 = vmul.f32 %v4136_v47, %v1049_v39 }
 0x1d1   : > { %v2268_v50 = vadd.f32 %v4651_v55, %v2230_v1  ;;  %v2131_v16 = vadd.f32 %v2099_v34, %v2031_v32  ;;  %v915_v59 = vadd.f32 %v883_v48, %v5139_v13  ;;  %v1231_v18 = vmin.f32 %v1199_v52, 6.0 }
 0x1d2   : > { %v4704_v38 = vadd.f32 %v1883_v22, %v1815_v58  ;;  %v1485_v0 = vmul.f32 %v4348_v41, %v4583_v14  ;;  %v1182_v60 = vmax.f32 %v1150_v35, 0.0  ;;  %v1127_v44 = vadd.f32 %v1095_v6, %v5140_v28  ;;  %v989_v51 = vpop.permute.xlu1 %988 }
 0x1d3   : > { %v2300_v31 = vmax.f32 %v2268_v50, 0.0  ;;  %v2231_v63 = vadd.f32 %v2199_v36, %v2131_v16  ;;  %1320 = vst.msk [vmem:[#allocation2 + $0x171] sm:$0xff] %vm1234_vm0, %v1231_v18  ;;  %v1831_v24 = vadd.f32 %v1799_v33, %v1731_v23  ;;  %v1732_v5 = vadd.f32 %v1700_v12, %v1632_v27 }
 0x1d4   : > { %v1816_v1 = vadd.f32 %v4623_v43, %v1716_v54  ;;  %v1386_v48 = vmul.f32 %v4292_v20, %v4596_v10  ;;  %v1214_v22 = vmin.f32 %v1182_v60, 6.0  ;;  %v1166_v58 = vadd.f32 %v4154_v40, %v1127_v44 }
 0x1d5   : > { %v1080_v14 = vmul.f32 %v4136_v47, %v989_v51  ;;  %v2332_v32 = vmin.f32 %v2300_v31, 6.0  ;;  %v2269_v34 = vadd.f32 %v4651_v55, %v2231_v63  ;;  %v1585_v52 = vmul.f32 %v4320_v17, %v4600_v2 }
 0x1d6   : > { %v1402_v39 = vmul.f32 %v4292_v20, %v1963_v57  ;;  %v1502_v27 = vmul.f32 %v4348_v41, %v2063_v46  ;;  %1303 = vst.msk [vmem:[#allocation2 + $0xa9] sm:$0xff] %vm1234_vm0, %v1214_v22  ;;  %v1198_v43 = vmax.f32 %v1166_v58, 0.0  ;;  %v1800_v10 = vmul.f32 %v4420_v3, %v2063_v46 }
 0x1d7   : > { %v1112_v33 = vadd.f32 %v1080_v14, %v915_v59  ;;  %2957 = vmatprep.mubr.msk.f32.mxu1 %vm1234_vm0, %v2332_v32  ;;  %v1517_v54 = vadd.f32 %v1485_v0, %v1385_v62  ;;  %v2301_v47 = vmax.f32 %v2269_v34, 0.0  ;;  %v1518_v36 = vadd.f32 %v4632_v25, %v1386_v48  ;;  %v860_v35 = vpop.permute.xlu1 %859  ;;  %v5141_v59 = vld [vmem:[#allocation18_spill] sm:$0xff] }
 0x1d8   : > { %v1401_v23 = vmul.f32 %v4292_v20, %v4610_v8  ;;  %v1501_v2 = vmul.f32 %v4348_v41, %v4656_v7  ;;  %v1230_v57 = vmin.f32 %v1198_v43, 6.0  ;;  %v1899_v6 = vmul.f32 %v4439_v26, %v4679_v53 }
 0x1d9   : > { %v1151_v12 = vadd.f32 %v4154_v40, %v1112_v33  ;;  %v1832_v50 = vadd.f32 %v1800_v10, %v1732_v5  ;;  %v900_v46 = vmul.f32 %v4194_v45, %v860_v35  ;;  %v2333_v62 = vmin.f32 %v2301_v47, 6.0  ;;  %v5142_v47 = vld [vmem:[#allocation22_spill] sm:$0xff] }
 0x1da   : > { %v1601_v25 = vmul.f32 %v4320_v17, %v4679_v53  ;;  %v1534_v16 = vadd.f32 %v1502_v27, %v1402_v39  ;;  %1319 = vst.msk [vmem:[#allocation2 + $0x169] sm:$0xff] %vm1234_vm0, %v1230_v57  ;;  %v1900_v7 = vmul.f32 %v4439_v26, %v4688_v49  ;;  %v4738_v40 = vadd.f32 %v4626_v15, %v1816_v1  ;;  %v2065_v0 = vld [vmem:[#allocation2 + $0x171] sm:$0xff] }
 0x1db   : > { %v1183_v8 = vmax.f32 %v1151_v12, 0.0  ;;  %v4742_v13 = vmul.f32 %v4390_v29, %v4618_v56  ;;  %v932_v18 = vadd.f32 %v900_v46, %v5141_v59  ;;  %2958 = vmatmul.mubr.msk.f32.gmra.mrb[8].mxu1 %vm1234_vm0, %v2333_v62  ;;  %v4746_v53 = vld [vmem:[#allocation2 + $0x172] sm:$0xff]  ;;  %v1617_v60 = vadd.f32 %v1585_v52, %v1517_v54  ;;  %v864_v63 = vpop.permute.xlu1 %863 }
 0x1dc   : > { %v1533_v28 = vadd.f32 %v1501_v2, %v1401_v23  ;;  %v1602_v44 = vmul.f32 %v4320_v17, %v4688_v49  ;;  %v1931_v15 = vadd.f32 %v1899_v6, %v1831_v24  ;;  %v1932_v51 = vadd.f32 %v1900_v7, %v1832_v50  ;;  %v3054_v6 = vld [vmem:[%s5059_s1 + $0x3] ss:$0 sm:$0xff] }
 0x1dd   : > { %v1215_v31 = vmin.f32 %v1183_v8, 6.0  ;;  %v4751_v5 = vadd.f32 %v4635_v11, %v1518_v36  ;;  %v1129_v56 = vadd.f32 %v4556_v4, %v932_v18  ;;  %v901_v1 = vmul.f32 %v4194_v45, %v864_v63  ;;  %v1948_v48 = vld [vmem:[#allocation2 + $0xa8] sm:$0xff]  ;;  %v3053_v45 = vld [vmem:[%s5060_s2] ss:$0 sm:$0xff] }
 0x1de   : > { %v2048_v22 = vld [vmem:[#allocation2 + $0xa9] sm:$0xff]  ;;  %v4755_v58 = vadd.f32 %v1601_v25, %v1533_v28  ;;  %v4757_v14 = vadd.f32 %v1602_v44, %v1534_v16  ;;  %v1984_v49 = vmul.f32 %v4502_v61, %v1948_v48  ;;  %v2101_v24 = vmul.f32 %v4363_v9, %v2065_v0 }
 0x1df   : > { %1304 = vst.msk [vmem:[#allocation2 + $0xb1] sm:$0xff] %vm1234_vm0, %v1215_v31  ;;  %v2201_v11 = vmul.f32 %v4495_v21, %v4746_v53  ;;  %v1685_v32 = vmul.f32 %v4390_v29, %v1948_v48  ;;  %v1168_v4 = vadd.f32 %v3053_v45, %v1129_v56  ;;  %v1387_v34 = vmul.f32 %v4292_v20, %v1948_v48 }
 0x1e0   : > { %v1487_v52 = vmul.f32 %v4348_v41, %v2048_v22  ;;  %v4771_v39 = vmul.f32 %v4420_v3, %v2065_v0  ;;  %v2016_v27 = vadd.f32 %v1984_v49, %v4704_v38  ;;  %v2084_v43 = vmul.f32 %v4363_v9, %v2048_v22  ;;  %v1061_v23 = vpop.permute.xlu1 %1060 }
 0x1e1   : > { %v1717_v33 = vadd.f32 %v1685_v32, %v1617_v60  ;;  %v4777_v10 = vmul.f32 %v4439_v26, %v4746_v53  ;;  %v1200_v54 = vmax.f32 %v1168_v4, 0.0  ;;  %v933_v36 = vadd.f32 %v901_v1, %v5142_v47  ;;  %v4780_v2 = vld [vmem:[#allocation2 + $0x168] sm:$0xff]  ;;  %v4795_v25 = vld [vmem:[#allocation2 + $0x170] sm:$0xff] }
 0x1e2   : > { %v4782_v57 = vld [vmem:[#allocation2 + $0x169] sm:$0xff]  ;;  %v1785_v35 = vmul.f32 %v4420_v3, %v2048_v22  ;;  %v4788_v38 = vmul.f32 %v4348_v41, %v2065_v0  ;;  %v1098_v50 = vmul.f32 %v3054_v6, %v1061_v23  ;;  %v2116_v46 = vadd.f32 %v2084_v43, %v2016_v27 }
 0x1e3   : > { %v4784_v12 = vld [vmem:[#allocation2 + $0x16a] sm:$0xff]  ;;  %v2000_v62 = vmul.f32 %v4502_v61, %v4780_v2  ;;  %v1519_v16 = vadd.f32 %v1487_v52, %v1387_v34  ;;  %v1232_v8 = vmin.f32 %v1200_v54, 6.0  ;;  %v2100_v7 = vmul.f32 %v4363_v9, %v4782_v57 }
 0x1e4   : > { %v2200_v59 = vmul.f32 %v4495_v21, %v4784_v12  ;;  %v2001_v18 = vmul.f32 %v4502_v61, %v4795_v25  ;;  %v1130_v0 = vadd.f32 %v1098_v50, %v933_v36  ;;  %v1817_v28 = vadd.f32 %v1785_v35, %v1717_v33 }
 0x1e5   : > { %v2032_v60 = vadd.f32 %v2000_v62, %v1931_v15  ;;  %v1701_v44 = vmul.f32 %v4390_v29, %v4780_v2  ;;  %1321 = vst.msk [vmem:[#allocation2 + $0x181] sm:$0xff] %vm1234_vm0, %v1232_v8  ;;  %v1801_v48 = vmul.f32 %v4420_v3, %v4782_v57  ;;  %v4810_v22 = vmul.f32 %v4439_v26, %v4784_v12 }
 0x1e6   : > { %v2148_v31 = vld [vmem:[#allocation2 + $0xaa] sm:$0xff]  ;;  %v2033_v63 = vadd.f32 %v2001_v18, %v1932_v51  ;;  %v4814_v15 = vmul.f32 %v4390_v29, %v4795_v25  ;;  %v1169_v49 = vadd.f32 %v3053_v45, %v1130_v0  ;;  %v2149_v51 = vld [vmem:[#allocation2 + $0xb2] sm:$0xff]  ;;  %v5143_v0 = vld [vmem:[#allocation25_spill] sm:$0xff] }
 0x1e7   : > { %v1949_v56 = vld [vmem:[#allocation2 + $0xb0] sm:$0xff]  ;;  %v2184_v32 = vmul.f32 %v4495_v21, %v2148_v31  ;;  %v2132_v4 = vadd.f32 %v2100_v7, %v2032_v60  ;;  %v2185_v43 = vmul.f32 %v4495_v21, %v2149_v51  ;;  %v1885_v33 = vmul.f32 %v4439_v26, %v2148_v31 }
 0x1e8   : > { %v2049_v1 = vld [vmem:[#allocation2 + $0xb1] sm:$0xff]  ;;  %v1985_v34 = vmul.f32 %v4502_v61, %v1949_v56  ;;  %v2133_v52 = vadd.f32 %v2101_v24, %v2033_v63  ;;  %v1201_v54 = vmax.f32 %v1169_v49, 0.0  ;;  %v1686_v6 = vmul.f32 %v4390_v29, %v1949_v56 }
 0x1e9   : > { %v2085_v27 = vmul.f32 %v4363_v9, %v2049_v1  ;;  %v2216_v47 = vadd.f32 %v2184_v32, %v2116_v46  ;;  %v2232_v36 = vadd.f32 %v2200_v59, %v2132_v4  ;;  %v1917_v45 = vadd.f32 %v1885_v33, %v1817_v28  ;;  %v5144_v32 = vld [vmem:[#allocation21_spill] sm:$0xff] }
 0x1ea   : > { %v2017_v23 = vadd.f32 %v1985_v34, %v4738_v40  ;;  %v2233_v35 = vadd.f32 %v2201_v11, %v2133_v52  ;;  %v1786_v50 = vmul.f32 %v4420_v3, %v2049_v1  ;;  %v1233_v62 = vmin.f32 %v1201_v54, 6.0 }
 0x1eb   : > { %v2254_v24 = vadd.f32 %v4651_v55, %v2216_v47  ;;  %v2270_v8 = vadd.f32 %v4651_v55, %v2232_v36  ;;  %v2018_v60 = vadd.f32 %v5143_v0, %v1917_v45  ;;  %v1718_v46 = vadd.f32 %v1686_v6, %v4751_v5  ;;  %v5145_v36 = vld [vmem:[#allocation20_spill] sm:$0xff] }
 0x1ec   : > { %v2117_v7 = vadd.f32 %v2085_v27, %v2017_v23  ;;  %v2271_v18 = vadd.f32 %v4651_v55, %v2233_v35  ;;  %v1886_v40 = vmul.f32 %v4439_v26, %v2149_v51  ;;  %1322 = vst.msk [vmem:[#allocation2 + $0x189] sm:$0xff] %vm1234_vm0, %v1233_v62  ;;  %v1587_v63 = vmul.f32 %v4320_v17, %v2148_v31 }
 0x1ed   : > { %v2286_v11 = vmax.f32 %v2254_v24, 0.0  ;;  %v2302_v59 = vmax.f32 %v2270_v8, 0.0  ;;  %v2118_v4 = vadd.f32 %v5144_v32, %v2018_v60  ;;  %v1818_v34 = vadd.f32 %v1786_v50, %v1718_v46  ;;  %v2066_v8 = vld [vmem:[#allocation2 + $0x181] sm:$0xff] }
 0x1ee   : > { %v2217_v28 = vadd.f32 %v2185_v43, %v2117_v7  ;;  %v2303_v49 = vmax.f32 %v2271_v18, 0.0  ;;  %v1388_v52 = vmul.f32 %v4292_v20, %v1949_v56  ;;  %v1619_v5 = vadd.f32 %v1587_v63, %v1519_v16  ;;  %v1966_v43 = vld [vmem:[#allocation2 + $0x180] sm:$0xff] }
 0x1ef   : > { %v2318_v27 = vmin.f32 %v2286_v11, 6.0  ;;  %v2334_v33 = vmin.f32 %v2302_v59, 6.0  ;;  %v2218_v23 = vadd.f32 %v5145_v36, %v2118_v4  ;;  %v1918_v35 = vadd.f32 %v1886_v40, %v1818_v34 }
 0x1f0   : > { %v2255_v54 = vadd.f32 %v4651_v55, %v2217_v28  ;;  %v2335_v47 = vmin.f32 %v2303_v49, 6.0  ;;  %v1488_v45 = vmul.f32 %v4348_v41, %v2049_v1  ;;  %v1719_v6 = vadd.f32 %v4645_v42, %v1619_v5  ;;  %v5147_v28 = vld [vmem:[#allocation10_spill] sm:$0xff] }
 0x1f1   : > { %2936 = vmatprep.mubr.msk.f32.mxu0 %vm1234_vm0, %v2318_v27  ;;  %2960 = vmatprep.mubr.msk.f32.mxu1 %vm1234_vm0, %v2334_v33  ;;  %v1733_v56 = vadd.f32 %v1701_v44, %v4755_v58  ;;  %v1403_v50 = vmul.f32 %v4292_v20, %v4780_v2  ;;  %v2256_v16 = vadd.f32 %v4651_v55, %v2218_v23  ;;  %v5146_v44 = vld [vmem:[#allocation24_spill] sm:$0xff] }
 0x1f2   : > { %v2287_v31 = vmax.f32 %v2255_v54, 0.0  ;;  %2961 = vmatmul.mubr.msk.f32.gmra.mrb[10].mxu1 %vm1234_vm0, %v2335_v47  ;;  %v2019_v62 = vadd.f32 %v4641_v19, %v1918_v35  ;;  %v1520_v1 = vadd.f32 %v1488_v45, %v1388_v52  ;;  %v1588_v24 = vmul.f32 %v4320_v17, %v2149_v51  ;;  %v5149_v52 = vld [vmem:[#allocation11_spill] sm:$0xff]  ;;  %v5151_v35 = vld [vmem:[#allocation6_spill] sm:$0xff] }
 0x1f3   : > { %v1819_v18 = vadd.f32 %v4660_v37, %v1719_v6  ;;  %v1833_v0 = vadd.f32 %v1801_v48, %v1733_v56  ;;  %v2002_v42 = vmul.f32 %v4502_v61, %v1966_v43  ;;  %v2288_v58 = vmax.f32 %v2256_v16, 0.0  ;;  %v2166_v2 = vld [vmem:[#allocation2 + $0x182] sm:$0xff]  ;;  %v2167_v54 = vld [vmem:[#allocation2 + $0x18a] sm:$0xff] }
 0x1f4   : > { %v2319_v7 = vmin.f32 %v2287_v31, 6.0  ;;  %v2119_v60 = vadd.f32 %v5146_v44, %v2019_v62  ;;  %v1620_v20 = vadd.f32 %v1588_v24, %v1520_v1  ;;  %v1734_v46 = vadd.f32 %v4814_v15, %v4757_v14  ;;  %v1967_v40 = vld [vmem:[#allocation2 + $0x188] sm:$0xff]  ;;  %v5148_v15 = vld [vmem:[#allocation9_spill] sm:$0xff] }
 0x1f5   : > { %v4852_v19 = vld [vmem:[#allocation2 + $0x189] sm:$0xff]  ;;  %v1919_v51 = vadd.f32 %v4664_v30, %v1819_v18  ;;  %v1933_v37 = vadd.f32 %v4810_v22, %v1833_v0  ;;  %v2102_v48 = vmul.f32 %v4363_v9, %v2066_v8  ;;  %v2003_v11 = vmul.f32 %v4502_v61, %v1967_v40  ;;  %v5152_v56 = vld [vmem:[#allocation5_spill] sm:$0xff] }
 0x1f6   : > { %2937 = vmatmul.mubr.msk.f32.gmra.mrb[10].mxu0 %vm1234_vm0, %v2319_v7  ;;  %v2320_v59 = vmin.f32 %v2288_v58, 6.0  ;;  %v2219_v63 = vadd.f32 %v5147_v28, %v2119_v60  ;;  %v1720_v49 = vadd.f32 %v4742_v13, %v1620_v20  ;;  %v1834_v14 = vadd.f32 %v4771_v39, %v1734_v46  ;;  %v5150_v39 = vld [vmem:[#allocation13_spill] sm:$0xff]  ;;  %v5153_v1 = vld [vmem:[#allocation14_spill] sm:$0xff] }
 0x1f7   : > { %v2020_v32 = vadd.f32 %v5148_v15, %v1919_v51  ;;  %v2034_v4 = vadd.f32 %v2002_v42, %v1933_v37  ;;  %v2202_v34 = vmul.f32 %v4495_v21, %v2166_v2  ;;  %v2103_v30 = vmul.f32 %v4363_v9, %v4852_v19  ;;  %v3055_v42 = vld [vmem:[%s5061_s3] ss:$0 sm:$0xff] }
 0x1f8   : > { %2939 = vmatprep.mubr.msk.f32.mxu0 %vm1234_vm0, %v2320_v59  ;;  %v2257_v22 = vadd.f32 %v4651_v55, %v2219_v63  ;;  %v1820_v27 = vadd.f32 %v5149_v52, %v1720_v49  ;;  %v1934_v33 = vadd.f32 %v4777_v10, %v1834_v14  ;;  %v1503_v13 = vmul.f32 %v4348_v41, %v4782_v57  ;;  %v2068_v37 = vld [vmem:[#allocation2 + $0x199] sm:$0xff] }
 0x1f9   : > { %v2120_v5 = vadd.f32 %v5150_v39, %v2020_v32  ;;  %v2134_v47 = vadd.f32 %v2102_v48, %v2034_v4  ;;  %v1603_v36 = vmul.f32 %v4320_v17, %v4784_v12  ;;  %v1703_v9 = vmul.f32 %v4390_v29, %v1966_v43  ;;  %v2168_v15 = vld [vmem:[#allocation2 + $0x19a] sm:$0xff] }
 0x1fa   : > { %v2289_v23 = vmax.f32 %v2257_v22, 0.0  ;;  %v1920_v45 = vadd.f32 %v5151_v35, %v1820_v27  ;;  %v2035_v31 = vadd.f32 %v2003_v11, %v1934_v33  ;;  %v1535_v6 = vadd.f32 %v1503_v13, %v1403_v50  ;;  %v1968_v50 = vld [vmem:[#allocation2 + $0x198] sm:$0xff]  ;;  %v5155_v11 = vld [vmem:[#allocation23_spill] sm:$0xff]  ;;  %v2069_v39 = vld [vmem:[#allocation2 + $0x1a1] sm:$0xff] }
 0x1fb   : > { %v2220_v16 = vadd.f32 %v5152_v56, %v2120_v5  ;;  %v2234_v10 = vadd.f32 %v2202_v34, %v2134_v47  ;;  %v2203_v62 = vmul.f32 %v4495_v21, %v2167_v54  ;;  %v1604_v41 = vmul.f32 %v4320_v17, %v4746_v53  ;;  %v5154_v17 = vld [vmem:[#allocation3_spill] sm:$0xff]  ;;  %v2169_v35 = vld [vmem:[#allocation2 + $0x1a2] sm:$0xff] }
 0x1fc   : > { %v2321_v57 = vmin.f32 %v2289_v23, 6.0  ;;  %v2021_v24 = vadd.f32 %v5153_v1, %v1920_v45  ;;  %v2135_v7 = vadd.f32 %v2103_v30, %v2035_v31  ;;  %v1635_v12 = vadd.f32 %v1603_v36, %v1535_v6  ;;  %v2684_v1 = vld [vmem:[%s3126_s29 + $0x88] sm:$0xff] }
 0x1fd   : > { %v2258_v43 = vadd.f32 %v4651_v55, %v2220_v16  ;;  %v2272_v18 = vadd.f32 %v4651_v55, %v2234_v10  ;;  %v1803_v0 = vmul.f32 %v4420_v3, %v2066_v8  ;;  %v1404_v58 = vmul.f32 %v3055_v42, %v4795_v25 }
 0x1fe   : > { %2940 = vmatmul.mubr.msk.f32.gmra.mrb[12].mxu0 %vm1234_vm0, %v2321_v57  ;;  %v2121_v53 = vadd.f32 %v5154_v17, %v2021_v24  ;;  %v2235_v44 = vadd.f32 %v2203_v62, %v2135_v7  ;;  %v1735_v60 = vadd.f32 %v1703_v9, %v1635_v12  ;;  %v1903_v20 = vmul.f32 %v4439_v26, %v2166_v2  ;;  %v2683_v12 = vld [vmem:[%s3126_s29 + $0x80] sm:$0xff] }
 0x1ff   : > { %v2290_v46 = vmax.f32 %v2258_v43, 0.0  ;;  %v2304_v51 = vmax.f32 %v2272_v18, 0.0  ;;  %v1536_v8 = vadd.f32 %v4788_v38, %v1404_v58  ;;  %v1704_v48 = vmul.f32 %v4390_v29, %v1967_v40  ;;  %v3056_v38 = vld [vmem:[%s5061_s3 + $0x7] ss:$0 sm:$0xff] }
 0x200   : > { %v2221_v59 = vadd.f32 %v5155_v11, %v2121_v53  ;;  %v2273_v28 = vadd.f32 %v4651_v55, %v2235_v44  ;;  %v1835_v25 = vadd.f32 %v1803_v0, %v1735_v60  ;;  %v2004_v63 = vmul.f32 %v4502_v61, %v1968_v50  ;;  %v1969_v40 = vld [vmem:[#allocation2 + $0x1a0] sm:$0xff]  ;;  %v2668_v50 = vld [vmem:[%s3126_s29 + $0x8] sm:$0xff] }
 0x201   : > { %v2322_v49 = vmin.f32 %v2290_v46, 6.0  ;;  %v2336_v14 = vmin.f32 %v2304_v51, 6.0  ;;  %v1636_v32 = vadd.f32 %v1604_v41, %v1536_v8  ;;  %v2104_v29 = vmul.f32 %v3056_v38, %v2068_v37  ;;  %v2667_v17 = vld [vmem:[%s3126_s29] sm:$0xff]  ;;  %v2686_v46 = vld [vmem:[%s3126_s29 + $0x98] sm:$0xff]  ;;  %v2685_v8 = vld [vmem:[%s3126_s29 + $0x90] sm:$0xff] }
 0x202   : > { %v2259_v2 = vadd.f32 %v4651_v55, %v2221_v59  ;;  %v2305_v4 = vmax.f32 %v2273_v28, 0.0  ;;  %v1935_v34 = vadd.f32 %v1903_v20, %v1835_v25  ;;  %v1804_v22 = vmul.f32 %v4420_v3, %v4852_v19  ;;  %v2670_v28 = vld [vmem:[%s3126_s29 + $0x18] sm:$0xff] }
 0x203   : > { %2942 = vmatprep.mubr.msk.f32.mxu0 %vm1234_vm0, %v2322_v49  ;;  %2963 = vmatprep.mubr.msk.f32.mxu1 %vm1234_vm0, %v2336_v14  ;;  %v1736_v30 = vadd.f32 %v1704_v48, %v1636_v32  ;;  %v2204_v13 = vmul.f32 %v4495_v21, %v2168_v15  ;;  %v1904_v47 = vmul.f32 %v4439_v26, %v2167_v54  ;;  %v2669_v14 = vld [vmem:[%s3126_s29 + $0x10] sm:$0xff] }
 0x204   : > { %v2291_v52 = vmax.f32 %v2259_v2, 0.0  ;;  %v2337_v27 = vmin.f32 %v2305_v4, 6.0  ;;  %v2036_v33 = vadd.f32 %v2004_v63, %v1935_v34  ;;  %v2005_v36 = vmul.f32 %v4502_v61, %v1969_v40  ;;  %v2672_v34 = vld [vmem:[%s3126_s29 + $0x28] sm:$0xff]  ;;  %v2671_v40 = vld [vmem:[%s3126_s29 + $0x20] sm:$0xff] }
 0x205   : > { %v1836_v5 = vadd.f32 %v1804_v22, %v1736_v30  ;;  %v2105_v31 = vmul.f32 %v3056_v38, %v2069_v39  ;;  %v2205_v6 = vmul.f32 %v4495_v21, %v2169_v35  ;;  %v4918_v21 = vld [vmem:[%s5064_s6] ss:$0 sm:$0xff]  ;;  %v2674_v35 = vld [vmem:[%s3126_s29 + $0x38] sm:$0xff] }
 0x206   : > { %v2323_v9 = vmin.f32 %v2291_v52, 6.0  ;;  %2964 = vmatmul.mubr.msk.f32.gmra.mrb[12].mxu1 %vm1234_vm0, %v2337_v27  ;;  %v2136_v23 = vadd.f32 %v2104_v29, %v2036_v33  ;;  %v2688_v33 = vld [vmem:[%s3126_s29 + $0xa8] sm:$0xff] }
 0x207   : > { %v1936_v45 = vadd.f32 %v1904_v47, %v1836_v5  ;;  %v2687_v5 = vld [vmem:[%s3126_s29 + $0xa0] sm:$0xff] }
 0x208   : > { %2943 = vmatmul.mubr.msk.f32.gmra.mrb[14].mxu0 %vm1234_vm0, %v2323_v9  ;;  %v2236_v3 = vadd.f32 %v2204_v13, %v2136_v23 }
 0x209   : > { %v2037_v19 = vadd.f32 %v2005_v36, %v1936_v45 }
 0x20a   : > { %v2274_v56 = vadd.f32 %v4651_v55, %v2236_v3  ;;  %v2673_v3 = vld [vmem:[%s3126_s29 + $0x30] sm:$0xff] }
 0x20b   : > { %v2137_v26 = vadd.f32 %v2105_v31, %v2037_v19 }
 0x20c   : > { %v2306_v61 = vmax.f32 %v2274_v56, 0.0 }
 0x20d   : > { %v2237_v54 = vadd.f32 %v2205_v6, %v2137_v26 }
 0x20e   : > { %v2338_v16 = vmin.f32 %v2306_v61, 6.0  ;;  %v2690_v61 = vld [vmem:[%s3126_s29 + $0xb8] sm:$0xff] }
 0x20f   : > { %v2275_v10 = vadd.f32 %v4651_v55, %v2237_v54 }
 0x210   : > { %2966 = vmatprep.mubr.msk.f32.mxu1 %vm1234_vm0, %v2338_v16 }
 0x211   : > { %v2307_v62 = vmax.f32 %v2275_v10, 0.0  ;;  %v2689_v10 = vld [vmem:[%s3126_s29 + $0xb0] sm:$0xff] }
 0x213   : > { %v2339_v41 = vmin.f32 %v2307_v62, 6.0 }
 0x215   : > { %2967 = vmatmul.mubr.msk.f32.gmra.mrb[14].mxu1 %vm1234_vm0, %v2339_v41 }
 0x239   : > { %v2947_v57 = vpop.f32.mrb[0].mxu1 }
 0x23a   : > { %v2594_v24 = vadd.f32 %v2947_v57, %v4918_v21  ;;  %v2588_v7 = vpop.f32.mrb[1].mxu1 }
 0x23b   : > { %v2589_v55 = vadd.f32 %v4918_v21, %v2588_v7 }
 0x23c   : > { %v2716_v43 = vadd.f32 %v2684_v1, %v2594_v24  ;;  %v2676_v24 = vld [vmem:[%s3126_s29 + $0x48] sm:$0xff] }
 0x23d   : > { %v2715_v18 = vadd.f32 %v2683_v12, %v2589_v55  ;;  %v2675_v55 = vld [vmem:[%s3126_s29 + $0x40] sm:$0xff] }
 0x23e   : > { %2749 = vst.msk [vmem:[%s4928_s30 + $0x88] sm:$0xff] %vm2731_vm2, %v2716_v43 }
 0x23f   : > { %2748 = vst.msk [vmem:[%s4928_s30 + $0x80] sm:$0xff] %vm2731_vm2, %v2715_v18  ;;  %v2923_v0 = vpop.f32.mrb[0].mxu0 }
 0x240   : > { %v2514_v42 = vadd.f32 %v2923_v0, %v4918_v21  ;;  %v2508_v58 = vpop.f32.mrb[1].mxu0 }
 0x241   : > { %v2509_v53 = vadd.f32 %v4918_v21, %v2508_v58 }
 0x242   : > { %v2700_v44 = vadd.f32 %v2668_v50, %v2514_v42  ;;  %v2692_v42 = vld [vmem:[%s3126_s29 + $0xc8] sm:$0xff] }
 0x243   : > { %v2699_v60 = vadd.f32 %v2667_v17, %v2509_v53  ;;  %v2691_v53 = vld [vmem:[%s3126_s29 + $0xc0] sm:$0xff] }
 0x244   : > { %2733 = vst.msk [vmem:[%s4928_s30 + $0x8] sm:$0xff] %vm2731_vm2, %v2700_v44 }
 0x245   : > { %2732 = vst.msk [vmem:[%s4928_s30] sm:$0xff] %vm2731_vm2, %v2699_v60 }
 0x250   : > { %v2950_v20 = vpop.f32.mrb[2].mxu1 }
 0x251   : > { %v2604_v51 = vadd.f32 %v2950_v20, %v4918_v21  ;;  %v2598_v37 = vpop.f32.mrb[3].mxu1 }
 0x252   : > { %v2599_v48 = vadd.f32 %v4918_v21, %v2598_v37 }
 0x253   : > { %v2718_v11 = vadd.f32 %v2686_v46, %v2604_v51  ;;  %v2694_v51 = vld [vmem:[%s3126_s29 + $0xd8] sm:$0xff] }
 0x254   : > { %v2717_v25 = vadd.f32 %v2685_v8, %v2599_v48  ;;  %v2693_v48 = vld [vmem:[%s3126_s29 + $0xd0] sm:$0xff] }
 0x255   : > { %v2926_v59 = vpop.f32.mrb[2].mxu0  ;;  %2751 = vst.msk [vmem:[%s4928_s30 + $0x98] sm:$0xff] %vm2731_vm2, %v2718_v11 }
 0x256   : > { %v2524_v63 = vadd.f32 %v2926_v59, %v4918_v21  ;;  %v2518_v49 = vpop.f32.mrb[3].mxu0  ;;  %2750 = vst.msk [vmem:[%s4928_s30 + $0x90] sm:$0xff] %vm2731_vm2, %v2717_v25  ;;  %v2678_v25 = vld [vmem:[%s3126_s29 + $0x58] sm:$0xff] }
 0x257   : > { %v2519_v15 = vadd.f32 %v4918_v21, %v2518_v49 }
 0x258   : > { %v2702_v32 = vadd.f32 %v2670_v28, %v2524_v63 }
 0x259   : > { %v2701_v2 = vadd.f32 %v2669_v14, %v2519_v15  ;;  %v2677_v15 = vld [vmem:[%s3126_s29 + $0x50] sm:$0xff] }
 0x25a   : > { %2735 = vst.msk [vmem:[%s4928_s30 + $0x18] sm:$0xff] %vm2731_vm2, %v2702_v32 }
 0x25b   : > { %2734 = vst.msk [vmem:[%s4928_s30 + $0x10] sm:$0xff] %vm2731_vm2, %v2701_v2 }
 0x265   : > { %v2929_v4 = vpop.f32.mrb[4].mxu0 }
 0x266   : > { %v2534_v38 = vadd.f32 %v2929_v4, %v4918_v21  ;;  %v2528_v29 = vpop.f32.mrb[5].mxu0 }
 0x267   : > { %v2529_v30 = vadd.f32 %v4918_v21, %v2528_v29 }
 0x268   : > { %v2704_v22 = vadd.f32 %v2672_v34, %v2534_v38  ;;  %v2680_v38 = vld [vmem:[%s3126_s29 + $0x68] sm:$0xff] }
 0x269   : > { %v2703_v52 = vadd.f32 %v2671_v40, %v2529_v30  ;;  %v2953_v27 = vpop.f32.mrb[4].mxu1  ;;  %v2679_v30 = vld [vmem:[%s3126_s29 + $0x60] sm:$0xff] }
 0x26a   : > { %2737 = vst.msk [vmem:[%s4928_s30 + $0x28] sm:$0xff] %vm2731_vm2, %v2704_v22  ;;  %v2614_v13 = vadd.f32 %v2953_v27, %v4918_v21  ;;  %v2608_v39 = vpop.f32.mrb[5].mxu1 }
 0x26b   : > { %2736 = vst.msk [vmem:[%s4928_s30 + $0x20] sm:$0xff] %vm2731_vm2, %v2703_v52  ;;  %v2609_v47 = vadd.f32 %v4918_v21, %v2608_v39 }
 0x26c   : > { %v2720_v36 = vadd.f32 %v2688_v33, %v2614_v13  ;;  %v2696_v13 = vld [vmem:[%s3126_s29 + $0xe8] sm:$0xff] }
 0x26d   : > { %v2719_v9 = vadd.f32 %v2687_v5, %v2609_v47  ;;  %v2695_v47 = vld [vmem:[%s3126_s29 + $0xe0] sm:$0xff] }
 0x26e   : > { %2753 = vst.msk [vmem:[%s4928_s30 + $0xa8] sm:$0xff] %vm2731_vm2, %v2720_v36 }
 0x26f   : > { %2752 = vst.msk [vmem:[%s4928_s30 + $0xa0] sm:$0xff] %vm2731_vm2, %v2719_v9  ;;  %v2682_v9 = vld [vmem:[%s3126_s29 + $0x78] sm:$0xff] }
 0x280   : > { %v2932_v23 = vpop.f32.mrb[6].mxu0 }
 0x281   : > { %v2544_v45 = vadd.f32 %v2932_v23, %v4918_v21  ;;  %v2538_v31 = vpop.f32.mrb[7].mxu0 }
 0x282   : > { %v2539_v19 = vadd.f32 %v4918_v21, %v2538_v31  ;;  %v2681_v31 = vld [vmem:[%s3126_s29 + $0x70] sm:$0xff] }
 0x283   : > { %v2706_v6 = vadd.f32 %v2674_v35, %v2544_v45 }
 0x284   : > { %v2705_v56 = vadd.f32 %v2673_v3, %v2539_v19 }
 0x285   : > { %2739 = vst.msk [vmem:[%s4928_s30 + $0x38] sm:$0xff] %vm2731_vm2, %v2706_v6 }
 0x286   : > { %2738 = vst.msk [vmem:[%s4928_s30 + $0x30] sm:$0xff] %vm2731_vm2, %v2705_v56 }
 0x28e   : > { %v2956_v26 = vpop.f32.mrb[6].mxu1 }
 0x28f   : > { %v2624_v54 = vadd.f32 %v2956_v26, %v4918_v21  ;;  %v2618_v16 = vpop.f32.mrb[7].mxu1 }
 0x290   : > { %v2619_v62 = vadd.f32 %v4918_v21, %v2618_v16 }
 0x291   : > { %v2722_v41 = vadd.f32 %v2690_v61, %v2624_v54  ;;  %v2698_v54 = vld [vmem:[%s3126_s29 + $0xf8] sm:$0xff] }
 0x292   : > { %v2721_v57 = vadd.f32 %v2689_v10, %v2619_v62  ;;  %v2697_v62 = vld [vmem:[%s3126_s29 + $0xf0] sm:$0xff] }
 0x293   : > { %2755 = vst.msk [vmem:[%s4928_s30 + $0xb8] sm:$0xff] %vm2731_vm2, %v2722_v41 }
 0x294   : > { %2754 = vst.msk [vmem:[%s4928_s30 + $0xb0] sm:$0xff] %vm2731_vm2, %v2721_v57 }
 0x2a1   : > { %v2935_v1 = vpop.f32.mrb[8].mxu0 }
 0x2a2   : > { %v2554_v7 = vadd.f32 %v2935_v1, %v4918_v21  ;;  %v2548_v12 = vpop.f32.mrb[9].mxu0 }
 0x2a3   : > { %v2549_v43 = vadd.f32 %v4918_v21, %v2548_v12 }
 0x2a4   : > { %v2708_v18 = vadd.f32 %v2676_v24, %v2554_v7 }
 0x2a5   : > { %v2707_v0 = vadd.f32 %v2675_v55, %v2549_v43 }
 0x2a6   : > { %2741 = vst.msk [vmem:[%s4928_s30 + $0x48] sm:$0xff] %vm2731_vm2, %v2708_v18 }
 0x2a7   : > { %2740 = vst.msk [vmem:[%s4928_s30 + $0x40] sm:$0xff] %vm2731_vm2, %v2707_v0 }
 0x2ae   : > { %v2959_v50 = vpop.f32.mrb[8].mxu1 }
 0x2af   : > { %v2634_v58 = vadd.f32 %v2959_v50, %v4918_v21  ;;  %v2628_v17 = vpop.f32.mrb[9].mxu1 }
 0x2b0   : > { %v2629_v44 = vadd.f32 %v4918_v21, %v2628_v17 }
 0x2b1   : > { %v2724_v60 = vadd.f32 %v2692_v42, %v2634_v58 }
 0x2b2   : > { %v2723_v20 = vadd.f32 %v2691_v53, %v2629_v44 }
 0x2b3   : > { %2757 = vst.msk [vmem:[%s4928_s30 + $0xc8] sm:$0xff] %vm2731_vm2, %v2724_v60 }
 0x2b4   : > { %2756 = vst.msk [vmem:[%s4928_s30 + $0xc0] sm:$0xff] %vm2731_vm2, %v2723_v20 }
 0x2c5   : > { %v2962_v46 = vpop.f32.mrb[10].mxu1 }
 0x2c6   : > { %v2644_v37 = vadd.f32 %v2962_v46, %v4918_v21  ;;  %v2638_v8 = vpop.f32.mrb[11].mxu1 }
 0x2c7   : > { %v2639_v11 = vadd.f32 %v4918_v21, %v2638_v8 }
 0x2c8   : > { %v2726_v59 = vadd.f32 %v2694_v51, %v2644_v37 }
 0x2c9   : > { %v2938_v28 = vpop.f32.mrb[10].mxu0  ;;  %v2725_v63 = vadd.f32 %v2693_v48, %v2639_v11 }
 0x2ca   : > { %v2564_v49 = vadd.f32 %v2938_v28, %v4918_v21  ;;  %v2558_v14 = vpop.f32.mrb[11].mxu0  ;;  %2759 = vst.msk [vmem:[%s4928_s30 + $0xd8] sm:$0xff] %vm2731_vm2, %v2726_v59 }
 0x2cb   : > { %v2559_v32 = vadd.f32 %v4918_v21, %v2558_v14  ;;  %2758 = vst.msk [vmem:[%s4928_s30 + $0xd0] sm:$0xff] %vm2731_vm2, %v2725_v63 }
 0x2cc   : > { %v2710_v2 = vadd.f32 %v2678_v25, %v2564_v49 }
 0x2cd   : > { %v2709_v4 = vadd.f32 %v2677_v15, %v2559_v32 }
 0x2ce   : > { %2743 = vst.msk [vmem:[%s4928_s30 + $0x58] sm:$0xff] %vm2731_vm2, %v2710_v2 }
 0x2cf   : > { %2742 = vst.msk [vmem:[%s4928_s30 + $0x50] sm:$0xff] %vm2731_vm2, %v2709_v4 }
 0x2d1   : > { %v2941_v34 = vpop.f32.mrb[12].mxu0 }
 0x2d2   : > { %v2574_v29 = vadd.f32 %v2941_v34, %v4918_v21  ;;  %v2568_v40 = vpop.f32.mrb[13].mxu0 }
 0x2d3   : > { %v2569_v22 = vadd.f32 %v4918_v21, %v2568_v40 }
 0x2d4   : > { %v2712_v52 = vadd.f32 %v2680_v38, %v2574_v29 }
 0x2d5   : > { %v2711_v27 = vadd.f32 %v2679_v30, %v2569_v22 }
 0x2d6   : > { %2745 = vst.msk [vmem:[%s4928_s30 + $0x68] sm:$0xff] %vm2731_vm2, %v2712_v52 }
 0x2d7   : > { %2744 = vst.msk [vmem:[%s4928_s30 + $0x60] sm:$0xff] %vm2731_vm2, %v2711_v27 }
 0x2d9   : > { %v2965_v33 = vpop.f32.mrb[12].mxu1 }
 0x2da   : > { %v2654_v39 = vadd.f32 %v2965_v33, %v4918_v21  ;;  %v2648_v5 = vpop.f32.mrb[13].mxu1 }
 0x2db   : > { %v2944_v36 = vpop.f32.mrb[14].mxu0  ;;  %v2649_v23 = vadd.f32 %v4918_v21, %v2648_v5 }
 0x2dc   : > { %v2584_v35 = vadd.f32 %v2944_v36, %v4918_v21  ;;  %v2578_v45 = vpop.f32.mrb[15].mxu0  ;;  %v2728_v3 = vadd.f32 %v2696_v13, %v2654_v39 }
 0x2dd   : > { %v2579_v19 = vadd.f32 %v4918_v21, %v2578_v45  ;;  %v2727_v6 = vadd.f32 %v2695_v47, %v2649_v23 }
 0x2de   : > { %v2714_v56 = vadd.f32 %v2682_v9, %v2584_v35  ;;  %2761 = vst.msk [vmem:[%s4928_s30 + $0xe8] sm:$0xff] %vm2731_vm2, %v2728_v3 }
 0x2df   : > { %v2713_v26 = vadd.f32 %v2681_v31, %v2579_v19  ;;  %2760 = vst.msk [vmem:[%s4928_s30 + $0xe0] sm:$0xff] %vm2731_vm2, %v2727_v6 }
 0x2e0   : > { %2747 = vst.msk [vmem:[%s4928_s30 + $0x78] sm:$0xff] %vm2731_vm2, %v2714_v56 }
 0x2e1   : > { %2746 = vst.msk [vmem:[%s4928_s30 + $0x70] sm:$0xff] %vm2731_vm2, %v2713_v26 }
 0x2e8   : > { %v2968_v61 = vpop.f32.mrb[14].mxu1 }
 0x2e9   : > { %v2664_v16 = vadd.f32 %v2968_v61, %v4918_v21  ;;  %v2658_v10 = vpop.f32.mrb[15].mxu1 }
 0x2ea   : > { %v2659_v41 = vadd.f32 %v4918_v21, %v2658_v10 }
 0x2eb   : > { %v2730_v57 = vadd.f32 %v2698_v54, %v2664_v16 }
 0x2ec   : > { %v2729_v1 = vadd.f32 %v2697_v62, %v2659_v41 }
 0x2ed   : > { %2763 = vst.msk [vmem:[%s4928_s30 + $0xf8] sm:$0xff] %vm2731_vm2, %v2730_v57 }
 0x2ee   : > { %2762 = vst.msk [vmem:[%s4928_s30 + $0xf0] sm:$0xff] %vm2731_vm2, %v2729_v1 }
 0x2ef PF: > { %s17_s24 = sadd.s32 1, %s3063_s24  }
 0x2f0   : > { %p14_p4 = scmp.ge.s32.totalorder %s17_s24, 4  }
 0x2f2   :  { %16 = sbr.rel (!%p14_p4) target bundleno = 1 (0x1), region = 80 }

</bundles_post_ra>
